<compile_context>
chip_gen: v7x
topology: tpu7x:2x2x1
jax: 0.10.0
libtpu: 0.0.40
codegen_flags: <defaults>
</compile_context>

<pallas_src>
import functools

import jax
import jax.numpy as jnp
from jax.experimental import pallas as pl
from jax.experimental.pallas import tpu as pltpu

B = 2        # number of views / batch
N = 64       # points per view
EPS = 1e-5   # BatchNorm eps (PyTorch default)

# Offsets into the packed (1, 2560) parameter vector (all 128-aligned lanes).
_G1, _BE1, _B2, _G3, _BE3, _B4, _END = 0, 128, 256, 512, 1024, 1536, 2560


def _pcn_encoder_kernel(pts_ref, w1_ref, w2_ref, w3_ref, w4_ref, vec_ref,
                        out_ref, *, b, n):
    bf16 = jnp.bfloat16

    # Packed tiny parameters -- free static lane slices of one VMEM ref.
    g1 = vec_ref[:, _G1:_BE1]
    be1 = vec_ref[:, _BE1:_B2]
    b2 = vec_ref[:, _B2:_G3]
    g3 = vec_ref[:, _G3:_BE3]
    be3 = vec_ref[:, _BE3:_B4]
    b4 = vec_ref[:, _B4:_END]

    def bn_relu(h, g, be):
        # Training-mode BN, two-pass batch statistics (biased var), f32 math.
        mu = jnp.mean(h, axis=0, keepdims=True)
        var = jnp.mean(jnp.square(h - mu), axis=0, keepdims=True)
        scale = jax.lax.rsqrt(var + EPS) * g
        return jnp.maximum((h - mu) * scale + be, 0.0)

    # ---- mlp1 (3->128, zero-padded to 8 lanes) + bn1 + relu ----------------
    # Conv bias b1 omitted: cancelled exactly by bn1's batch-mean subtraction.
    x = pts_ref[...].astype(bf16)                                     # (B*N, 8)
    h1 = jnp.dot(x, w1_ref[...], preferred_element_type=jnp.float32)
    h1 = bn_relu(h1, g1, be1)                                         # (B*N, 128)

    # ---- mlp2 (128->256) ---------------------------------------------------
    h2 = jnp.dot(h1.astype(bf16), w2_ref[...],
                 preferred_element_type=jnp.float32) + b2             # (B*N, 256)
    # Per-view max pool (f32) and bf16 cast hoisted here so f32 h2 dies early.
    h2_max = jnp.max(h2.reshape(b, n, 256), axis=1)                   # (B, 256)
    h2b = h2.astype(bf16)

    # ---- mlp3 (512->512) as a split matmul over the concat, + bn3 + relu ---
    #   concat(h2, repeat(h2_max)) @ w3
    #     == h2 @ w3[:256] + repeat_over_n(h2_max @ w3[256:])
    # Conv bias b3 omitted -- cancelled by bn3's batch-mean subtraction.
    h3 = jnp.dot(h2b, w3_ref[0:256, :],
                 preferred_element_type=jnp.float32)                  # (B*N, 512)
    r3 = jnp.dot(h2_max.astype(bf16), w3_ref[256:512, :],
                 preferred_element_type=jnp.float32)                  # (B, 512)
    h3 = (h3.reshape(b, n, 512) + r3[:, None, :]).reshape(b * n, 512)
    h3 = bn_relu(h3, g3, be3)                                         # (B*N, 512)

    # ---- mlp4 (512->1024), per-view max, bias (commutes with max), tanh ----
    h4 = jnp.dot(h3.astype(bf16), w4_ref[...],
                 preferred_element_type=jnp.float32)                  # (B*N, 1024)
    g = jnp.max(h4.reshape(b, n, 1024), axis=1) + b4                  # (B, 1024)
    out_ref[...] = jnp.tanh(g)


def pcn_encoder_forward(mv_points, kparams):
    """mv_points: (B, 3, N) f32 -> (B, 1024) f32.

    `kparams` must come from `prepare_kernel_params` (one-time weight prep)."""
    b, c_in, n = mv_points.shape
    # NCW -> channel-last, flatten points; zero-pad channel 3 -> 8.
    pts = jnp.transpose(mv_points, (0, 2, 1)).reshape(b * n, c_in)
    pts = jnp.pad(pts, ((0, 0), (0, 8 - c_in)))

    args = (pts, kparams["w1p"], kparams["w2"], kparams["w3"], kparams["w4"],
            kparams["vec"])

    rows = b * n
    flops = 2 * (rows * 8 * 128 + rows * 128 * 256
                 + rows * 256 * 512 + b * 256 * 512
                 + rows * 512 * 1024)
    bytes_accessed = (sum(int(a.size) * a.dtype.itemsize for a in args)
                      + b * 1024 * 4)
    cost = pl.CostEstimate(flops=flops,
                           transcendentals=b * 1024 + 128 + 512,
                           bytes_accessed=bytes_accessed)

    return pl.pallas_call(
        functools.partial(_pcn_encoder_kernel, b=b, n=n),
        out_shape=jax.ShapeDtypeStruct((b, 1024), jnp.float32),
        in_specs=[pl.BlockSpec(memory_space=pltpu.MemorySpace.VMEM)] * len(args),
        out_specs=pl.BlockSpec(memory_space=pltpu.MemorySpace.VMEM),
        compiler_params=pltpu.CompilerParams(vmem_limit_bytes=8 << 20),
        cost_estimate=cost,
    )(*args)


def prepare_kernel_params(params):
    """One-time conversion of PyTorch-layout f32 params to kernel layout:
    3->8 sublane padding of w1, bf16 casts of all matmul weights, and packing
    of the seven-ish tiny per-channel vectors into one f32 array (fewer DMAs).
    b1 and b3 are intentionally not forwarded (dead under batch-stat BN)."""
    bf16 = jnp.bfloat16
    c_in = params["w1"].shape[0]
    vec = jnp.concatenate(
        [params["g1"], params["be1"], params["b2"],
         params["g3"], params["be3"], params["b4"]], axis=-1).astype(jnp.float32)
    assert vec.shape == (1, _END), vec.shape
    return {
        "w1p": jnp.pad(params["w1"], ((0, 8 - c_in), (0, 0))).astype(bf16),
        "w2": params["w2"].astype(bf16),
        "w3": params["w3"].astype(bf16),       # kernel slices [:256] / [256:]
        "w4": params["w4"].astype(bf16),
        "vec": vec,                            # packed g1|be1|b2|g3|be3|b4
    }


def reference_forward(mv_points, params):
    """Pure-JAX f32 reference mirroring the PyTorch forward (training-mode BN,
    including the b1/b3 conv biases that the kernel legitimately drops)."""
    b, c_in, n = mv_points.shape
    x = jnp.transpose(mv_points, (0, 2, 1)).reshape(b * n, c_in)

    def bn(h, g, be):
        mu = jnp.mean(h, axis=0, keepdims=True)
        var = jnp.mean((h - mu) ** 2, axis=0, keepdims=True)
        return (h - mu) / jnp.sqrt(var + EPS) * g + be

    h = jax.nn.relu(bn(x @ params["w1"] + params["b1"], params["g1"], params["be1"]))
    h2 = h @ params["w2"] + params["b2"]
    h2_max = jnp.max(h2.reshape(b, n, -1), axis=1, keepdims=True)
    h2_rep = jnp.broadcast_to(h2_max, (b, n, h2.shape[-1])).reshape(b * n, -1)
    cat = jnp.concatenate([h2, h2_rep], axis=-1)
    h3 = jax.nn.relu(bn(cat @ params["w3"] + params["b3"], params["g3"], params["be3"]))
    h4 = h3 @ params["w4"] + params["b4"]
    return jnp.tanh(jnp.max(h4.reshape(b, n, -1), axis=1))


def init_params(key):
    """Deterministic parameter init (shapes from the PyTorch __init__), f32."""
    ks = jax.random.split(key, 12)

    def u(k, shape, fan_in):
        bound = 1.0 / jnp.sqrt(jnp.float32(fan_in))
        return jax.random.uniform(k, shape, jnp.float32, -bound, bound)

    p = {}
    p["w1"] = u(ks[0], (3, 128), 3)          # Conv1d(3,128,1).weight -> (3,128)
    p["b1"] = u(ks[1], (1, 128), 3)
    p["g1"] = 1.0 + 0.1 * jax.random.normal(ks[2], (1, 128), jnp.float32)   # bn1.weight
    p["be1"] = 0.1 * jax.random.normal(ks[3], (1, 128), jnp.float32)        # bn1.bias
    p["w2"] = u(ks[4], (128, 256), 128)      # Conv1d(128,256,1)
    p["b2"] = u(ks[5], (1, 256), 128)
    p["w3"] = u(ks[6], (512, 512), 512)      # Conv1d(512,512,1)
    p["b3"] = u(ks[7], (1, 512), 512)
    p["g3"] = 1.0 + 0.1 * jax.random.normal(ks[8], (1, 512), jnp.float32)   # bn3.weight
    p["be3"] = 0.1 * jax.random.normal(ks[9], (1, 512), jnp.float32)        # bn3.bias
    p["w4"] = u(ks[10], (512, 1024), 512)    # Conv1d(512,1024,1)
    p["b4"] = u(ks[11], (1, 1024), 512)
    return p


if __name__ == "__main__":
    key = jax.random.PRNGKey(0)
    kp, kx = jax.random.split(key, 2)
    params = init_params(kp)
    kernel_params = prepare_kernel_params(params)   # one-time pad/cast/pack

    mv_points = jax.random.normal(kx, (B, 3, N), jnp.float32)

    out = pcn_encoder_forward(mv_points, kernel_params)
    out = jax.block_until_ready(out)

    ref = reference_forward(mv_points, params)
    assert out.shape == (B, 1024), out.shape
    # bf16 matmul operands with f32 accumulation across four stacked layers;
    # the tanh output is bounded, so 2e-2 abs tolerance is comfortably above
    # the expected few-1e-3 error while still catching real bugs.
    err = float(jnp.max(jnp.abs(out - ref)))
    assert jnp.allclose(out, ref, atol=2e-2, rtol=2e-2), err
    print("KERNEL_OK")
</pallas_src>

<mosaic_0001>
module attributes {stable_mosaic.version = 11 : i64} {
  func.func @_pcn_encoder_kernel(%arg0: memref<128x8xf32, #tpu.memory_space<vmem>>, %arg1: memref<8x128xbf16, #tpu.memory_space<vmem>>, %arg2: memref<128x256xbf16, #tpu.memory_space<vmem>>, %arg3: memref<512x512xbf16, #tpu.memory_space<vmem>>, %arg4: memref<512x1024xbf16, #tpu.memory_space<vmem>>, %arg5: memref<1x2560xf32, #tpu.memory_space<vmem>>, %arg6: memref<2x1024xf32, #tpu.memory_space<vmem>>) attributes {dimension_semantics = [], scalar_prefetch = 0 : i64, scratch_operands = 0 : i64, tpu.core_type = #tpu.core_type<tc>} {
    %c0 = arith.constant 0 : index
    %c0_0 = arith.constant 0 : index
    %0 = vector.load %arg5[%c0, %c0_0] : memref<1x2560xf32, #tpu.memory_space<vmem>>, vector<1x128xf32>
    %c0_1 = arith.constant 0 : index
    %c128 = arith.constant 128 : index
    %1 = vector.load %arg5[%c0_1, %c128] : memref<1x2560xf32, #tpu.memory_space<vmem>>, vector<1x128xf32>
    %c0_2 = arith.constant 0 : index
    %c256 = arith.constant 256 : index
    %2 = vector.load %arg5[%c0_2, %c256] : memref<1x2560xf32, #tpu.memory_space<vmem>>, vector<1x256xf32>
    %c0_3 = arith.constant 0 : index
    %c512 = arith.constant 512 : index
    %3 = vector.load %arg5[%c0_3, %c512] : memref<1x2560xf32, #tpu.memory_space<vmem>>, vector<1x512xf32>
    %c0_4 = arith.constant 0 : index
    %c1024 = arith.constant 1024 : index
    %4 = vector.load %arg5[%c0_4, %c1024] : memref<1x2560xf32, #tpu.memory_space<vmem>>, vector<1x512xf32>
    %c0_5 = arith.constant 0 : index
    %c1536 = arith.constant 1536 : index
    %5 = vector.load %arg5[%c0_5, %c1536] : memref<1x2560xf32, #tpu.memory_space<vmem>>, vector<1x1024xf32>
    %c0_6 = arith.constant 0 : index
    %c0_7 = arith.constant 0 : index
    %6 = vector.load %arg0[%c0_6, %c0_7] : memref<128x8xf32, #tpu.memory_space<vmem>>, vector<128x8xf32>
    %7 = arith.truncf %6 : vector<128x8xf32> to vector<128x8xbf16>
    %c0_8 = arith.constant 0 : index
    %c0_9 = arith.constant 0 : index
    %8 = vector.load %arg1[%c0_8, %c0_9] : memref<8x128xbf16, #tpu.memory_space<vmem>>, vector<8x128xbf16>
    %cst = arith.constant dense<0.000000e+00> : vector<128x128xf32>
    %9 = tpu.matmul %7, %8, %cst {dimension_numbers = #tpu.dot_dimension_numbers<[1], [0], [0], [1], [0, 0, 1, 1], [], []>} : vector<128x8xbf16>, vector<8x128xbf16>, vector<128x128xf32> -> vector<128x128xf32>
    %cst_10 = arith.constant dense<0.000000e+00> : vector<128xf32>
    %10 = vector.multi_reduction <add>, %9, %cst_10 [0] : vector<128x128xf32> to vector<128xf32>
    %11 = vector.shape_cast %10 : vector<128xf32> to vector<1x128xf32>
    %cst_11 = arith.constant 1.280000e+02 : f32
    %12 = vector.broadcast %cst_11 : f32 to vector<1x128xf32>
    %13 = arith.divf %11, %12 : vector<1x128xf32>
    %14 = vector.broadcast %13 : vector<1x128xf32> to vector<128x128xf32>
    %15 = arith.subf %9, %14 : vector<128x128xf32>
    %16 = arith.mulf %15, %15 : vector<128x128xf32>
    %cst_12 = arith.constant dense<0.000000e+00> : vector<128xf32>
    %17 = vector.multi_reduction <add>, %16, %cst_12 [0] : vector<128x128xf32> to vector<128xf32>
    %18 = vector.shape_cast %17 : vector<128xf32> to vector<1x128xf32>
    %cst_13 = arith.constant 1.280000e+02 : f32
    %19 = vector.broadcast %cst_13 : f32 to vector<1x128xf32>
    %20 = arith.divf %18, %19 : vector<1x128xf32>
    %cst_14 = arith.constant 9.99999974E-6 : f32
    %21 = vector.broadcast %cst_14 : f32 to vector<1x128xf32>
    %22 = arith.addf %20, %21 : vector<1x128xf32>
    %23 = math.rsqrt %22 : vector<1x128xf32>
    %24 = arith.mulf %23, %0 : vector<1x128xf32>
    %25 = vector.broadcast %13 : vector<1x128xf32> to vector<128x128xf32>
    %26 = arith.subf %9, %25 : vector<128x128xf32>
    %27 = vector.broadcast %24 : vector<1x128xf32> to vector<128x128xf32>
    %28 = arith.mulf %26, %27 : vector<128x128xf32>
    %29 = vector.broadcast %1 : vector<1x128xf32> to vector<128x128xf32>
    %30 = arith.addf %28, %29 : vector<128x128xf32>
    %cst_15 = arith.constant 0.000000e+00 : f32
    %31 = vector.broadcast %cst_15 : f32 to vector<128x128xf32>
    %32 = arith.maximumf %30, %31 : vector<128x128xf32>
    %33 = arith.truncf %32 : vector<128x128xf32> to vector<128x128xbf16>
    %c0_16 = arith.constant 0 : index
    %c0_17 = arith.constant 0 : index
    %34 = vector.load %arg2[%c0_16, %c0_17] : memref<128x256xbf16, #tpu.memory_space<vmem>>, vector<128x256xbf16>
    %cst_18 = arith.constant dense<0.000000e+00> : vector<128x256xf32>
    %35 = tpu.matmul %33, %34, %cst_18 {dimension_numbers = #tpu.dot_dimension_numbers<[1], [0], [0], [1], [0, 0, 1, 1], [], []>} : vector<128x128xbf16>, vector<128x256xbf16>, vector<128x256xf32> -> vector<128x256xf32>
    %36 = vector.broadcast %2 : vector<1x256xf32> to vector<128x256xf32>
    %37 = arith.addf %35, %36 : vector<128x256xf32>
    %38 = vector.shape_cast %37 : vector<128x256xf32> to vector<2x64x256xf32>
    %cst_19 = arith.constant dense<0xFF800000> : vector<2x256xf32>
    %39 = vector.multi_reduction <maximumf>, %38, %cst_19 [1] : vector<2x64x256xf32> to vector<2x256xf32>
    %40 = arith.truncf %37 : vector<128x256xf32> to vector<128x256xbf16>
    %c0_20 = arith.constant 0 : index
    %c0_21 = arith.constant 0 : index
    %41 = vector.load %arg3[%c0_20, %c0_21] : memref<512x512xbf16, #tpu.memory_space<vmem>>, vector<256x512xbf16>
    %cst_22 = arith.constant dense<0.000000e+00> : vector<128x512xf32>
    %42 = tpu.matmul %40, %41, %cst_22 {dimension_numbers = #tpu.dot_dimension_numbers<[1], [0], [0], [1], [0, 0, 1, 1], [], []>} : vector<128x256xbf16>, vector<256x512xbf16>, vector<128x512xf32> -> vector<128x512xf32>
    %43 = arith.truncf %39 : vector<2x256xf32> to vector<2x256xbf16>
    %c256_23 = arith.constant 256 : index
    %c0_24 = arith.constant 0 : index
    %44 = vector.load %arg3[%c256_23, %c0_24] : memref<512x512xbf16, #tpu.memory_space<vmem>>, vector<256x512xbf16>
    %cst_25 = arith.constant dense<0.000000e+00> : vector<2x512xf32>
    %45 = tpu.matmul %43, %44, %cst_25 {dimension_numbers = #tpu.dot_dimension_numbers<[1], [0], [0], [1], [0, 0, 1, 1], [], []>} : vector<2x256xbf16>, vector<256x512xbf16>, vector<2x512xf32> -> vector<2x512xf32>
    %46 = vector.shape_cast %42 : vector<128x512xf32> to vector<2x64x512xf32>
    %47 = vector.shape_cast %45 : vector<2x512xf32> to vector<2x1x512xf32>
    %48 = vector.broadcast %47 : vector<2x1x512xf32> to vector<2x64x512xf32>
    %49 = arith.addf %46, %48 : vector<2x64x512xf32>
    %50 = vector.shape_cast %49 : vector<2x64x512xf32> to vector<128x512xf32>
    %cst_26 = arith.constant dense<0.000000e+00> : vector<512xf32>
    %51 = vector.multi_reduction <add>, %50, %cst_26 [0] : vector<128x512xf32> to vector<512xf32>
    %52 = vector.shape_cast %51 : vector<512xf32> to vector<1x512xf32>
    %cst_27 = arith.constant 1.280000e+02 : f32
    %53 = vector.broadcast %cst_27 : f32 to vector<1x512xf32>
    %54 = arith.divf %52, %53 : vector<1x512xf32>
    %55 = vector.broadcast %54 : vector<1x512xf32> to vector<128x512xf32>
    %56 = arith.subf %50, %55 : vector<128x512xf32>
    %57 = arith.mulf %56, %56 : vector<128x512xf32>
    %cst_28 = arith.constant dense<0.000000e+00> : vector<512xf32>
    %58 = vector.multi_reduction <add>, %57, %cst_28 [0] : vector<128x512xf32> to vector<512xf32>
    %59 = vector.shape_cast %58 : vector<512xf32> to vector<1x512xf32>
    %cst_29 = arith.constant 1.280000e+02 : f32
    %60 = vector.broadcast %cst_29 : f32 to vector<1x512xf32>
    %61 = arith.divf %59, %60 : vector<1x512xf32>
    %cst_30 = arith.constant 9.99999974E-6 : f32
    %62 = vector.broadcast %cst_30 : f32 to vector<1x512xf32>
    %63 = arith.addf %61, %62 : vector<1x512xf32>
    %64 = math.rsqrt %63 : vector<1x512xf32>
    %65 = arith.mulf %64, %3 : vector<1x512xf32>
    %66 = vector.broadcast %54 : vector<1x512xf32> to vector<128x512xf32>
    %67 = arith.subf %50, %66 : vector<128x512xf32>
    %68 = vector.broadcast %65 : vector<1x512xf32> to vector<128x512xf32>
    %69 = arith.mulf %67, %68 : vector<128x512xf32>
    %70 = vector.broadcast %4 : vector<1x512xf32> to vector<128x512xf32>
    %71 = arith.addf %69, %70 : vector<128x512xf32>
    %cst_31 = arith.constant 0.000000e+00 : f32
    %72 = vector.broadcast %cst_31 : f32 to vector<128x512xf32>
    %73 = arith.maximumf %71, %72 : vector<128x512xf32>
    %74 = arith.truncf %73 : vector<128x512xf32> to vector<128x512xbf16>
    %c0_32 = arith.constant 0 : index
    %c0_33 = arith.constant 0 : index
    %75 = vector.load %arg4[%c0_32, %c0_33] : memref<512x1024xbf16, #tpu.memory_space<vmem>>, vector<512x1024xbf16>
    %cst_34 = arith.constant dense<0.000000e+00> : vector<128x1024xf32>
    %76 = tpu.matmul %74, %75, %cst_34 {dimension_numbers = #tpu.dot_dimension_numbers<[1], [0], [0], [1], [0, 0, 1, 1], [], []>} : vector<128x512xbf16>, vector<512x1024xbf16>, vector<128x1024xf32> -> vector<128x1024xf32>
    %77 = vector.shape_cast %76 : vector<128x1024xf32> to vector<2x64x1024xf32>
    %cst_35 = arith.constant dense<0xFF800000> : vector<2x1024xf32>
    %78 = vector.multi_reduction <maximumf>, %77, %cst_35 [1] : vector<2x64x1024xf32> to vector<2x1024xf32>
    %79 = vector.broadcast %5 : vector<1x1024xf32> to vector<2x1024xf32>
    %80 = arith.addf %78, %79 : vector<2x1024xf32>
    %81 = math.tanh %80 : vector<2x1024xf32>
    %c0_36 = arith.constant 0 : index
    %c0_37 = arith.constant 0 : index
    %82 = vector.load %arg6[%c0_36, %c0_37] : memref<2x1024xf32, #tpu.memory_space<vmem>>, vector<2x1024xf32>
    tpu.vector_store %arg6[%c0_36, %c0_37], %81 {strides = array<i32>} : memref<2x1024xf32, #tpu.memory_space<vmem>>, vector<2x1024xf32>,
    return
  }
}

</mosaic_0001>

<bundles_post_ra>
// kernel: tpu_custom_call.1
= control target key start
LH: loop header
LB: loop body
LE: loop exit
PB: predicated region body
PF: predicated region fallthrough
CT: control target
= control target key end

     0   :  { %11 = vsyncpa [#allocation3], 0  ;;  %s8585_s0 = inlined_call_operand.vmem [shape: f32[128,8], index: 0, kind: input, shape index: {}]   ;;  %s8586_s1 = inlined_call_operand.hbm [shape: bf16[8,128], index: 1, kind: input, shape index: {}]   ;;  %s8587_s2 = inlined_call_operand.vmem [shape: bf16[128,256], index: 2, kind: input, shape index: {}]   ;;  %s8588_s3 = inlined_call_operand.hbm [shape: bf16[512,512], index: 3, kind: input, shape index: {}]   ;;  %s8589_s4 = inlined_call_operand.hbm [shape: bf16[512,1024], index: 4, kind: input, shape index: {}]   ;;  %s8590_s5 = inlined_call_operand.vmem [shape: f32[1,2560], index: 5, kind: input, shape index: {}]   ;;  %s8591_s6 = inlined_call_operand.hbm [shape: f32[2,1024], index: 6, kind: output, shape index: {}]  }
   0x1   :  { %12 = vsyncpa [#allocation6], 0 }
   0x2   :  { %13 = vsyncpa [#allocation4], 0  ;;  %s6292_s21 = smov [#allocation5]   ;;  %s6198_s25 = scalar_lea.hbm %s8588_s3, 16384 }
   0x3   :  { %s33_s22 = sshll.u32 %s6292_s21, 4  ;;  %p6199_p0 = scmp.ne.s32.totalorder %s8588_s3, %s6198_s25  ;;  %s34_s22 = int_to_ptr.vmem [resolvable:$true] %s33_s22 }
   0x4   :  { %p6202_p1 = scmp.lt.u32.totalorder %s6198_s25, %s8588_s3 }
   0x6   :  { %p6204_p2 = pnand %p6202_p1, %p6199_p0 }
   0x8   :  { %6207 = shalt.err (!%p6204_p2)
}
   0x9   :  { %s6208_s30 = scalar_lea.vmem %s34_s22, 16384  ;;  %p6213_p4 = scmp.lt.s32.totalorder %s34_s22, %s34_s22 }
   0xa   :  { %p6209_p3 = scmp.ne.s32.totalorder %s34_s22, %s6208_s30  ;;  %p6214_p5 = scmp.lt.s32.totalorder %s6208_s30, %s6208_s30 }
   0xc   :  { %p6215_p6 = por %p6214_p5, %p6213_p4 }
   0xe   :  { %p6216_p7 = pnand %p6215_p6, %p6209_p3 }
  0x10   :  { %6219 = shalt.err (!%p6216_p7)
}
  0x11   :  { %s6293_s7 = smov 256   ;;  %s6294_s8 = smov 16  }
  0x12   :  { %39 = dma.hbm_to_vmem [thread:$0]  %s8588_s3, 16384, %s34_s22, [#allocation6], %s6293_s7, %s6293_s7, %s6294_s8  }
  0x13   :  { %s6295_s11 = smov [#allocation2]   ;;  %s6296_s13 = smov [#allocation7]  }
  0x14   :  { %s22_s12 = sshll.u32 %s6295_s11, 4  ;;  %s45_s14 = sshll.u32 %s6296_s13, 4  ;;  %s23_s12 = int_to_ptr.vmem [resolvable:$true] %s22_s12  ;;  %s46_s14 = int_to_ptr.vmem [resolvable:$true] %s45_s14 }
  0x15   :  { %s6220_s17 = scalar_lea.hbm %s8586_s1, 64 }
  0x16   :  { %p6221_p8 = scmp.ne.s32.totalorder %s8586_s1, %s6220_s17  ;;  %p6224_p9 = scmp.lt.u32.totalorder %s6220_s17, %s8586_s1 }
  0x18   :  { %p6226_p10 = pnand %p6224_p9, %p6221_p8 }
  0x1a   :  { %6229 = shalt.err (!%p6226_p10)
}
  0x1b   :  { %s6230_s3 = scalar_lea.vmem %s23_s12, 64  ;;  %p6235_p12 = scmp.lt.s32.totalorder %s23_s12, %s23_s12 }
  0x1c   :  { %p6231_p11 = scmp.ne.s32.totalorder %s23_s12, %s6230_s3  ;;  %p6236_p13 = scmp.lt.s32.totalorder %s6230_s3, %s6230_s3 }
  0x1e   :  { %p6237_p0 = por %p6236_p13, %p6235_p12 }
  0x20   :  { %p6238_p1 = pnand %p6237_p0, %p6231_p11 }
  0x22   :  { %6241 = shalt.err (!%p6238_p1)
}
  0x23   :  { %25 = dma.hbm_to_vmem [thread:$0]  %s8586_s1, 64, %s23_s12, [#allocation3]  }
  0x24   :  { %s6242_s26 = scalar_lea.hbm %s8589_s4, 32768 }
  0x25   :  { %p6243_p2 = scmp.ne.s32.totalorder %s8589_s4, %s6242_s26  ;;  %p6246_p3 = scmp.lt.u32.totalorder %s6242_s26, %s8589_s4 }
  0x27   :  { %p6248_p4 = pnand %p6246_p3, %p6243_p2 }
  0x29   :  { %6251 = shalt.err (!%p6248_p4)
}
  0x2a   :  { %s6252_s7 = scalar_lea.vmem %s46_s14, 32768  ;;  %p6257_p6 = scmp.lt.s32.totalorder %s46_s14, %s46_s14 }
  0x2b   :  { %p6253_p5 = scmp.ne.s32.totalorder %s46_s14, %s6252_s7  ;;  %p6258_p7 = scmp.lt.s32.totalorder %s6252_s7, %s6252_s7 }
  0x2d   :  { %p6259_p8 = por %p6258_p7, %p6257_p6 }
  0x2f   :  { %p6260_p9 = pnand %p6259_p8, %p6253_p5 }
  0x31   :  { %6263 = shalt.err (!%p6260_p9)
}
  0x32   :  { %s6297_s1 = smov 512   ;;  %s6298_s8 = smov 32  }
  0x33   :  { %51 = dma.hbm_to_vmem [thread:$0]  %s8589_s4, 32768, %s46_s14, [#allocation6], %s6297_s1, %s6297_s1, %s6298_s8  }
  0x34   :  { %6286 = dma.done.wait [#allocation3], 64  }
  0x35   :  { %6287 = vsyncadd [#allocation3], 4294967232 }
  0x36   :  { %6288 = dma.done.wait [#allocation6], 49152  }
  0x37   :  { %6289 = vsyncadd [#allocation6], 4294918144  ;;  %vm120_vm0 = vcmask 1043456   ;;  %v94_v0 = vld [vmem:[#allocation2] sm:$0xf]  ;;  %v70_v1 = vld [vmem:[%s8585_s0] sm:$0xff] }
  0x38   :  { %v71_v2 = vld [vmem:[%s8585_s0 + $0x8] sm:$0xff]  ;;  %vm95_vm1 = vcmask 64512   ;;  %5928 = vmatprep.subr.msk.bf16.mxu0 %vm120_vm0, %v94_v0  ;;  %v122_v3 = vsel %vm120_vm0, %v94_v0, 0  ;;  %v72_v5 = vld [vmem:[%s8585_s0 + $0x10] sm:$0xff]  ;;  %v73_v6 = vld [vmem:[%s8585_s0 + $0x18] sm:$0xff]  ;;  %v6299_v42 = vmov 0  }
  0x39   :  { %v86_v4 = vpack.c.bf16 %v71_v2, %v70_v1  ;;  %v74_v7 = vld [vmem:[%s8585_s0 + $0x20] sm:$0xff]  ;;  %5751 = vmatpush3.bf16.msra.mxu0 %v122_v3  ;;  %v87_v8 = vpack.c.bf16 %v73_v6, %v72_v5  ;;  %v75_v9 = vld [vmem:[%s8585_s0 + $0x28] sm:$0xff]  ;;  %v76_v11 = vld [vmem:[%s8585_s0 + $0x30] sm:$0xff]  ;;  %506 = vmatprep.mubr.bf16.mxu1 %v6299_v42  ;;  %vm1341_vm2 = vcmask 1041409   ;;  %vm5299_vm3 = vcmask 1043459  }
  0x3a   :  { %v88_v10 = vpack.c.bf16 %v75_v9, %v74_v7  ;;  %v77_v12 = vld [vmem:[%s8585_s0 + $0x38] sm:$0xff]  ;;  %v78_v13 = vld [vmem:[%s8585_s0 + $0x40] sm:$0xff]  ;;  %v79_v14 = vld [vmem:[%s8585_s0 + $0x48] sm:$0xff]  ;;  %vm5301_vm4 = vcmask 1045509   ;;  %vm5303_vm5 = vcmask 1047559  }
  0x3b   :  { %5752 = vmatprep.mubr.msk.bf16.mxu0 %vm95_vm1, %v86_v4  ;;  %v89_v15 = vpack.c.bf16 %v77_v12, %v76_v11  ;;  %v90_v16 = vpack.c.bf16 %v79_v14, %v78_v13  ;;  %v80_v17 = vld [vmem:[%s8585_s0 + $0x50] sm:$0xff]  ;;  %v81_v18 = vld [vmem:[%s8585_s0 + $0x58] sm:$0xff]  ;;  %v82_v19 = vld [vmem:[%s8585_s0 + $0x60] sm:$0xff] }
  0x3c   :  { %5753 = vmatmul.mubr.msk.bf16.vlgmr.msra.gmra.mrb[0].mxu0 %vm95_vm1, %v87_v8  ;;  %v83_v20 = vld [vmem:[%s8585_s0 + $0x68] sm:$0xff]  ;;  %v91_v21 = vpack.c.bf16 %v81_v18, %v80_v17  ;;  %v84_v23 = vld [vmem:[%s8585_s0 + $0x70] sm:$0xff]  ;;  %v85_v24 = vld [vmem:[%s8585_s0 + $0x78] sm:$0xff] }
  0x3d   :  { %5756 = vmatprep.mubr.msk.bf16.mxu0 %vm95_vm1, %v88_v10  ;;  %v92_v22 = vpack.c.bf16 %v83_v20, %v82_v19  ;;  %v93_v25 = vpack.c.bf16 %v85_v24, %v84_v23  ;;  %v5940_v26 = vld [vmem:[%s8587_s2 + $0x4] ss:$8 sps:$4 sm:$0xff]   ;;  %v5942_v27 = vld [vmem:[%s8587_s2] ss:$8 sps:$4 sm:$0xff]   ;;  %v5943_v28 = vld [vmem:[%s8587_s2 + $0x14] ss:$8 sps:$4 sm:$0xff]  }
  0x3e   :  { %474 = vmatprep.subr.bf16.mxu1 %v5940_v26  ;;  %v5945_v29 = vld [vmem:[%s8587_s2 + $0x10] ss:$8 sps:$4 sm:$0xff]   ;;  %v5946_v30 = vld [vmem:[%s8587_s2 + $0x24] ss:$8 sps:$4 sm:$0xff]   ;;  %v5948_v31 = vld [vmem:[%s8587_s2 + $0x20] ss:$8 sps:$4 sm:$0xff]  }
  0x3f   :  { %475 = vmatpush1.bf16.msra.mxu1 %v5942_v27  ;;  %v5949_v32 = vld [vmem:[%s8587_s2 + $0x34] ss:$8 sps:$4 sm:$0xff]   ;;  %v5951_v33 = vld [vmem:[%s8587_s2 + $0x30] ss:$8 sps:$4 sm:$0xff]   ;;  %v5952_v34 = vld [vmem:[%s8587_s2 + $0x44] ss:$8 sps:$4 sm:$0xff]  }
  0x40   :  { %476 = vmatprep.subr.bf16.mxu1 %v5943_v28  ;;  %v5954_v35 = vld [vmem:[%s8587_s2 + $0x40] ss:$8 sps:$4 sm:$0xff]   ;;  %v5955_v36 = vld [vmem:[%s8587_s2 + $0x54] ss:$8 sps:$4 sm:$0xff]   ;;  %v5957_v37 = vld [vmem:[%s8587_s2 + $0x50] ss:$8 sps:$4 sm:$0xff]  }
  0x41   :  { %v5958_v38 = vld [vmem:[%s8587_s2 + $0x64] ss:$8 sps:$4 sm:$0xff]   ;;  %v5960_v39 = vld [vmem:[%s8587_s2 + $0x60] ss:$8 sps:$4 sm:$0xff]   ;;  %v5961_v40 = vld [vmem:[%s8587_s2 + $0x74] ss:$8 sps:$4 sm:$0xff]  }
  0x42   :  { %v5963_v41 = vld [vmem:[%s8587_s2 + $0x70] ss:$8 sps:$4 sm:$0xff]  }
  0x43   :  { %477 = vmatpush1.bf16.msra.mxu1 %v5945_v29 }
  0x44   :  { %5757 = vmatmul.mubr.msk.bf16.gmra.mrb[4].mxu0 %vm95_vm1, %v89_v15  ;;  %478 = vmatprep.subr.bf16.mxu1 %v5946_v30 }
  0x45   :  { %5760 = vmatprep.mubr.msk.bf16.mxu0 %vm95_vm1, %v90_v16 }
  0x47   :  { %479 = vmatpush1.bf16.msra.mxu1 %v5948_v31 }
  0x48   :  { %480 = vmatprep.subr.bf16.mxu1 %v5949_v32 }
  0x4b   :  { %481 = vmatpush1.bf16.msra.mxu1 %v5951_v33 }
  0x4c   :  { %5761 = vmatmul.mubr.msk.bf16.gmra.mrb[8].mxu0 %vm95_vm1, %v91_v21  ;;  %482 = vmatprep.subr.bf16.mxu1 %v5952_v34 }
  0x4d   :  { %5764 = vmatprep.mubr.msk.bf16.mxu0 %vm95_vm1, %v92_v22 }
  0x4f   :  { %483 = vmatpush1.bf16.msra.mxu1 %v5954_v35  ;;  %v5964_v35 = vld [vmem:[#allocation5] ss:$16 sps:$4 sm:$0xff]  }
  0x50   :  { %484 = vmatprep.subr.bf16.mxu1 %v5955_v36  ;;  %v5966_v36 = vld [vmem:[#allocation5 + $0x4] ss:$16 sps:$4 sm:$0xff]  }
  0x51   :  { %1039 = vmatprep.subr.bf16.mxu0 %v5966_v36  ;;  %v6020_v36 = vld [vmem:[#allocation5 + $0x124] ss:$16 sps:$4 sm:$0xff]  }
  0x52   :  { %1040 = vmatpush1.bf16.msra.mxu0 %v5964_v35  ;;  %v6012_v35 = vld [vmem:[#allocation5 + $0x100] ss:$16 sps:$4 sm:$0xff]  }
  0x53   :  { %485 = vmatpush1.bf16.msra.mxu1 %v5957_v37  ;;  %v5969_v37 = vld [vmem:[#allocation5 + $0xc] ss:$16 sps:$4 sm:$0xff]  }
  0x54   :  { %5765 = vmatmul.mubr.msk.bf16.gmra.mrb[12].mxu0 %vm95_vm1, %v93_v25  ;;  %486 = vmatprep.subr.bf16.mxu1 %v5958_v38  ;;  %v5972_v38 = vld [vmem:[#allocation5 + $0x24] ss:$16 sps:$4 sm:$0xff]  }
  0x55   :  { %1041 = vmatprep.subr.bf16.mxu0 %v5972_v38 }
  0x57   :  { %487 = vmatpush1.bf16.msra.mxu1 %v5960_v39 }
  0x58   :  { %488 = vmatprep.subr.bf16.mxu1 %v5961_v40 }
  0x5b   :  { %489 = vmatpush1.bf16.msra.mxu1 %v5963_v41  ;;  %v5970_v41 = vld [vmem:[#allocation5 + $0x20] ss:$16 sps:$4 sm:$0xff]  }
  0x5c   :  { %1152 = vmatprep.subr.bf16.mxu1 %v5969_v37  ;;  %1042 = vmatpush1.bf16.msra.mxu0 %v5970_v41 }
 0x10f   :  { %v5754_v43 = vpop.f32.mrb[0].mxu0 }
 0x110   :  { %v158_v44 = vpop.f32.mrb[1].mxu0 }
 0x111   :  { %v5755_v45 = vpop.f32.mrb[2].mxu0 }
 0x112   :  { %v161_v46 = vpop.f32.mrb[3].mxu0 }
 0x113   :  { %v221_v47 = vadd.f32 %v161_v46, %v158_v44 }
 0x115   :  { %v222_v48 = vadd.f32 %v5754_v43, %v221_v47 }
 0x117   :  { %v5758_v49 = vpop.f32.mrb[4].mxu0  ;;  %v223_v50 = vadd.f32 %v5755_v45, %v222_v48  ;;  %v5976_v48 = vld [vmem:[#allocation5 + $0x40] ss:$16 sps:$4 sm:$0xff]  }
 0x118   :  { %v174_v51 = vpop.f32.mrb[5].mxu0 }
 0x119   :  { %v224_v52 = vadd.f32 %v223_v50, %v174_v51  ;;  %v5759_v53 = vpop.f32.mrb[6].mxu0 }
 0x11a   :  { %v177_v54 = vpop.f32.mrb[7].mxu0 }
 0x11b   :  { %v225_v55 = vadd.f32 %v224_v52, %v177_v54 }
 0x11d   :  { %v226_v56 = vadd.f32 %v5758_v49, %v225_v55  ;;  %v5990_v55 = vld [vmem:[#allocation5 + $0x84] ss:$16 sps:$4 sm:$0xff]  }
 0x11f   :  { %v5762_v57 = vpop.f32.mrb[8].mxu0  ;;  %v227_v58 = vadd.f32 %v5759_v53, %v226_v56 }
 0x120   :  { %v190_v59 = vpop.f32.mrb[9].mxu0 }
 0x121   :  { %v228_v60 = vadd.f32 %v227_v58, %v190_v59  ;;  %v5763_v61 = vpop.f32.mrb[10].mxu0 }
 0x122   :  { %v193_v62 = vpop.f32.mrb[11].mxu0 }
 0x123   :  { %v229_v63 = vadd.f32 %v228_v60, %v193_v62  ;;  %v5988_v60 = vld [vmem:[#allocation5 + $0x80] ss:$16 sps:$4 sm:$0xff]  }
 0x125   :  { %v230_v0 = vadd.f32 %v5762_v57, %v229_v63 }
 0x127   :  { %v5766_v1 = vpop.f32.mrb[12].mxu0  ;;  %v231_v2 = vadd.f32 %v5763_v61, %v230_v0 }
 0x128   :  { %v206_v3 = vpop.f32.mrb[13].mxu0 }
 0x129   :  { %v232_v4 = vadd.f32 %v231_v2, %v206_v3  ;;  %v5767_v5 = vpop.f32.mrb[14].mxu0  ;;  %v5994_v2 = vld [vmem:[#allocation5 + $0xa0] ss:$16 sps:$4 sm:$0xff]  }
 0x12a   :  { %v209_v6 = vpop.f32.mrb[15].mxu0 }
 0x12b   :  { %v233_v7 = vadd.f32 %v232_v4, %v209_v6 }
 0x12d   :  { %v234_v8 = vadd.f32 %v5766_v1, %v233_v7 }
 0x12f   :  { %v235_v9 = vadd.f32 %v5767_v5, %v234_v8  ;;  %v6000_v8 = vld [vmem:[#allocation5 + $0xc0] ss:$16 sps:$4 sm:$0xff]  }
 0x131   :  { %v236_v10 = vrot.slane %v235_v9, 4 }
 0x133   :  { %v237_v11 = vadd.f32 %v236_v10, %v235_v9  ;;  %v6008_v9 = vld [vmem:[#allocation5 + $0xe4] ss:$16 sps:$4 sm:$0xff]  }
 0x135   :  { %v238_v12 = vrot.slane %v237_v11, 2 }
 0x137   :  { %v239_v13 = vadd.f32 %v238_v12, %v237_v11 }
 0x139   :  { %v240_v14 = vrot.slane %v239_v13, 1 }
 0x13b   :  { %v241_v15 = vadd.f32 %v240_v14, %v239_v13  ;;  %v6006_v14 = vld [vmem:[#allocation5 + $0xe0] ss:$16 sps:$4 sm:$0xff]  }
 0x13d   :  { %v243_v16 = vmul.f32 0.0078125, %v241_v15  ;;  %v6014_v15 = vld [vmem:[#allocation5 + $0x104] ss:$16 sps:$4 sm:$0xff]  }
 0x13f   :  { %v6479_v17 = vsub.f32 %v158_v44, %v243_v16  ;;  %v6481_v18 = vsub.f32 %v161_v46, %v243_v16  ;;  %v6483_v19 = vsub.f32 %v5754_v43, %v243_v16  ;;  %v6485_v20 = vsub.f32 %v5755_v45, %v243_v16  ;;  %v5978_v43 = vld [vmem:[#allocation5 + $0x44] ss:$16 sps:$4 sm:$0xff]  }
 0x140   :  { %v6487_v21 = vsub.f32 %v174_v51, %v243_v16  ;;  %v6489_v22 = vsub.f32 %v177_v54, %v243_v16  ;;  %v6491_v23 = vsub.f32 %v5758_v49, %v243_v16  ;;  %v6493_v24 = vsub.f32 %v5759_v53, %v243_v16  ;;  %1043 = vmatprep.subr.bf16.mxu0 %v5978_v43  ;;  %v5984_v49 = vld [vmem:[#allocation5 + $0x64] ss:$16 sps:$4 sm:$0xff]   ;;  %v5982_v54 = vld [vmem:[#allocation5 + $0x60] ss:$16 sps:$4 sm:$0xff]  }
 0x141   :  { %v6495_v25 = vsub.f32 %v190_v59, %v243_v16  ;;  %v6497_v26 = vsub.f32 %v193_v62, %v243_v16  ;;  %v6499_v27 = vsub.f32 %v5762_v57, %v243_v16  ;;  %v6501_v28 = vsub.f32 %v5763_v61, %v243_v16  ;;  %1044 = vmatpush1.bf16.msra.mxu0 %v5976_v48  ;;  %v5996_v61 = vld [vmem:[#allocation5 + $0xa4] ss:$16 sps:$4 sm:$0xff]   ;;  %v6030_v48 = vld [vmem:[#allocation5 + $0x160] ss:$16 sps:$4 sm:$0xff]  }
 0x142   :  { %v6503_v29 = vsub.f32 %v206_v3, %v243_v16  ;;  %v6505_v30 = vsub.f32 %v209_v6, %v243_v16  ;;  %v6507_v31 = vsub.f32 %v5766_v1, %v243_v16  ;;  %v6509_v32 = vsub.f32 %v5767_v5, %v243_v16  ;;  %1045 = vmatprep.subr.bf16.mxu0 %v5984_v49  ;;  %v6002_v3 = vld [vmem:[#allocation5 + $0xc4] ss:$16 sps:$4 sm:$0xff]  }
 0x143   :  { %v260_v33 = vmul.f32 %v6479_v17, %v6479_v17  ;;  %v261_v34 = vmul.f32 %v6481_v18, %v6481_v18  ;;  %v262_v39 = vmul.f32 %v6483_v19, %v6483_v19  ;;  %v263_v44 = vmul.f32 %v6485_v20, %v6485_v20  ;;  %v6038_v49 = vld [vmem:[#allocation5 + $0x184] ss:$16 sps:$4 sm:$0xff]  }
 0x144   :  { %v264_v46 = vmul.f32 %v6487_v21, %v6487_v21  ;;  %v265_v50 = vmul.f32 %v6489_v22, %v6489_v22  ;;  %v266_v52 = vmul.f32 %v6491_v23, %v6491_v23  ;;  %v267_v56 = vmul.f32 %v6493_v24, %v6493_v24 }
 0x145   :  { %v276_v40 = vadd.f32 %v261_v34, %v260_v33  ;;  %v268_v58 = vmul.f32 %v6495_v25, %v6495_v25  ;;  %1046 = vmatpush1.bf16.msra.mxu0 %v5982_v54  ;;  %v269_v62 = vmul.f32 %v6497_v26, %v6497_v26  ;;  %v270_v0 = vmul.f32 %v6499_v27, %v6499_v27 }
 0x146   :  { %1047 = vmatprep.subr.bf16.mxu0 %v5990_v55  ;;  %v271_v4 = vmul.f32 %v6501_v28, %v6501_v28  ;;  %v272_v6 = vmul.f32 %v6503_v29, %v6503_v29  ;;  %v273_v10 = vmul.f32 %v6505_v30, %v6505_v30  ;;  %v274_v12 = vmul.f32 %v6507_v31, %v6507_v31  ;;  %v6042_v55 = vld [vmem:[#allocation5 + $0x1a0] ss:$16 sps:$4 sm:$0xff]  }
 0x147   :  { %v277_v45 = vadd.f32 %v276_v40, %v262_v39  ;;  %v275_v16 = vmul.f32 %v6509_v32, %v6509_v32  ;;  %v6018_v39 = vld [vmem:[#allocation5 + $0x120] ss:$16 sps:$4 sm:$0xff]   ;;  %v6026_v40 = vld [vmem:[#allocation5 + $0x144] ss:$16 sps:$4 sm:$0xff]   ;;  %v301_v54 = vlaneseq }
 0x149   :  { %v278_v47 = vadd.f32 %v277_v45, %v263_v44  ;;  %1048 = vmatpush1.bf16.msra.mxu0 %v5988_v60  ;;  %v6024_v44 = vld [vmem:[#allocation5 + $0x140] ss:$16 sps:$4 sm:$0xff]   ;;  %v6032_v45 = vld [vmem:[#allocation5 + $0x164] ss:$16 sps:$4 sm:$0xff]  }
 0x14a   :  { %1049 = vmatprep.subr.bf16.mxu0 %v5996_v61 }
 0x14b   :  { %v279_v51 = vadd.f32 %v278_v47, %v264_v46 }
 0x14d   :  { %v280_v53 = vadd.f32 %v279_v51, %v265_v50  ;;  %1050 = vmatpush1.bf16.msra.mxu0 %v5994_v2 }
 0x14e   :  { %1051 = vmatprep.subr.bf16.mxu0 %v6002_v3 }
 0x14f   :  { %v281_v57 = vadd.f32 %v280_v53, %v266_v52  ;;  %v6036_v52 = vld [vmem:[#allocation5 + $0x180] ss:$16 sps:$4 sm:$0xff]   ;;  %v6044_v53 = vld [vmem:[#allocation5 + $0x1a4] ss:$16 sps:$4 sm:$0xff]  }
 0x151   :  { %v282_v59 = vadd.f32 %v281_v57, %v267_v56  ;;  %1052 = vmatpush1.bf16.msra.mxu0 %v6000_v8  ;;  %v6543_v56 = vshrl.u32 %v301_v54, 7  ;;  %v64_v57 = vld [vmem:[%s8590_s5] sm:$0x1]  ;;  %v5967_v8 = vld [vmem:[#allocation5 + $0x8] ss:$16 sps:$4 sm:$0xff]  }
 0x152   :  { %1053 = vmatprep.subr.bf16.mxu0 %v6008_v9  ;;  %v6003_v54 = vld [vmem:[#allocation5 + $0xc8] ss:$16 sps:$4 sm:$0xff]  }
 0x153   :  { %v283_v63 = vadd.f32 %v282_v59, %v268_v58  ;;  %8724 = vst [vmem:[#allocation12_spill] sm:$0xff] %v6543_v56  ;;  %v6549_v58 = vsub.s32 0, %v6543_v56 }
 0x155   :  { %v284_v1 = vadd.f32 %v283_v63, %v269_v62  ;;  %1054 = vmatpush1.bf16.msra.mxu0 %v6006_v14  ;;  %8725 = vst [vmem:[#allocation13_spill] sm:$0xff] %v6549_v58  ;;  %v6557_v62 = vld [vmem:[%s8590_s5 + $0x1] ss:$0 sm:$0xff] }
 0x156   :  { %1055 = vmatprep.subr.bf16.mxu0 %v6014_v15 }
 0x157   :  { %v285_v5 = vadd.f32 %v284_v1, %v270_v0 }
 0x159   :  { %v286_v7 = vadd.f32 %v285_v5, %v271_v4  ;;  %1056 = vmatpush1.bf16.msra.mxu0 %v6012_v35 }
 0x15a   :  { %1057 = vmatprep.subr.bf16.mxu0 %v6020_v36 }
 0x15b   :  { %v287_v11 = vadd.f32 %v286_v7, %v272_v6 }
 0x15d   :  { %v288_v13 = vadd.f32 %v287_v11, %v273_v10  ;;  %1058 = vmatpush1.bf16.msra.mxu0 %v6018_v39  ;;  %v5975_v10 = vld [vmem:[#allocation5 + $0x2c] ss:$16 sps:$4 sm:$0xff]  }
 0x15e   :  { %1059 = vmatprep.subr.bf16.mxu0 %v6026_v40 }
 0x15f   :  { %v289_v33 = vadd.f32 %v288_v13, %v274_v12  ;;  %v5973_v12 = vld [vmem:[#allocation5 + $0x28] ss:$16 sps:$4 sm:$0xff]  }
 0x161   :  { %v290_v34 = vadd.f32 %v289_v33, %v275_v16  ;;  %1060 = vmatpush1.bf16.msra.mxu0 %v6024_v44  ;;  %v5981_v33 = vld [vmem:[#allocation5 + $0x4c] ss:$16 sps:$4 sm:$0xff]  }
 0x162   :  { %1061 = vmatprep.subr.bf16.mxu0 %v6032_v45  ;;  %v5993_v44 = vld [vmem:[#allocation5 + $0x8c] ss:$16 sps:$4 sm:$0xff]   ;;  %v5991_v45 = vld [vmem:[#allocation5 + $0x88] ss:$16 sps:$4 sm:$0xff]  }
 0x163   :  { %v291_v37 = vrot.slane %v290_v34, 4 }
 0x165   :  { %v292_v38 = vadd.f32 %v291_v37, %v290_v34  ;;  %1062 = vmatpush1.bf16.msra.mxu0 %v6030_v48 }
 0x166   :  { %1063 = vmatprep.subr.bf16.mxu0 %v6038_v49  ;;  %v5999_v49 = vld [vmem:[#allocation5 + $0xac] ss:$16 sps:$4 sm:$0xff]  }
 0x167   :  { %v293_v41 = vrot.slane %v292_v38, 2 }
 0x169   :  { %v294_v43 = vadd.f32 %v293_v41, %v292_v38  ;;  %1064 = vmatpush1.bf16.msra.mxu0 %v6036_v52  ;;  %v5985_v38 = vld [vmem:[#allocation5 + $0x68] ss:$16 sps:$4 sm:$0xff]  }
 0x16a   :  { %1065 = vmatprep.subr.bf16.mxu0 %v6044_v53  ;;  %v6005_v53 = vld [vmem:[#allocation5 + $0xcc] ss:$16 sps:$4 sm:$0xff]  }
 0x16b   :  { %v295_v46 = vrot.slane %v294_v43, 1 }
 0x16d   :  { %v296_v47 = vadd.f32 %v295_v46, %v294_v43  ;;  %1066 = vmatpush1.bf16.msra.mxu0 %v6042_v55 }
 0x16f   :  { %v297_v50 = vmul.f32 0.0078125, %v296_v47 }
 0x171   :  { %v298_v51 = vadd.f32 1e-05, %v297_v50  ;;  %v5997_v50 = vld [vmem:[#allocation5 + $0xa8] ss:$16 sps:$4 sm:$0xff]  }
 0x173   :  { %6156 = vrsqrt.f32 %v298_v51 }
 0x17d   :  { %v6157_v59 = vpop.eup %6156 }
 0x17e   :  { %v300_v60 = vmul.f32 %v6157_v59, %v64_v57 }
 0x180   :  { %v6552_v61 = vrot.slane %v300_v60, %v6549_v58  ;;  %v6011_v60 = vld [vmem:[#allocation5 + $0xec] ss:$16 sps:$4 sm:$0xff]  }
 0x182   :  { %v318_v63 = vmul.f32 %v6552_v61, %v6505_v30  ;;  %v305_v0 = vmul.f32 %v6552_v61, %v6479_v17  ;;  %v306_v1 = vmul.f32 %v6552_v61, %v6481_v18  ;;  %v307_v4 = vmul.f32 %v6552_v61, %v6483_v19 }
 0x183   :  { %v308_v5 = vmul.f32 %v6552_v61, %v6485_v20  ;;  %v317_v11 = vmul.f32 %v6552_v61, %v6503_v29  ;;  %v309_v19 = vmul.f32 %v6552_v61, %v6487_v21  ;;  %v310_v20 = vmul.f32 %v6552_v61, %v6489_v22  ;;  %v5979_v29 = vld [vmem:[#allocation5 + $0x48] ss:$16 sps:$4 sm:$0xff]   ;;  %v5987_v22 = vld [vmem:[#allocation5 + $0x6c] ss:$16 sps:$4 sm:$0xff]  }
 0x184   :  { %v327_v2 = vadd.f32 %v6557_v62, %v305_v0  ;;  %v328_v3 = vadd.f32 %v6557_v62, %v306_v1  ;;  %v340_v30 = vadd.f32 %v6557_v62, %v318_v63  ;;  %v329_v17 = vadd.f32 %v6557_v62, %v307_v4  ;;  %v6009_v63 = vld [vmem:[#allocation5 + $0xe8] ss:$16 sps:$4 sm:$0xff]  }
 0x185   :  { %v330_v18 = vadd.f32 %v6557_v62, %v308_v5  ;;  %v339_v15 = vadd.f32 %v6557_v62, %v317_v11  ;;  %v331_v36 = vadd.f32 %v6557_v62, %v309_v19  ;;  %v332_v21 = vadd.f32 %v6557_v62, %v310_v20  ;;  %v6041_v20 = vld [vmem:[#allocation5 + $0x18c] ss:$16 sps:$4 sm:$0xff]  }
 0x186   :  { %v343_v6 = vmax.f32 %v327_v2, 0.0  ;;  %v344_v7 = vmax.f32 %v328_v3, 0.0  ;;  %v345_v13 = vmax.f32 %v329_v17, 0.0  ;;  %v356_v16 = vmax.f32 %v340_v30, 0.0  ;;  %v6017_v2 = vld [vmem:[#allocation5 + $0x10c] ss:$16 sps:$4 sm:$0xff]  }
 0x187   :  { %v346_v14 = vmax.f32 %v330_v18, 0.0  ;;  %v355_v34 = vmax.f32 %v339_v15, 0.0  ;;  %v347_v39 = vmax.f32 %v331_v36, 0.0  ;;  %v348_v40 = vmax.f32 %v332_v21, 0.0  ;;  %v6015_v3 = vld [vmem:[#allocation5 + $0x108] ss:$16 sps:$4 sm:$0xff]  }
 0x188   :  { %v359_v9 = vpack.c.bf16 %v344_v7, %v343_v6  ;;  %v311_v41 = vmul.f32 %v6552_v61, %v6491_v23  ;;  %v312_v43 = vmul.f32 %v6552_v61, %v6493_v24  ;;  %v313_v24 = vmul.f32 %v6552_v61, %v6495_v25  ;;  %v6023_v7 = vld [vmem:[#allocation5 + $0x12c] ss:$16 sps:$4 sm:$0xff]   ;;  %v6056_v36 = vld [vmem:[#allocation5 + $0x1e4] ss:$16 sps:$4 sm:$0xff]   ;;  %v6057_v21 = vld [vmem:[#allocation5 + $0x1e8] ss:$16 sps:$4 sm:$0xff]  }
 0x189   :  { %v360_v35 = vpack.c.bf16 %v346_v14, %v345_v13  ;;  %v6584_v37 = vpack.c.bf16 %v356_v16, %v355_v34  ;;  %v361_v46 = vpack.c.bf16 %v348_v40, %v347_v39  ;;  %v314_v52 = vmul.f32 %v6552_v61, %v6497_v26  ;;  %v6035_v18 = vld [vmem:[#allocation5 + $0x16c] ss:$16 sps:$4 sm:$0xff]   ;;  %v6045_v16 = vld [vmem:[#allocation5 + $0x1a8] ss:$16 sps:$4 sm:$0xff]   ;;  %v6050_v34 = vld [vmem:[#allocation5 + $0x1c4] ss:$16 sps:$4 sm:$0xff]  }
 0x18a   :  { %507 = vmatmul.mubr.bf16.vlgmr.msra.gmra.mrb[0].mxu1 %v359_v9  ;;  %v333_v47 = vadd.f32 %v6557_v62, %v311_v41  ;;  %v334_v48 = vadd.f32 %v6557_v62, %v312_v43  ;;  %v335_v57 = vadd.f32 %v6557_v62, %v313_v24  ;;  %v315_v26 = vmul.f32 %v6552_v61, %v6499_v27  ;;  %v6027_v9 = vld [vmem:[#allocation5 + $0x148] ss:$16 sps:$4 sm:$0xff]   ;;  %v6047_v15 = vld [vmem:[#allocation5 + $0x1ac] ss:$16 sps:$4 sm:$0xff]  }
 0x18b   :  { %516 = vmatprep.mubr.bf16.mxu1 %v6299_v42  ;;  %1153 = vmatpush1.bf16.msra.mxu1 %v5967_v8  ;;  %v336_v59 = vadd.f32 %v6557_v62, %v314_v52  ;;  %v316_v1 = vmul.f32 %v6552_v61, %v6501_v28  ;;  %v6021_v8 = vld [vmem:[#allocation5 + $0x128] ss:$16 sps:$4 sm:$0xff]   ;;  %v6029_v28 = vld [vmem:[#allocation5 + $0x14c] ss:$16 sps:$4 sm:$0xff]   ;;  %v319_v11 = vmul.f32 %v6552_v61, %v6507_v31  ;;  %v6621_v39 = vsub.s32 1, %v6543_v56 }
 0x18c   :  { %1154 = vmatprep.subr.bf16.mxu1 %v5975_v10  ;;  %v349_v23 = vmax.f32 %v333_v47, 0.0  ;;  %v350_v51 = vmax.f32 %v334_v48, 0.0  ;;  %v351_v25 = vmax.f32 %v335_v57, 0.0  ;;  %v337_v5 = vadd.f32 %v6557_v62, %v315_v26  ;;  %v6033_v10 = vld [vmem:[#allocation5 + $0x168] ss:$16 sps:$4 sm:$0xff]   ;;  %1067 = vmatprep.subr.bf16.mxu0 %v6050_v34 }
 0x18d   :  { %v352_v0 = vmax.f32 %v336_v59, 0.0  ;;  %v338_v6 = vadd.f32 %v6557_v62, %v316_v1  ;;  %v320_v19 = vmul.f32 %v6552_v61, %v6509_v32  ;;  %v341_v13 = vadd.f32 %v6557_v62, %v319_v11  ;;  %v6048_v61 = vld [vmem:[#allocation5 + $0x1c0] ss:$16 sps:$4 sm:$0xff]   ;;  %8726 = vst [vmem:[#allocation14_spill] sm:$0xff] %v6621_v39  ;;  %v6071_v57 = vld [vmem:[#allocation5 + $0x22c] ss:$16 sps:$4 sm:$0xff]  }
 0x18e   :  { %v362_v55 = vpack.c.bf16 %v350_v51, %v349_v23  ;;  %v353_v27 = vmax.f32 %v337_v5, 0.0  ;;  %1068 = vmatpush1.bf16.msra.mxu0 %v6048_v61  ;;  %v6066_v26 = vld [vmem:[#allocation5 + $0x220] ss:$16 sps:$4 sm:$0xff]   ;;  %v6069_v1 = vld [vmem:[#allocation5 + $0x228] ss:$16 sps:$4 sm:$0xff]  }
 0x18f   :  { %1155 = vmatpush1.bf16.msra.mxu1 %v5973_v12  ;;  %v363_v4 = vpack.c.bf16 %v352_v0, %v351_v25  ;;  %v354_v30 = vmax.f32 %v338_v6, 0.0  ;;  %v6039_v12 = vld [vmem:[#allocation5 + $0x188] ss:$16 sps:$4 sm:$0xff]   ;;  %v342_v14 = vadd.f32 %v6557_v62, %v320_v19  ;;  %v357_v31 = vmax.f32 %v341_v13, 0.0  ;;  %v6054_v62 = vld [vmem:[#allocation5 + $0x1e0] ss:$16 sps:$4 sm:$0xff]   ;;  %1069 = vmatprep.subr.bf16.mxu0 %v6056_v36 }
 0x190   :  { %1156 = vmatprep.subr.bf16.mxu1 %v5981_v33  ;;  %v6074_v5 = vld [vmem:[#allocation5 + $0x244] ss:$16 sps:$4 sm:$0xff]   ;;  %v6077_v6 = vld [vmem:[#allocation5 + $0x24c] ss:$16 sps:$4 sm:$0xff]  }
 0x191   :  { %v364_v17 = vpack.c.bf16 %v354_v30, %v353_v27  ;;  %v358_v33 = vmax.f32 %v342_v14, 0.0  ;;  %v6083_v11 = vld [vmem:[#allocation5 + $0x26c] ss:$16 sps:$4 sm:$0xff]   ;;  %v6086_v61 = vld [vmem:[#allocation5 + $0x284] ss:$16 sps:$4 sm:$0xff]  }
 0x192   :  { %517 = vmatmul.mubr.bf16.gmra.mrb[4].mxu1 %v360_v35  ;;  %v6053_v35 = vld [vmem:[#allocation5 + $0x1cc] ss:$16 sps:$4 sm:$0xff]   ;;  %1070 = vmatpush1.bf16.msra.mxu0 %v6054_v62 }
 0x193   :  { %526 = vmatprep.mubr.bf16.mxu1 %v6299_v42  ;;  %1157 = vmatpush1.bf16.msra.mxu1 %v5979_v29  ;;  %v366_v32 = vpack.c.bf16 %v358_v33, %v357_v31  ;;  %v6051_v29 = vld [vmem:[#allocation5 + $0x1c8] ss:$16 sps:$4 sm:$0xff]   ;;  %v6089_v34 = vld [vmem:[#allocation5 + $0x28c] ss:$16 sps:$4 sm:$0xff]  }
 0x194   :  { %1158 = vmatprep.subr.bf16.mxu1 %v5987_v22  ;;  %v6065_v22 = vld [vmem:[#allocation5 + $0x20c] ss:$16 sps:$4 sm:$0xff]  }
 0x197   :  { %1159 = vmatpush1.bf16.msra.mxu1 %v5985_v38  ;;  %v66_v38 = vld [vmem:[%s8590_s5 + $0x2] sm:$0x3] }
 0x198   :  { %1160 = vmatprep.subr.bf16.mxu1 %v5993_v44  ;;  %v6624_v40 = vrot.slane %v66_v38, %v6549_v58  ;;  %v6627_v43 = vrot.slane %v66_v38, %v6621_v39  ;;  %v6092_v38 = vld [vmem:[#allocation5 + $0x2a4] ss:$16 sps:$4 sm:$0xff]  }
 0x19a   :  { %527 = vmatmul.mubr.bf16.gmra.mrb[8].mxu1 %v361_v46 }
 0x19b   :  { %536 = vmatprep.mubr.bf16.mxu1 %v6299_v42  ;;  %1161 = vmatpush1.bf16.msra.mxu1 %v5991_v45 }
 0x19c   :  { %1162 = vmatprep.subr.bf16.mxu1 %v5999_v49 }
 0x19f   :  { %1163 = vmatpush1.bf16.msra.mxu1 %v5997_v50 }
 0x1a0   :  { %1164 = vmatprep.subr.bf16.mxu1 %v6005_v53  ;;  %v6060_v53 = vld [vmem:[#allocation5 + $0x200] ss:$16 sps:$4 sm:$0xff]  }
 0x1a2   :  { %537 = vmatmul.mubr.bf16.gmra.mrb[12].mxu1 %v362_v55  ;;  %v6068_v55 = vld [vmem:[#allocation5 + $0x224] ss:$16 sps:$4 sm:$0xff]  }
 0x1a3   :  { %546 = vmatprep.mubr.bf16.mxu1 %v6299_v42  ;;  %1165 = vmatpush1.bf16.msra.mxu1 %v6003_v54  ;;  %v6063_v54 = vld [vmem:[#allocation5 + $0x208] ss:$16 sps:$4 sm:$0xff]  }
 0x1a4   :  { %1166 = vmatprep.subr.bf16.mxu1 %v6011_v60 }
 0x1a7   :  { %1167 = vmatpush1.bf16.msra.mxu1 %v6009_v63 }
 0x1a8   :  { %1168 = vmatprep.subr.bf16.mxu1 %v6017_v2 }
 0x1aa   :  { %547 = vmatmul.mubr.bf16.gmra.mrb[16].mxu1 %v363_v4 }
 0x1ab   :  { %556 = vmatprep.mubr.bf16.mxu1 %v6299_v42  ;;  %1169 = vmatpush1.bf16.msra.mxu1 %v6015_v3 }
 0x1ac   :  { %1170 = vmatprep.subr.bf16.mxu1 %v6023_v7 }
 0x1af   :  { %1171 = vmatpush1.bf16.msra.mxu1 %v6021_v8 }
 0x1b0   :  { %1172 = vmatprep.subr.bf16.mxu1 %v6029_v28 }
 0x1b2   :  { %557 = vmatmul.mubr.bf16.gmra.mrb[20].mxu1 %v364_v17  ;;  %v6072_v17 = vld [vmem:[#allocation5 + $0x240] ss:$16 sps:$4 sm:$0xff]  }
 0x1b3   :  { %566 = vmatprep.mubr.bf16.mxu1 %v6299_v42  ;;  %1173 = vmatpush1.bf16.msra.mxu1 %v6027_v9 }
 0x1b4   :  { %1174 = vmatprep.subr.bf16.mxu1 %v6035_v18  ;;  %v6075_v18 = vld [vmem:[#allocation5 + $0x248] ss:$16 sps:$4 sm:$0xff]  }
 0x1b7   :  { %1175 = vmatpush1.bf16.msra.mxu1 %v6033_v10  ;;  %v6080_v10 = vld [vmem:[#allocation5 + $0x264] ss:$16 sps:$4 sm:$0xff]  }
 0x1b8   :  { %1176 = vmatprep.subr.bf16.mxu1 %v6041_v20 }
 0x1ba   :  { %567 = vmatmul.mubr.bf16.gmra.mrb[24].mxu1 %v6584_v37  ;;  %v6062_v37 = vld [vmem:[#allocation5 + $0x204] ss:$16 sps:$4 sm:$0xff]  }
 0x1bb   :  { %576 = vmatprep.mubr.bf16.mxu1 %v6299_v42  ;;  %1177 = vmatpush1.bf16.msra.mxu1 %v6039_v12  ;;  %v6059_v42 = vld [vmem:[#allocation5 + $0x1ec] ss:$16 sps:$4 sm:$0xff]  }
 0x1bc   :  { %1178 = vmatprep.subr.bf16.mxu1 %v6047_v15  ;;  %1668 = vmatprep.subr.bf16.mxu0 %v6062_v37  ;;  %v6078_v15 = vld [vmem:[#allocation5 + $0x260] ss:$16 sps:$4 sm:$0xff]  }
 0x1bd   :  { %v6084_v37 = vld [vmem:[#allocation5 + $0x280] ss:$16 sps:$4 sm:$0xff]  }
 0x1bf   :  { %1179 = vmatpush1.bf16.msra.mxu1 %v6045_v16  ;;  %v6081_v16 = vld [vmem:[#allocation5 + $0x268] ss:$16 sps:$4 sm:$0xff]  }
 0x1c0   :  { %1180 = vmatprep.subr.bf16.mxu1 %v6053_v35 }
 0x1c2   :  { %577 = vmatmul.mubr.bf16.gmra.mrb[28].mxu1 %v366_v32 }
 0x1c3   :  { %1181 = vmatpush1.bf16.msra.mxu1 %v6051_v29 }
 0x1c4   :  { %1182 = vmatprep.subr.bf16.mxu1 %v6059_v42 }
 0x1c7   :  { %1183 = vmatpush1.bf16.msra.mxu1 %v6057_v21 }
 0x1c8   :  { %1709 = vmatprep.subr.bf16.mxu1 %v6065_v22  ;;  %v6087_v22 = vld [vmem:[#allocation5 + $0x288] ss:$16 sps:$4 sm:$0xff]  }
 0x25d   :  { %v508_v41 = vpop.f32.mrb[0].mxu1 }
 0x25e   :  { %v510_v44 = vpop.f32.mrb[1].mxu1  ;;  %v509_v46 = vadd.f32 %v508_v41, %v6624_v40  ;;  %v6095_v41 = vld [vmem:[#allocation5 + $0x2ac] ss:$16 sps:$4 sm:$0xff]  }
 0x25f   :  { %v512_v45 = vpop.f32.mrb[2].mxu1  ;;  %v511_v49 = vadd.f32 %v510_v44, %v6627_v43 }
 0x260   :  { %v513_v47 = vadd.f32 %v512_v45, %v6624_v40  ;;  %v514_v48 = vpop.f32.mrb[3].mxu1 }
 0x261   :  { %v515_v50 = vadd.f32 %v514_v48, %v6627_v43 }
 0x262   :  { %v587_v23 = vmax.f32 %v509_v46, %v513_v47  ;;  %v639_v51 = vpack.c.bf16 %v513_v47, %v509_v46 }
 0x263   :  { %v600_v24 = vmax.f32 %v511_v49, %v515_v50  ;;  %v640_v52 = vpack.c.bf16 %v515_v50, %v511_v49  ;;  %v6090_v49 = vld [vmem:[#allocation5 + $0x2a0] ss:$16 sps:$4 sm:$0xff]   ;;  %v6093_v50 = vld [vmem:[#allocation5 + $0x2a8] ss:$16 sps:$4 sm:$0xff]  }
 0x265   :  { %v518_v59 = vpop.f32.mrb[4].mxu1  ;;  %1071 = vmatprep.mubr.bf16.mxu0 %v640_v52  ;;  %1184 = vmatprep.mubr.bf16.mxu1 %v640_v52  ;;  %v6098_v52 = vld [vmem:[#allocation5 + $0x2c4] ss:$16 sps:$4 sm:$0xff]  }
 0x266   :  { %v519_v60 = vadd.f32 %v518_v59, %v6624_v40  ;;  %v520_v63 = vpop.f32.mrb[5].mxu1  ;;  %1072 = vmatmul.mubr.bf16.vlgmr.msra.gmra.mrb[16].mxu0 %v639_v51  ;;  %1185 = vmatmul.mubr.bf16.vlgmr.msra.gmra.mrb[32].mxu1 %v639_v51 }
 0x267   :  { %v521_v25 = vadd.f32 %v520_v63, %v6627_v43  ;;  %v522_v0 = vpop.f32.mrb[6].mxu1  ;;  %1669 = vmatpush1.bf16.msra.mxu0 %v6060_v53  ;;  %1710 = vmatpush1.bf16.msra.mxu1 %v6063_v54  ;;  %v6101_v53 = vld [vmem:[#allocation5 + $0x2cc] ss:$16 sps:$4 sm:$0xff]  }
 0x268   :  { %v588_v2 = vmax.f32 %v587_v23, %v519_v60  ;;  %v523_v3 = vadd.f32 %v522_v0, %v6624_v40  ;;  %v524_v4 = vpop.f32.mrb[7].mxu1  ;;  %1670 = vmatprep.subr.bf16.mxu0 %v6068_v55  ;;  %1711 = vmatprep.subr.bf16.mxu1 %v6071_v57  ;;  %v6099_v0 = vld [vmem:[#allocation5 + $0x2c8] ss:$16 sps:$4 sm:$0xff]  }
 0x269   :  { %v601_v7 = vmax.f32 %v600_v24, %v521_v25  ;;  %v525_v8 = vadd.f32 %v524_v4, %v6627_v43 }
 0x26a   :  { %v589_v27 = vmax.f32 %v588_v2, %v523_v3  ;;  %v641_v30 = vpack.c.bf16 %v523_v3, %v519_v60 }
 0x26b   :  { %v602_v28 = vmax.f32 %v601_v7, %v525_v8  ;;  %v642_v9 = vpack.c.bf16 %v525_v8, %v521_v25  ;;  %1671 = vmatpush1.bf16.msra.mxu0 %v6066_v26  ;;  %1712 = vmatpush1.bf16.msra.mxu1 %v6069_v1  ;;  %v6096_v25 = vld [vmem:[#allocation5 + $0x2c0] ss:$16 sps:$4 sm:$0xff]   ;;  %v6104_v26 = vld [vmem:[#allocation5 + $0x2e4] ss:$16 sps:$4 sm:$0xff]   ;;  %v6107_v1 = vld [vmem:[#allocation5 + $0x2ec] ss:$16 sps:$4 sm:$0xff]  }
 0x26c   :  { %1672 = vmatprep.subr.bf16.mxu0 %v6074_v5  ;;  %1713 = vmatprep.subr.bf16.mxu1 %v6077_v6  ;;  %v6102_v5 = vld [vmem:[#allocation5 + $0x2e0] ss:$16 sps:$4 sm:$0xff]   ;;  %v6105_v6 = vld [vmem:[#allocation5 + $0x2e8] ss:$16 sps:$4 sm:$0xff]  }
 0x26d   :  { %v528_v19 = vpop.f32.mrb[8].mxu1  ;;  %1081 = vmatprep.mubr.bf16.mxu0 %v642_v9  ;;  %1194 = vmatprep.mubr.bf16.mxu1 %v642_v9 }
 0x26e   :  { %v529_v20 = vadd.f32 %v528_v19, %v6624_v40  ;;  %v530_v12 = vpop.f32.mrb[9].mxu1  ;;  %1082 = vmatmul.mubr.bf16.gmra.mrb[20].mxu0 %v641_v30  ;;  %1195 = vmatmul.mubr.bf16.gmra.mrb[36].mxu1 %v641_v30  ;;  %v6110_v30 = vld [vmem:[#allocation5 + $0x304] ss:$16 sps:$4 sm:$0xff]  }
 0x26f   :  { %v531_v13 = vadd.f32 %v530_v12, %v6627_v43  ;;  %v532_v14 = vpop.f32.mrb[10].mxu1  ;;  %1673 = vmatpush1.bf16.msra.mxu0 %v6072_v17  ;;  %1714 = vmatpush1.bf16.msra.mxu1 %v6075_v18  ;;  %v6111_v12 = vld [vmem:[#allocation5 + $0x308] ss:$16 sps:$4 sm:$0xff]  }
 0x270   :  { %v590_v31 = vmax.f32 %v589_v27, %v529_v20  ;;  %v533_v33 = vadd.f32 %v532_v14, %v6624_v40  ;;  %v534_v32 = vpop.f32.mrb[11].mxu1  ;;  %1674 = vmatprep.subr.bf16.mxu0 %v6080_v10  ;;  %1715 = vmatprep.subr.bf16.mxu1 %v6083_v11  ;;  %v6119_v14 = vld [vmem:[#allocation5 + $0x32c] ss:$16 sps:$4 sm:$0xff]  }
 0x271   :  { %v603_v29 = vmax.f32 %v602_v28, %v531_v13  ;;  %v535_v35 = vadd.f32 %v534_v32, %v6627_v43  ;;  %v6113_v28 = vld [vmem:[#allocation5 + $0x30c] ss:$16 sps:$4 sm:$0xff]  }
 0x272   :  { %v591_v62 = vmax.f32 %v590_v31, %v533_v33  ;;  %v643_v36 = vpack.c.bf16 %v533_v33, %v529_v20  ;;  %v6108_v20 = vld [vmem:[#allocation5 + $0x300] ss:$16 sps:$4 sm:$0xff]  }
 0x273   :  { %v604_v21 = vmax.f32 %v603_v29, %v535_v35  ;;  %v644_v42 = vpack.c.bf16 %v535_v35, %v531_v13  ;;  %1675 = vmatpush1.bf16.msra.mxu0 %v6078_v15  ;;  %1716 = vmatpush1.bf16.msra.mxu1 %v6081_v16  ;;  %v6116_v13 = vld [vmem:[#allocation5 + $0x324] ss:$16 sps:$4 sm:$0xff]  }
 0x274   :  { %1676 = vmatprep.subr.bf16.mxu0 %v6086_v61  ;;  %1717 = vmatprep.subr.bf16.mxu1 %v6089_v34  ;;  %v6114_v61 = vld [vmem:[#allocation5 + $0x320] ss:$16 sps:$4 sm:$0xff]   ;;  %v6117_v34 = vld [vmem:[#allocation5 + $0x328] ss:$16 sps:$4 sm:$0xff]  }
 0x275   :  { %v538_v44 = vpop.f32.mrb[12].mxu1  ;;  %1091 = vmatprep.mubr.bf16.mxu0 %v644_v42  ;;  %1204 = vmatprep.mubr.bf16.mxu1 %v644_v42 }
 0x276   :  { %v539_v45 = vadd.f32 %v538_v44, %v6624_v40  ;;  %v540_v46 = vpop.f32.mrb[13].mxu1  ;;  %1092 = vmatmul.mubr.bf16.gmra.mrb[24].mxu0 %v643_v36  ;;  %1205 = vmatmul.mubr.bf16.gmra.mrb[40].mxu1 %v643_v36  ;;  %v6122_v36 = vld [vmem:[#allocation5 + $0x344] ss:$16 sps:$4 sm:$0xff]  }
 0x277   :  { %v541_v47 = vadd.f32 %v540_v46, %v6627_v43  ;;  %v542_v48 = vpop.f32.mrb[14].mxu1  ;;  %1677 = vmatpush1.bf16.msra.mxu0 %v6084_v37  ;;  %1718 = vmatpush1.bf16.msra.mxu1 %v6087_v22  ;;  %v6123_v46 = vld [vmem:[#allocation5 + $0x348] ss:$16 sps:$4 sm:$0xff]  }
 0x278   :  { %v592_v23 = vmax.f32 %v591_v62, %v539_v45  ;;  %v543_v51 = vadd.f32 %v542_v48, %v6624_v40  ;;  %v544_v24 = vpop.f32.mrb[15].mxu1  ;;  %1678 = vmatprep.subr.bf16.mxu0 %v6092_v38  ;;  %1719 = vmatprep.subr.bf16.mxu1 %v6095_v41  ;;  %v6131_v48 = vld [vmem:[#allocation5 + $0x36c] ss:$16 sps:$4 sm:$0xff]  }
 0x279   :  { %v605_v54 = vmax.f32 %v604_v21, %v541_v47  ;;  %v545_v55 = vadd.f32 %v544_v24, %v6627_v43  ;;  %v6125_v21 = vld [vmem:[#allocation5 + $0x34c] ss:$16 sps:$4 sm:$0xff]  }
 0x27a   :  { %v6645_v57 = vmax.f32 %v592_v23, %v543_v51  ;;  %v645_v59 = vpack.c.bf16 %v543_v51, %v539_v45  ;;  %v6120_v45 = vld [vmem:[#allocation5 + $0x340] ss:$16 sps:$4 sm:$0xff]  }
 0x27b   :  { %v6647_v60 = vmax.f32 %v605_v54, %v545_v55  ;;  %v646_v63 = vpack.c.bf16 %v545_v55, %v541_v47  ;;  %1679 = vmatpush1.bf16.msra.mxu0 %v6090_v49  ;;  %1720 = vmatpush1.bf16.msra.mxu1 %v6093_v50  ;;  %v6128_v47 = vld [vmem:[#allocation5 + $0x364] ss:$16 sps:$4 sm:$0xff]   ;;  %v6126_v54 = vld [vmem:[#allocation5 + $0x360] ss:$16 sps:$4 sm:$0xff]   ;;  %v6129_v55 = vld [vmem:[#allocation5 + $0x368] ss:$16 sps:$4 sm:$0xff]  }
 0x27c   :  { %1680 = vmatprep.subr.bf16.mxu0 %v6098_v52  ;;  %1721 = vmatprep.subr.bf16.mxu1 %v6101_v53  ;;  %v594_v50 = vrot.slane %v6645_v57, 4 }
 0x27d   :  { %v548_v2 = vpop.f32.mrb[16].mxu1  ;;  %1101 = vmatprep.mubr.bf16.mxu0 %v646_v63  ;;  %1214 = vmatprep.mubr.bf16.mxu1 %v646_v63  ;;  %v607_v24 = vrot.slane %v6647_v60, 4 }
 0x27e   :  { %v550_v3 = vpop.f32.mrb[17].mxu1  ;;  %1102 = vmatmul.mubr.bf16.gmra.mrb[28].mxu0 %v645_v59  ;;  %1215 = vmatmul.mubr.bf16.gmra.mrb[44].mxu1 %v645_v59  ;;  %v549_v7 = vadd.f32 %v548_v2, %v6624_v40 }
 0x27f   :  { %v552_v4 = vpop.f32.mrb[18].mxu1  ;;  %1681 = vmatpush1.bf16.msra.mxu0 %v6096_v25  ;;  %1722 = vmatpush1.bf16.msra.mxu1 %v6099_v0  ;;  %v551_v9 = vadd.f32 %v550_v3, %v6627_v43  ;;  %v6134_v0 = vld [vmem:[#allocation5 + $0x384] ss:$16 sps:$4 sm:$0xff]   ;;  %v595_v3 = vmax.f32 %v6645_v57, %v594_v50 }
 0x280   :  { %v553_v8 = vadd.f32 %v552_v4, %v6624_v40  ;;  %v554_v27 = vpop.f32.mrb[19].mxu1  ;;  %1682 = vmatprep.subr.bf16.mxu0 %v6104_v26  ;;  %1723 = vmatprep.subr.bf16.mxu1 %v6107_v1  ;;  %v6137_v26 = vld [vmem:[#allocation5 + $0x38c] ss:$16 sps:$4 sm:$0xff]  }
 0x281   :  { %v555_v17 = vadd.f32 %v554_v27, %v6627_v43  ;;  %v6132_v27 = vld [vmem:[#allocation5 + $0x380] ss:$16 sps:$4 sm:$0xff]  }
 0x282   :  { %v613_v18 = vmax.f32 %v549_v7, %v553_v8  ;;  %v647_v10 = vpack.c.bf16 %v553_v8, %v549_v7 }
 0x283   :  { %v626_v11 = vmax.f32 %v551_v9, %v555_v17  ;;  %v648_v19 = vpack.c.bf16 %v555_v17, %v551_v9  ;;  %1683 = vmatpush1.bf16.msra.mxu0 %v6102_v5  ;;  %1724 = vmatpush1.bf16.msra.mxu1 %v6105_v6  ;;  %v608_v6 = vmax.f32 %v6647_v60, %v607_v24  ;;  %v6143_v9 = vld [vmem:[#allocation5 + $0x3ac] ss:$16 sps:$4 sm:$0xff]  }
 0x284   :  { %1684 = vmatprep.subr.bf16.mxu0 %v6110_v30  ;;  %1725 = vmatprep.subr.bf16.mxu1 %v6113_v28  ;;  %v6135_v30 = vld [vmem:[#allocation5 + $0x388] ss:$16 sps:$4 sm:$0xff]   ;;  %v6140_v28 = vld [vmem:[#allocation5 + $0x3a4] ss:$16 sps:$4 sm:$0xff]  }
 0x285   :  { %v558_v15 = vpop.f32.mrb[20].mxu1  ;;  %1111 = vmatprep.mubr.bf16.mxu0 %v648_v19  ;;  %1224 = vmatprep.mubr.bf16.mxu1 %v648_v19  ;;  %v609_v60 = vrot.slane %v608_v6, 2 }
 0x286   :  { %v559_v16 = vadd.f32 %v558_v15, %v6624_v40  ;;  %v560_v31 = vpop.f32.mrb[21].mxu1  ;;  %1112 = vmatmul.mubr.bf16.gmra.mrb[32].mxu0 %v647_v10  ;;  %1225 = vmatmul.mubr.bf16.gmra.mrb[48].mxu1 %v647_v10 }
 0x287   :  { %v561_v33 = vadd.f32 %v560_v31, %v6627_v43  ;;  %v562_v32 = vpop.f32.mrb[22].mxu1  ;;  %1685 = vmatpush1.bf16.msra.mxu0 %v6108_v20  ;;  %1726 = vmatpush1.bf16.msra.mxu1 %v6111_v12  ;;  %v6138_v20 = vld [vmem:[#allocation5 + $0x3a0] ss:$16 sps:$4 sm:$0xff]   ;;  %v6141_v12 = vld [vmem:[#allocation5 + $0x3a8] ss:$16 sps:$4 sm:$0xff]  }
 0x288   :  { %v614_v29 = vmax.f32 %v613_v18, %v559_v16  ;;  %v563_v35 = vadd.f32 %v562_v32, %v6624_v40  ;;  %v564_v62 = vpop.f32.mrb[23].mxu1  ;;  %1686 = vmatprep.subr.bf16.mxu0 %v6116_v13  ;;  %1727 = vmatprep.subr.bf16.mxu1 %v6119_v14  ;;  %v596_v18 = vrot.slane %v595_v3, 2  ;;  %v6149_v31 = vld [vmem:[#allocation5 + $0x3cc] ss:$16 sps:$4 sm:$0xff]  }
 0x289   :  { %v627_v42 = vmax.f32 %v626_v11, %v561_v33  ;;  %v565_v37 = vadd.f32 %v564_v62, %v6627_v43 }
 0x28a   :  { %v615_v22 = vmax.f32 %v614_v29, %v563_v35  ;;  %v649_v38 = vpack.c.bf16 %v563_v35, %v559_v16  ;;  %v6146_v16 = vld [vmem:[#allocation5 + $0x3c4] ss:$16 sps:$4 sm:$0xff]   ;;  %v610_v35 = vmax.f32 %v608_v6, %v609_v60 }
 0x28b   :  { %v628_v41 = vmax.f32 %v627_v42, %v565_v37  ;;  %v650_v44 = vpack.c.bf16 %v565_v37, %v561_v33  ;;  %1687 = vmatpush1.bf16.msra.mxu0 %v6114_v61  ;;  %1728 = vmatpush1.bf16.msra.mxu1 %v6117_v34  ;;  %v597_v61 = vmax.f32 %v595_v3, %v596_v18  ;;  %v6147_v42 = vld [vmem:[#allocation5 + $0x3c8] ss:$16 sps:$4 sm:$0xff]  }
 0x28c   :  { %1688 = vmatprep.subr.bf16.mxu0 %v6122_v36  ;;  %1729 = vmatprep.subr.bf16.mxu1 %v6125_v21  ;;  %v6144_v21 = vld [vmem:[#allocation5 + $0x3c0] ss:$16 sps:$4 sm:$0xff]  }
 0x28d   :  { %v568_v49 = vpop.f32.mrb[24].mxu1  ;;  %1121 = vmatprep.mubr.bf16.mxu0 %v650_v44  ;;  %1234 = vmatprep.mubr.bf16.mxu1 %v650_v44  ;;  %v611_v44 = vrot.slane %v610_v35, 1 }
 0x28e   :  { %v569_v23 = vadd.f32 %v568_v49, %v6624_v40  ;;  %v570_v51 = vpop.f32.mrb[25].mxu1  ;;  %1122 = vmatmul.mubr.bf16.gmra.mrb[36].mxu0 %v649_v38  ;;  %1235 = vmatmul.mubr.bf16.gmra.mrb[52].mxu1 %v649_v38 }
 0x28f   :  { %v571_v52 = vadd.f32 %v570_v51, %v6627_v43  ;;  %v572_v53 = vpop.f32.mrb[26].mxu1  ;;  %1689 = vmatpush1.bf16.msra.mxu0 %v6120_v45  ;;  %1730 = vmatpush1.bf16.msra.mxu1 %v6123_v46  ;;  %v6150_v46 = vld [vmem:[#allocation5 + $0x3e0] ss:$16 sps:$4 sm:$0xff]   ;;  %v612_v51 = vmax.f32 %v610_v35, %v611_v44  ;;  %v2513_v35 = vld [vmem:[#allocation7 + $0xc8] sm:$0xff] }
 0x290   :  { %v616_v59 = vmax.f32 %v615_v22, %v569_v23  ;;  %v573_v63 = vadd.f32 %v572_v53, %v6624_v40  ;;  %v574_v25 = vpop.f32.mrb[27].mxu1  ;;  %1690 = vmatprep.subr.bf16.mxu0 %v6128_v47  ;;  %1731 = vmatprep.subr.bf16.mxu1 %v6131_v48  ;;  %v6155_v22 = vld [vmem:[#allocation5 + $0x3ec] ss:$16 sps:$4 sm:$0xff]   ;;  %v6153_v47 = vld [vmem:[#allocation5 + $0x3e8] ss:$16 sps:$4 sm:$0xff]  }
 0x291   :  { %v629_v1 = vmax.f32 %v628_v41, %v571_v52  ;;  %v575_v2 = vadd.f32 %v574_v25, %v6627_v43  ;;  %v598_v41 = vrot.slane %v597_v61, 1 }
 0x292   :  { %v617_v4 = vmax.f32 %v616_v59, %v573_v63  ;;  %v651_v5 = vpack.c.bf16 %v573_v63, %v569_v23  ;;  %v1266_v59 = vpack.c.bf16 %v612_v51, %v612_v51 }
 0x293   :  { %v630_v7 = vmax.f32 %v629_v1, %v575_v2  ;;  %v652_v8 = vpack.c.bf16 %v575_v2, %v571_v52  ;;  %1691 = vmatpush1.bf16.msra.mxu0 %v6126_v54  ;;  %1732 = vmatpush1.bf16.msra.mxu1 %v6129_v55  ;;  %v599_v50 = vmax.f32 %v597_v61, %v598_v41  ;;  %v2525_v41 = vld [vmem:[#allocation7 + $0x128] sm:$0xff] }
 0x294   :  { %1692 = vmatprep.subr.bf16.mxu0 %v6134_v0  ;;  %1733 = vmatprep.subr.bf16.mxu1 %v6137_v26  ;;  %v1338_v2 = vunpack.c.l.b16 %v1266_v59  ;;  %v2541_v59 = vld [vmem:[#allocation7 + $0x1a8] sm:$0xff] }
 0x295   :  { %v578_v17 = vpop.f32.mrb[28].mxu1  ;;  %1131 = vmatprep.mubr.bf16.mxu0 %v652_v8  ;;  %1244 = vmatprep.mubr.bf16.mxu1 %v652_v8  ;;  %v1265_v54 = vpack.c.bf16 %v599_v50, %v599_v50  ;;  %v2488_v8 = vld [vmem:[#allocation7] sm:$0xff]  ;;  %v2533_v50 = vld [vmem:[#allocation7 + $0x168] sm:$0xff] }
 0x296   :  { %v579_v57 = vadd.f32 %v578_v17, %v6624_v40  ;;  %v580_v10 = vpop.f32.mrb[29].mxu1  ;;  %1132 = vmatmul.mubr.bf16.gmra.mrb[40].mxu0 %v651_v5  ;;  %1245 = vmatmul.mubr.bf16.gmra.mrb[56].mxu1 %v651_v5  ;;  %v2500_v17 = vld [vmem:[#allocation7 + $0x60] sm:$0xff] }
 0x297   :  { %v581_v11 = vadd.f32 %v580_v10, %v6627_v43  ;;  %v582_v19 = vpop.f32.mrb[30].mxu1  ;;  %1693 = vmatpush1.bf16.msra.mxu0 %v6132_v27  ;;  %1734 = vmatpush1.bf16.msra.mxu1 %v6135_v30  ;;  %v1337_v26 = vunpack.c.l.b16 %v1265_v54  ;;  %v2492_v27 = vld [vmem:[#allocation7 + $0x20] sm:$0xff]  ;;  %v2489_v30 = vld [vmem:[#allocation7 + $0x8] sm:$0xff] }
 0x298   :  { %v618_v13 = vmax.f32 %v617_v4, %v579_v57  ;;  %v583_v14 = vadd.f32 %v582_v19, %v6624_v40  ;;  %v584_v15 = vpop.f32.mrb[31].mxu1  ;;  %1694 = vmatprep.subr.bf16.mxu0 %v6140_v28  ;;  %1735 = vmatprep.subr.bf16.mxu1 %v6143_v9  ;;  %v6152_v40 = vld [vmem:[#allocation5 + $0x3e4] ss:$16 sps:$4 sm:$0xff]   ;;  %v2493_v28 = vld [vmem:[#allocation7 + $0x28] sm:$0xff]  ;;  %v5485_v18 = vcombine.low %v2488_v8, %v2492_v27 }
 0x299   :  { %v631_v33 = vmax.f32 %v630_v7, %v581_v11  ;;  %v585_v32 = vadd.f32 %v584_v15, %v6627_v43  ;;  %v2496_v9 = vld [vmem:[#allocation7 + $0x40] sm:$0xff]  ;;  %v5487_v10 = vcombine.low %v2489_v30, %v2493_v28  ;;  %v5488_v60 = vcombine.high %v2489_v30, %v2493_v28  ;;  %v2501_v19 = vld [vmem:[#allocation7 + $0x68] sm:$0xff] }
 0x29a   :  { %v619_v34 = vmax.f32 %v618_v13, %v583_v14  ;;  %v653_v29 = vpack.c.bf16 %v583_v14, %v579_v57  ;;  %v5486_v57 = vcombine.high %v2488_v8, %v2492_v27  ;;  %v2508_v14 = vld [vmem:[#allocation7 + $0xa0] sm:$0xff]  ;;  %v2505_v15 = vld [vmem:[#allocation7 + $0x88] sm:$0xff] }
 0x29b   :  { %v632_v62 = vmax.f32 %v631_v33, %v585_v32  ;;  %v654_v36 = vpack.c.bf16 %v585_v32, %v581_v11  ;;  %1695 = vmatpush1.bf16.msra.mxu0 %v6138_v20  ;;  %1736 = vmatpush1.bf16.msra.mxu1 %v6141_v12  ;;  %v2497_v11 = vld [vmem:[#allocation7 + $0x48] sm:$0xff]  ;;  %v2504_v20 = vld [vmem:[#allocation7 + $0x80] sm:$0xff]  ;;  %v5494_v12 = vcombine.high %v2496_v9, %v2500_v17 }
 0x29c   :  { %v620_v37 = vrot.slane %v619_v34, 4  ;;  %1696 = vmatprep.subr.bf16.mxu0 %v6146_v16  ;;  %1737 = vmatprep.subr.bf16.mxu1 %v6149_v31  ;;  %v5496_v13 = vcombine.high %v2497_v11, %v2501_v19  ;;  %v2509_v16 = vld [vmem:[#allocation7 + $0xa8] sm:$0xff]  ;;  %v5493_v31 = vcombine.low %v2496_v9, %v2500_v17  ;;  %v5495_v33 = vcombine.low %v2497_v11, %v2501_v19  ;;  %v2540_v54 = vld [vmem:[#allocation7 + $0x1a0] sm:$0xff] }
 0x29d   :  { %v633_v38 = vrot.slane %v632_v62, 4  ;;  %1141 = vmatprep.mubr.bf16.mxu0 %v654_v36  ;;  %1254 = vmatprep.mubr.bf16.mxu1 %v654_v36  ;;  %v5502_v32 = vcombine.high %v2504_v20, %v2508_v14  ;;  %v5504_v61 = vcombine.high %v2505_v15, %v2509_v16  ;;  %v5501_v36 = vcombine.low %v2504_v20, %v2508_v14  ;;  %v2552_v27 = vld [vmem:[#allocation7 + $0x200] sm:$0xff]  ;;  %v2553_v28 = vld [vmem:[#allocation7 + $0x208] sm:$0xff] }
 0x29e   :  { %v621_v43 = vmax.f32 %v619_v34, %v620_v37  ;;  %1142 = vmatmul.mubr.bf16.gmra.mrb[44].mxu0 %v653_v29  ;;  %1255 = vmatmul.mubr.bf16.gmra.mrb[60].mxu1 %v653_v29  ;;  %v2512_v34 = vld [vmem:[#allocation7 + $0xc0] sm:$0xff]  ;;  %v2557_v9 = vld [vmem:[#allocation7 + $0x228] sm:$0xff] }
 0x29f   :  { %v634_v45 = vmax.f32 %v632_v62, %v633_v38  ;;  %1697 = vmatpush1.bf16.msra.mxu0 %v6144_v21  ;;  %1738 = vmatpush1.bf16.msra.mxu1 %v6147_v42  ;;  %v2516_v29 = vld [vmem:[#allocation7 + $0xe0] sm:$0xff]  ;;  %v2517_v62 = vld [vmem:[#allocation7 + $0xe8] sm:$0xff]  ;;  %v5503_v21 = vcombine.low %v2505_v15, %v2509_v16 }
 0x2a0   :  { %v622_v48 = vrot.slane %v621_v43, 2  ;;  %1698 = vmatprep.subr.bf16.mxu0 %v6152_v40  ;;  %1739 = vmatprep.subr.bf16.mxu1 %v6155_v22  ;;  %v5510_v42 = vcombine.high %v2512_v34, %v2516_v29  ;;  %v5512_v37 = vcombine.high %v2513_v35, %v2517_v62  ;;  %v2520_v40 = vld [vmem:[#allocation7 + $0x100] sm:$0xff]  ;;  %v2521_v38 = vld [vmem:[#allocation7 + $0x108] sm:$0xff]  ;;  %v5511_v44 = vcombine.low %v2513_v35, %v2517_v62 }
 0x2a1   :  { %v635_v49 = vrot.slane %v634_v45, 2  ;;  %v2524_v22 = vld [vmem:[#allocation7 + $0x120] sm:$0xff]  ;;  %v5519_v51 = vcombine.low %v2521_v38, %v2525_v41  ;;  %v2561_v19 = vld [vmem:[#allocation7 + $0x248] sm:$0xff] }
 0x2a2   :  { %v623_v23 = vmax.f32 %v621_v43, %v622_v48  ;;  %v5509_v43 = vcombine.low %v2512_v34, %v2516_v29  ;;  %v2532_v48 = vld [vmem:[#allocation7 + $0x160] sm:$0xff]  ;;  %v2565_v20 = vld [vmem:[#allocation7 + $0x268] sm:$0xff] }
 0x2a3   :  { %v636_v24 = vmax.f32 %v634_v45, %v635_v49  ;;  %1699 = vmatpush1.bf16.msra.mxu0 %v6150_v46  ;;  %1740 = vmatpush1.bf16.msra.mxu1 %v6153_v47  ;;  %v5518_v45 = vcombine.high %v2520_v40, %v2524_v22  ;;  %v5520_v46 = vcombine.high %v2521_v38, %v2525_v41  ;;  %v2528_v47 = vld [vmem:[#allocation7 + $0x140] sm:$0xff]  ;;  %v2529_v49 = vld [vmem:[#allocation7 + $0x148] sm:$0xff] }
 0x2a4   :  { %v624_v52 = vrot.slane %v623_v23, 1  ;;  %4024 = vmatprep.subr.bf16.mxu0 %v5486_v57  ;;  %4250 = vmatprep.subr.bf16.mxu1 %v5488_v60  ;;  %v2556_v30 = vld [vmem:[#allocation7 + $0x220] sm:$0xff]  ;;  %v5560_v15 = vcombine.high %v2561_v19, %v2565_v20  ;;  %v5559_v34 = vcombine.low %v2561_v19, %v2565_v20 }
 0x2a5   :  { %v637_v53 = vrot.slane %v636_v24, 1  ;;  %v5550_v57 = vcombine.high %v2552_v27, %v2556_v30  ;;  %v2560_v60 = vld [vmem:[#allocation7 + $0x240] sm:$0xff] }
 0x2a6   :  { %v625_v55 = vmax.f32 %v623_v23, %v624_v52  ;;  %v5517_v23 = vcombine.low %v2520_v40, %v2524_v22  ;;  %v5528_v52 = vcombine.high %v2529_v49, %v2533_v50  ;;  %v2564_v11 = vld [vmem:[#allocation7 + $0x260] sm:$0xff]  ;;  %v2581_v40 = vld [vmem:[#allocation7 + $0x2e8] sm:$0xff] }
 0x2a7   :  { %v638_v63 = vmax.f32 %v636_v24, %v637_v53  ;;  %v5526_v24 = vcombine.high %v2528_v47, %v2532_v48  ;;  %v2536_v53 = vld [vmem:[#allocation7 + $0x180] sm:$0xff]  ;;  %v5558_v14 = vcombine.high %v2560_v60, %v2564_v11 }
 0x2a8   :  { %v1267_v25 = vpack.c.bf16 %v625_v55, %v625_v55  ;;  %v2537_v55 = vld [vmem:[#allocation7 + $0x188] sm:$0xff]  ;;  %v2568_v16 = vld [vmem:[#allocation7 + $0x280] sm:$0xff] }
 0x2a9   :  { %v1268_v0 = vpack.c.bf16 %v638_v63, %v638_v63  ;;  %v5525_v63 = vcombine.low %v2528_v47, %v2532_v48  ;;  %v2576_v62 = vld [vmem:[#allocation7 + $0x2c0] sm:$0xff] }
 0x2aa   :  { %v1339_v1 = vunpack.c.l.b16 %v1267_v25  ;;  %v5527_v25 = vcombine.low %v2529_v49, %v2533_v50  ;;  %v2584_v50 = vld [vmem:[#allocation7 + $0x300] sm:$0xff] }
 0x2ab   :  { %v1340_v3 = vunpack.c.l.b16 %v1268_v0  ;;  %v5534_v0 = vcombine.high %v2536_v53, %v2540_v54  ;;  %v2608_v20 = vld [vmem:[#allocation7 + $0x3c0] sm:$0xff] }
 0x2ac   :  { %v1342_v4 = vsel %vm1341_vm2, %v1339_v1, %v1337_v26  ;;  %v5536_v26 = vcombine.high %v2537_v55, %v2541_v59  ;;  %v2544_v1 = vld [vmem:[#allocation7 + $0x1c0] sm:$0xff] }
 0x2ad   :  { %v1343_v5 = vsel %vm1341_vm2, %v1340_v3, %v1338_v2  ;;  %v1344_v7 = vpack.c.b16 %v1342_v4, %v1342_v4  ;;  %v2548_v2 = vld [vmem:[#allocation7 + $0x1e0] sm:$0xff]  ;;  %v2545_v3 = vld [vmem:[#allocation7 + $0x1c8] sm:$0xff] }
 0x2ae   :  { %v1345_v6 = vpack.c.b16 %v1343_v5, %v1343_v5  ;;  %v2549_v4 = vld [vmem:[#allocation7 + $0x1e8] sm:$0xff]  ;;  %v5533_v5 = vcombine.low %v2536_v53, %v2540_v54  ;;  %v5541_v17 = vcombine.low %v2544_v1, %v2548_v2 }
 0x2af   :  { %v5544_v8 = vcombine.high %v2545_v3, %v2549_v4 }
 0x2b0   :  { %1700 = vmatprep.mubr.bf16.mxu0 %v1345_v6  ;;  %1741 = vmatprep.mubr.bf16.mxu1 %v1345_v6  ;;  %v5535_v6 = vcombine.low %v2537_v55, %v2541_v59  ;;  %v2592_v59 = vld [vmem:[#allocation7 + $0x340] sm:$0xff] }
 0x2b1   :  { %1701 = vmatmul.mubr.bf16.vlgmr.msra.gmra.mrb[48].mxu0 %v1344_v7  ;;  %1742 = vmatmul.mubr.bf16.vlgmr.msra.gmra.mrb[64].mxu1 %v1344_v7  ;;  %v5542_v7 = vcombine.high %v2544_v1, %v2548_v2  ;;  %v2597_v1 = vld [vmem:[#allocation7 + $0x368] sm:$0xff] }
 0x2b2   :  { %4025 = vmatpush1.bf16.msra.mxu0 %v5485_v18  ;;  %4251 = vmatpush1.bf16.msra.mxu1 %v5487_v10  ;;  %v5543_v18 = vcombine.low %v2545_v3, %v2549_v4  ;;  %v5552_v10 = vcombine.high %v2553_v28, %v2557_v9 }
 0x2b3   :  { %4026 = vmatprep.subr.bf16.mxu0 %v5494_v12  ;;  %4252 = vmatprep.subr.bf16.mxu1 %v5496_v13  ;;  %v5549_v12 = vcombine.low %v2552_v27, %v2556_v30  ;;  %v5551_v13 = vcombine.low %v2553_v28, %v2557_v9  ;;  %v2600_v9 = vld [vmem:[#allocation7 + $0x380] sm:$0xff] }
 0x2b6   :  { %4027 = vmatpush1.bf16.msra.mxu0 %v5493_v31  ;;  %4253 = vmatpush1.bf16.msra.mxu1 %v5495_v33  ;;  %v2572_v31 = vld [vmem:[#allocation7 + $0x2a0] sm:$0xff]  ;;  %v2569_v33 = vld [vmem:[#allocation7 + $0x288] sm:$0xff] }
 0x2b7   :  { %4028 = vmatprep.subr.bf16.mxu0 %v5502_v32  ;;  %4254 = vmatprep.subr.bf16.mxu1 %v5504_v61  ;;  %v2573_v32 = vld [vmem:[#allocation7 + $0x2a8] sm:$0xff]  ;;  %v5557_v61 = vcombine.low %v2560_v60, %v2564_v11  ;;  %v5566_v29 = vcombine.high %v2568_v16, %v2572_v31 }
 0x2b8   :  { %v5568_v35 = vcombine.high %v2569_v33, %v2573_v32 }
 0x2ba   :  { %4029 = vmatpush1.bf16.msra.mxu0 %v5501_v36  ;;  %4255 = vmatpush1.bf16.msra.mxu1 %v5503_v21 }
 0x2bb   :  { %4030 = vmatprep.subr.bf16.mxu0 %v5510_v42  ;;  %4256 = vmatprep.subr.bf16.mxu1 %v5512_v37  ;;  %v2580_v42 = vld [vmem:[#allocation7 + $0x2e0] sm:$0xff]  ;;  %v2577_v37 = vld [vmem:[#allocation7 + $0x2c8] sm:$0xff] }
 0x2bc   :  { %v5574_v48 = vcombine.high %v2576_v62, %v2580_v42  ;;  %v5576_v49 = vcombine.high %v2577_v37, %v2581_v40  ;;  %v5575_v53 = vcombine.low %v2577_v37, %v2581_v40 }
 0x2be   :  { %4031 = vmatpush1.bf16.msra.mxu0 %v5509_v43  ;;  %4257 = vmatpush1.bf16.msra.mxu1 %v5511_v44  ;;  %v5565_v44 = vcombine.low %v2568_v16, %v2572_v31  ;;  %v2613_v16 = vld [vmem:[#allocation7 + $0x3e8] sm:$0xff] }
 0x2bf   :  { %4032 = vmatprep.subr.bf16.mxu0 %v5518_v45  ;;  %4258 = vmatprep.subr.bf16.mxu1 %v5520_v46  ;;  %v5567_v45 = vcombine.low %v2569_v33, %v2573_v32 }
 0x2c2   :  { %4033 = vmatpush1.bf16.msra.mxu0 %v5517_v23  ;;  %4259 = vmatpush1.bf16.msra.mxu1 %v5519_v51  ;;  %v2588_v23 = vld [vmem:[#allocation7 + $0x320] sm:$0xff]  ;;  %v2585_v51 = vld [vmem:[#allocation7 + $0x308] sm:$0xff] }
 0x2c3   :  { %4034 = vmatprep.subr.bf16.mxu0 %v5526_v24  ;;  %4260 = vmatprep.subr.bf16.mxu1 %v5528_v52  ;;  %v2589_v24 = vld [vmem:[#allocation7 + $0x328] sm:$0xff]  ;;  %v5573_v52 = vcombine.low %v2576_v62, %v2580_v42  ;;  %v5582_v54 = vcombine.high %v2584_v50, %v2588_v23 }
 0x2c4   :  { %v5584_v55 = vcombine.high %v2585_v51, %v2589_v24 }
 0x2c6   :  { %4035 = vmatpush1.bf16.msra.mxu0 %v5525_v63  ;;  %4261 = vmatpush1.bf16.msra.mxu1 %v5527_v25 }
 0x2c7   :  { %4036 = vmatprep.subr.bf16.mxu0 %v5534_v0  ;;  %4262 = vmatprep.subr.bf16.mxu1 %v5536_v26  ;;  %v2596_v0 = vld [vmem:[#allocation7 + $0x360] sm:$0xff]  ;;  %v2593_v26 = vld [vmem:[#allocation7 + $0x348] sm:$0xff] }
 0x2c8   :  { %v5590_v30 = vcombine.high %v2592_v59, %v2596_v0  ;;  %v5592_v28 = vcombine.high %v2593_v26, %v2597_v1  ;;  %v5591_v60 = vcombine.low %v2593_v26, %v2597_v1 }
 0x2ca   :  { %4037 = vmatpush1.bf16.msra.mxu0 %v5533_v5  ;;  %4263 = vmatpush1.bf16.msra.mxu1 %v5535_v6  ;;  %v5581_v6 = vcombine.low %v2584_v50, %v2588_v23 }
 0x2cb   :  { %4038 = vmatprep.subr.bf16.mxu0 %v5542_v7  ;;  %4264 = vmatprep.subr.bf16.mxu1 %v5544_v8  ;;  %v5583_v7 = vcombine.low %v2585_v51, %v2589_v24 }
 0x2ce   :  { %4039 = vmatpush1.bf16.msra.mxu0 %v5541_v17  ;;  %4265 = vmatpush1.bf16.msra.mxu1 %v5543_v18  ;;  %v2604_v17 = vld [vmem:[#allocation7 + $0x3a0] sm:$0xff]  ;;  %v2601_v18 = vld [vmem:[#allocation7 + $0x388] sm:$0xff] }
 0x2cf   :  { %4040 = vmatprep.subr.bf16.mxu0 %v5550_v57  ;;  %4266 = vmatprep.subr.bf16.mxu1 %v5552_v10  ;;  %v2605_v57 = vld [vmem:[#allocation7 + $0x3a8] sm:$0xff]  ;;  %v5589_v10 = vcombine.low %v2592_v59, %v2596_v0  ;;  %v5598_v11 = vcombine.high %v2600_v9, %v2604_v17 }
 0x2d0   :  { %v5600_v19 = vcombine.high %v2601_v18, %v2605_v57 }
 0x2d2   :  { %4041 = vmatpush1.bf16.msra.mxu0 %v5549_v12  ;;  %4267 = vmatpush1.bf16.msra.mxu1 %v5551_v13 }
 0x2d3   :  { %4042 = vmatprep.subr.bf16.mxu0 %v5558_v14  ;;  %4268 = vmatprep.subr.bf16.mxu1 %v5560_v15  ;;  %v2612_v14 = vld [vmem:[#allocation7 + $0x3e0] sm:$0xff]  ;;  %v2609_v15 = vld [vmem:[#allocation7 + $0x3c8] sm:$0xff] }
 0x2d4   :  { %v5606_v42 = vcombine.high %v2608_v20, %v2612_v14  ;;  %v5608_v37 = vcombine.high %v2609_v15, %v2613_v16  ;;  %v5605_v40 = vcombine.low %v2608_v20, %v2612_v14 }
 0x2d6   :  { %4043 = vmatpush1.bf16.msra.mxu0 %v5557_v61  ;;  %4269 = vmatpush1.bf16.msra.mxu1 %v5559_v34  ;;  %v5597_v34 = vcombine.low %v2600_v9, %v2604_v17 }
 0x2d7   :  { %4044 = vmatprep.subr.bf16.mxu0 %v5566_v29  ;;  %4270 = vmatprep.subr.bf16.mxu1 %v5568_v35  ;;  %v5599_v29 = vcombine.low %v2601_v18, %v2605_v57 }
 0x2da   :  { %4045 = vmatpush1.bf16.msra.mxu0 %v5565_v44  ;;  %4271 = vmatpush1.bf16.msra.mxu1 %v5567_v45  ;;  %v5607_v44 = vcombine.low %v2609_v15, %v2613_v16 }
 0x2db   :  { %4046 = vmatprep.subr.bf16.mxu0 %v5574_v48  ;;  %4272 = vmatprep.subr.bf16.mxu1 %v5576_v49 }
 0x2de   :  { %4047 = vmatpush1.bf16.msra.mxu0 %v5573_v52  ;;  %4273 = vmatpush1.bf16.msra.mxu1 %v5575_v53 }
 0x2df   :  { %4048 = vmatprep.subr.bf16.mxu0 %v5582_v54  ;;  %4274 = vmatprep.subr.bf16.mxu1 %v5584_v55 }
 0x2e2   :  { %4049 = vmatpush1.bf16.msra.mxu0 %v5581_v6  ;;  %4275 = vmatpush1.bf16.msra.mxu1 %v5583_v7 }
 0x2e3   :  { %4050 = vmatprep.subr.bf16.mxu0 %v5590_v30  ;;  %4276 = vmatprep.subr.bf16.mxu1 %v5592_v28 }
 0x2e6   :  { %4051 = vmatpush1.bf16.msra.mxu0 %v5589_v10  ;;  %4277 = vmatpush1.bf16.msra.mxu1 %v5591_v60 }
 0x2e7   :  { %4052 = vmatprep.subr.bf16.mxu0 %v5598_v11  ;;  %4278 = vmatprep.subr.bf16.mxu1 %v5600_v19 }
 0x2ea   :  { %4053 = vmatpush1.bf16.msra.mxu0 %v5597_v34  ;;  %4279 = vmatpush1.bf16.msra.mxu1 %v5599_v29 }
 0x2eb   :  { %4054 = vmatprep.subr.bf16.mxu0 %v5606_v42  ;;  %4280 = vmatprep.subr.bf16.mxu1 %v5608_v37 }
 0x2ee   :  { %4055 = vmatpush1.bf16.msra.mxu0 %v5605_v40  ;;  %4281 = vmatpush1.bf16.msra.mxu1 %v5607_v44 }
 0x339   :  { %v6671_v36 = vpop.f32.mrb[16].mxu0  ;;  %v6673_v21 = vpop.f32.mrb[32].mxu1 }
 0x33a   :  { %8727 = vst [vmem:[#allocation15_spill] sm:$0xff] %v6673_v21  ;;  %v6675_v22 = vpop.f32.mrb[17].mxu0  ;;  %v6677_v38 = vpop.f32.mrb[33].mxu1 }
 0x33b   :  { %v6679_v41 = vpop.f32.mrb[18].mxu0  ;;  %v6681_v43 = vpop.f32.mrb[34].mxu1 }
 0x33c   :  { %8728 = vst [vmem:[#allocation16_spill] sm:$0xff] %v6681_v43  ;;  %v6683_v46 = vpop.f32.mrb[19].mxu0  ;;  %v6685_v47 = vpop.f32.mrb[35].mxu1 }
 0x341   :  { %v6687_v63 = vpop.f32.mrb[20].mxu0  ;;  %v6689_v25 = vpop.f32.mrb[36].mxu1 }
 0x342   :  { %8729 = vst [vmem:[#allocation17_spill] sm:$0xff] %v6689_v25  ;;  %v6691_v2 = vpop.f32.mrb[21].mxu0  ;;  %v6693_v3 = vpop.f32.mrb[37].mxu1 }
 0x343   :  { %v6695_v4 = vpop.f32.mrb[22].mxu0  ;;  %v6697_v5 = vpop.f32.mrb[38].mxu1 }
 0x344   :  { %8730 = vst [vmem:[#allocation18_spill] sm:$0xff] %v6697_v5  ;;  %v6699_v8 = vpop.f32.mrb[23].mxu0  ;;  %v6701_v27 = vpop.f32.mrb[39].mxu1 }
 0x349   :  { %v6703_v12 = vpop.f32.mrb[24].mxu0  ;;  %v6705_v13 = vpop.f32.mrb[40].mxu1 }
 0x34a   :  { %8731 = vst [vmem:[#allocation19_spill] sm:$0xff] %v6705_v13  ;;  %v6707_v31 = vpop.f32.mrb[25].mxu0  ;;  %v6709_v33 = vpop.f32.mrb[41].mxu1 }
 0x34b   :  { %v6711_v32 = vpop.f32.mrb[26].mxu0  ;;  %v6713_v61 = vpop.f32.mrb[42].mxu1 }
 0x34c   :  { %8732 = vst [vmem:[#allocation20_spill] sm:$0xff] %v6713_v61  ;;  %v6715_v35 = vpop.f32.mrb[27].mxu0  ;;  %v6717_v62 = vpop.f32.mrb[43].mxu1 }
 0x34d   :  { %8733 = vst [vmem:[#allocation21_spill] sm:$0xff] %v6717_v62 }
 0x351   :  { %v6719_v45 = vpop.f32.mrb[28].mxu0  ;;  %v6721_v48 = vpop.f32.mrb[44].mxu1 }
 0x352   :  { %8734 = vst [vmem:[#allocation22_spill] sm:$0xff] %v6721_v48  ;;  %v6723_v49 = vpop.f32.mrb[29].mxu0  ;;  %v6725_v50 = vpop.f32.mrb[45].mxu1 }
 0x353   :  { %8735 = vst [vmem:[#allocation23_spill] sm:$0xff] %v6725_v50  ;;  %v6727_v23 = vpop.f32.mrb[30].mxu0  ;;  %v6729_v51 = vpop.f32.mrb[46].mxu1  ;;  %v6785_v50 = vsub.s32 2, %v6543_v56 }
 0x354   :  { %8736 = vst [vmem:[#allocation24_spill] sm:$0xff] %v6729_v51  ;;  %v6731_v24 = vpop.f32.mrb[31].mxu0  ;;  %v6733_v52 = vpop.f32.mrb[47].mxu1 }
 0x355   :  { %8737 = vst [vmem:[#allocation25_spill] sm:$0xff] %v6733_v52  ;;  %8750 = vst [vmem:[#allocation38_spill] sm:$0xff] %v6785_v50 }
 0x359   :  { %v6735_v53 = vpop.f32.mrb[32].mxu0  ;;  %v6737_v54 = vpop.f32.mrb[48].mxu1 }
 0x35a   :  { %8738 = vst [vmem:[#allocation26_spill] sm:$0xff] %v6737_v54  ;;  %v6739_v55 = vpop.f32.mrb[33].mxu0  ;;  %v6741_v59 = vpop.f32.mrb[49].mxu1 }
 0x35b   :  { %8739 = vst [vmem:[#allocation27_spill] sm:$0xff] %v6741_v59  ;;  %v6743_v0 = vpop.f32.mrb[34].mxu0  ;;  %v6745_v26 = vpop.f32.mrb[50].mxu1 }
 0x35c   :  { %8740 = vst [vmem:[#allocation28_spill] sm:$0xff] %v6745_v26  ;;  %v6747_v1 = vpop.f32.mrb[35].mxu0  ;;  %v6749_v6 = vpop.f32.mrb[51].mxu1  ;;  %v6300_v26 = vmov 1966171168  }
 0x35d   :  { %8741 = vst [vmem:[#allocation29_spill] sm:$0xff] %v6749_v6  ;;  %v1757_v54 = vunpack.c.l.s4 %v6300_v26 }
 0x35f   :  { %v1758_v51 = vunpack.c.0.s8 %v1757_v54  ;;  %v6788_v54 = vsub.s32 3, %v6543_v56 }
 0x361   :  { %v6751_v7 = vpop.f32.mrb[36].mxu0  ;;  %v6753_v30 = vpop.f32.mrb[52].mxu1  ;;  %v1761_v13 = vsub.s32 %v1758_v51, %v6543_v56  ;;  %8751 = vst [vmem:[#allocation39_spill] sm:$0xff] %v6788_v54 }
 0x362   :  { %8742 = vst [vmem:[#allocation30_spill] sm:$0xff] %v6753_v30  ;;  %v6755_v28 = vpop.f32.mrb[37].mxu0  ;;  %v6757_v9 = vpop.f32.mrb[53].mxu1 }
 0x363   :  { %8743 = vst [vmem:[#allocation31_spill] sm:$0xff] %v6757_v9  ;;  %v6759_v17 = vpop.f32.mrb[38].mxu0  ;;  %v6761_v18 = vpop.f32.mrb[54].mxu1 }
 0x364   :  { %8744 = vst [vmem:[#allocation32_spill] sm:$0xff] %v6761_v18  ;;  %v6763_v57 = vpop.f32.mrb[39].mxu0  ;;  %v6765_v10 = vpop.f32.mrb[55].mxu1 }
 0x365   :  { %8745 = vst [vmem:[#allocation33_spill] sm:$0xff] %v6765_v10 }
 0x369   :  { %v6767_v60 = vpop.f32.mrb[40].mxu0  ;;  %v6769_v11 = vpop.f32.mrb[56].mxu1 }
 0x36a   :  { %8746 = vst [vmem:[#allocation34_spill] sm:$0xff] %v6769_v11  ;;  %v6771_v19 = vpop.f32.mrb[41].mxu0  ;;  %v6773_v20 = vpop.f32.mrb[57].mxu1 }
 0x36b   :  { %8747 = vst [vmem:[#allocation35_spill] sm:$0xff] %v6773_v20  ;;  %v6775_v14 = vpop.f32.mrb[42].mxu0  ;;  %v1250_v15 = vpop.f32.mrb[58].mxu1 }
 0x36c   :  { %v1139_v16 = vpop.f32.mrb[43].mxu0  ;;  %v6777_v34 = vpop.f32.mrb[59].mxu1 }
 0x36d   :  { %8748 = vst [vmem:[#allocation36_spill] sm:$0xff] %v6777_v34 }
 0x371   :  { %v6779_v29 = vpop.f32.mrb[44].mxu0  ;;  %v1256_v42 = vpop.f32.mrb[60].mxu1 }
 0x372   :  { %v1145_v37 = vpop.f32.mrb[45].mxu0  ;;  %v6781_v40 = vpop.f32.mrb[61].mxu1 }
 0x373   :  { %8749 = vst [vmem:[#allocation37_spill] sm:$0xff] %v6781_v40  ;;  %v1147_v44 = vpop.f32.mrb[46].mxu0  ;;  %v1260_v18 = vpop.f32.mrb[62].mxu1 }
 0x374   :  { %v1149_v30 = vpop.f32.mrb[47].mxu0  ;;  %v1262_v11 = vpop.f32.mrb[63].mxu1 }
 0x384   :  { %v1702_v48 = vpop.f32.mrb[48].mxu0  ;;  %v1743_v61 = vpop.f32.mrb[64].mxu1 }
 0x385   :  { %v1704_v5 = vpop.f32.mrb[49].mxu0  ;;  %v1745_v25 = vpop.f32.mrb[65].mxu1 }
 0x386   :  { %v1754_v43 = vcombine.low %v1702_v48, %v1704_v5  ;;  %v1755_v21 = vcombine.low %v1743_v61, %v1745_v25  ;;  %v1706_v34 = vpop.f32.mrb[50].mxu0  ;;  %v1747_v20 = vpop.f32.mrb[66].mxu1 }
 0x387   :  { %v1707_v10 = vpop.f32.mrb[51].mxu0  ;;  %v1748_v9 = vpop.f32.mrb[67].mxu1 }
 0x388   :  { %v1762_v40 = vrot.slane %v1754_v43, %v1761_v13  ;;  %v1769_v6 = vrot.slane %v1755_v21, %v1761_v13 }
 0x38a   :  { %v1770_v59 = vcombine.low %v1762_v40, %v1769_v6  ;;  %v1771_v52 = vcombine.high %v1762_v40, %v1769_v6 }
 0x38c   :  { %v1778_v26 = vrot.slane %v1770_v59, %v1761_v13  ;;  %v1785_v51 = vrot.slane %v1771_v52, %v1761_v13 }
 0x38e   :  { %v1789_v62 = vrot.slane %v1778_v26, %v6549_v58  ;;  %v1793_v25 = vrot.slane %v1778_v26, %v6621_v39  ;;  %v6793_v5 = vrot.slane %v1778_v26, %v6785_v50  ;;  %v6796_v43 = vrot.slane %v1778_v26, %v6788_v54 }
 0x38f   :  { %v1805_v21 = vrot.slane %v1785_v51, %v6549_v58  ;;  %v1809_v61 = vrot.slane %v1785_v51, %v6621_v39  ;;  %v6801_v48 = vrot.slane %v1785_v51, %v6785_v50  ;;  %v6804_v59 = vrot.slane %v1785_v51, %v6788_v54  ;;  %v8778_v54 = vld [vmem:[#allocation37_spill] sm:$0xff]  ;;  %v8779_v58 = vld [vmem:[#allocation15_spill] sm:$0xff] }
 0x390   :  { %v6807_v13 = vadd.f32 %v1793_v25, %v6675_v22  ;;  %v6810_v52 = vadd.f32 %v1793_v25, %v6683_v46  ;;  %v6813_v6 = vadd.f32 %v1793_v25, %v6691_v2  ;;  %v6816_v9 = vadd.f32 %v1793_v25, %v6699_v8 }
 0x391   :  { %v6819_v10 = vadd.f32 %v6801_v48, %v1250_v15  ;;  %v6822_v20 = vadd.f32 %v6801_v48, %v1256_v42  ;;  %v6824_v34 = vadd.f32 %v1805_v21, %v1147_v44  ;;  %v6826_v40 = vadd.f32 %v1809_v61, %v1149_v30  ;;  %v6840_v15 = vld [vmem:[#allocation7 + $0x400] sm:$0xff] }
 0x392   :  { %v6829_v22 = vadd.f32 %v6801_v48, %v1260_v18  ;;  %v6832_v46 = vadd.f32 %v6804_v59, %v1262_v11  ;;  %v6835_v2 = vadd.f32 %v1793_v25, %v6707_v31  ;;  %v6838_v8 = vadd.f32 %v1793_v25, %v6715_v35  ;;  %8755 = vst [vmem:[#allocation43_spill] sm:$0xff] %v6840_v15  ;;  %v6842_v42 = vld [vmem:[#allocation7 + $0x420] sm:$0xff] }
 0x393   :  { %8752 = vst [vmem:[#allocation40_spill] sm:$0xff] %v6819_v10  ;;  %8753 = vst [vmem:[#allocation41_spill] sm:$0xff] %v6822_v20  ;;  %v6845_v44 = vadd.f32 %v1793_v25, %v6723_v49  ;;  %v6848_v30 = vadd.f32 %v1793_v25, %v6731_v24  ;;  %v6851_v18 = vadd.f32 %v1809_v61, %v6739_v55  ;;  %v8782_v20 = vld [vmem:[#allocation17_spill] sm:$0xff]  ;;  %v8788_v10 = vld [vmem:[#allocation20_spill] sm:$0xff] }
 0x394   :  { %8754 = vst [vmem:[#allocation42_spill] sm:$0xff] %v6829_v22  ;;  %8756 = vst [vmem:[#allocation44_spill] sm:$0xff] %v6842_v42  ;;  %v6854_v11 = vadd.f32 %v1809_v61, %v6747_v1  ;;  %v6857_v31 = vadd.f32 %v1809_v61, %v6755_v28  ;;  %v6860_v35 = vadd.f32 %v1809_v61, %v6763_v57 }
 0x395   :  { %v6863_v26 = vadd.f32 %v1809_v61, %v6771_v19  ;;  %v6865_v49 = vadd.f32 %v1809_v61, %v1139_v16  ;;  %v6867_v51 = vadd.f32 %v1809_v61, %v1145_v37  ;;  %v1911_v24 = vadd.f32 %v6810_v52, %v6807_v13 }
 0x396   :  { %v5614_v1 = vcombine.high %v6840_v15, %v6842_v42  ;;  %v6876_v28 = vadd.f32 %v1789_v62, %v6671_v36  ;;  %v6879_v57 = vadd.f32 %v1789_v62, %v6679_v41  ;;  %v6882_v19 = vadd.f32 %v1789_v62, %v6687_v63  ;;  %v8774_v42 = vld [vmem:[#allocation31_spill] sm:$0xff]  ;;  %v8775_v15 = vld [vmem:[#allocation33_spill] sm:$0xff] }
 0x397   :  { %v6885_v16 = vadd.f32 %v1789_v62, %v6695_v4  ;;  %v1912_v37 = vadd.f32 %v1911_v24, %v6813_v6  ;;  %v6889_v25 = vadd.f32 %v1789_v62, %v6703_v12  ;;  %v6892_v61 = vadd.f32 %v1789_v62, %v6711_v32 }
 0x398   :  { %4137 = vmatprep.subr.bf16.mxu0 %v5614_v1  ;;  %v6895_v36 = vadd.f32 %v1789_v62, %v6719_v45  ;;  %v6898_v41 = vadd.f32 %v1789_v62, %v6727_v23  ;;  %v6901_v63 = vadd.f32 %v1805_v21, %v6735_v53  ;;  %v6904_v4 = vadd.f32 %v1805_v21, %v6743_v0 }
 0x399   :  { %8757 = vst [vmem:[#allocation45_spill] sm:$0xff] %v6889_v25  ;;  %8758 = vst [vmem:[#allocation46_spill] sm:$0xff] %v6892_v61  ;;  %v6907_v24 = vadd.f32 %v1805_v21, %v6751_v7  ;;  %v1913_v12 = vadd.f32 %v1912_v37, %v6816_v9  ;;  %v6911_v32 = vadd.f32 %v1805_v21, %v6759_v17 }
 0x39a   :  { %8759 = vst [vmem:[#allocation47_spill] sm:$0xff] %v6895_v36  ;;  %8760 = vst [vmem:[#allocation48_spill] sm:$0xff] %v6901_v63  ;;  %v6914_v45 = vadd.f32 %v1805_v21, %v6767_v60  ;;  %v6917_v62 = vadd.f32 %v1805_v21, %v6775_v14  ;;  %v6920_v23 = vadd.f32 %v1805_v21, %v6779_v29  ;;  %v6933_v60 = vld [vmem:[#allocation7 + $0x408] sm:$0xff] }
 0x39b   :  { %v1890_v53 = vadd.f32 %v6879_v57, %v6876_v28  ;;  %v6926_v0 = vadd.f32 %v6796_v43, %v6677_v38  ;;  %v6930_v7 = vadd.f32 %v6796_v43, %v6685_v47  ;;  %v1914_v17 = vadd.f32 %v1913_v12, %v6835_v2  ;;  %8763 = vst [vmem:[#allocation51_spill] sm:$0xff] %v6933_v60  ;;  %v6935_v14 = vld [vmem:[#allocation7 + $0x428] sm:$0xff]  ;;  %v8768_v12 = vld [vmem:[#allocation21_spill] sm:$0xff] }
 0x39c   :  { %8764 = vst [vmem:[#allocation52_spill] sm:$0xff] %v6935_v14  ;;  %v6939_v29 = vadd.f32 %v6796_v43, %v6693_v3  ;;  %v6943_v21 = vadd.f32 %v6796_v43, %v6701_v27  ;;  %v6947_v38 = vadd.f32 %v6796_v43, %v6709_v33  ;;  %v5616_v37 = vcombine.high %v6933_v60, %v6935_v14  ;;  %v8770_v27 = vld [vmem:[#allocation23_spill] sm:$0xff]  ;;  %v8771_v33 = vld [vmem:[#allocation25_spill] sm:$0xff] }
 0x39d   :  { %8761 = vst [vmem:[#allocation49_spill] sm:$0xff] %v6926_v0  ;;  %8762 = vst [vmem:[#allocation50_spill] sm:$0xff] %v6930_v7  ;;  %v1891_v47 = vadd.f32 %v1890_v53, %v6882_v19  ;;  %v6956_v3 = vadd.f32 %v6796_v43, %v8768_v12  ;;  %v1915_v55 = vadd.f32 %v1914_v17, %v6838_v8  ;;  %v8772_v53 = vld [vmem:[#allocation27_spill] sm:$0xff]  ;;  %v8773_v60 = vld [vmem:[#allocation29_spill] sm:$0xff] }
 0x39e   :  { %8765 = vst [vmem:[#allocation53_spill] sm:$0xff] %v6939_v29  ;;  %8766 = vst [vmem:[#allocation54_spill] sm:$0xff] %v6943_v21  ;;  %v6961_v56 = vadd.f32 %v6796_v43, %v8770_v27  ;;  %v6965_v50 = vadd.f32 %v6796_v43, %v8771_v33  ;;  %v6969_v1 = vadd.f32 %v6804_v59, %v8772_v53  ;;  %4363 = vmatprep.subr.bf16.mxu1 %v5616_v37  ;;  %v8776_v33 = vld [vmem:[#allocation35_spill] sm:$0xff]  ;;  %v8777_v37 = vld [vmem:[#allocation36_spill] sm:$0xff] }
 0x39f   :  { %8767 = vst [vmem:[#allocation55_spill] sm:$0xff] %v6947_v38  ;;  %8769 = vst [vmem:[#allocation21_spill] sm:$0xff] %v6956_v3  ;;  %v1892_v14 = vadd.f32 %v1891_v47, %v6885_v16  ;;  %v6974_v12 = vadd.f32 %v6804_v59, %v8773_v60  ;;  %v1916_v17 = vadd.f32 %v1915_v55, %v6845_v44 }
 0x3a0   :  { %v6979_v27 = vadd.f32 %v6804_v59, %v8774_v42  ;;  %v6983_v43 = vadd.f32 %v6804_v59, %v8775_v15  ;;  %v6987_v53 = vadd.f32 %v6804_v59, %v8776_v33  ;;  %v6992_v60 = vadd.f32 %v6804_v59, %v8777_v37 }
 0x3a1   :  { %v1893_v47 = vadd.f32 %v1892_v14, %v6889_v25  ;;  %v1917_v55 = vadd.f32 %v1916_v17, %v6848_v30  ;;  %v6997_v42 = vadd.f32 %v6804_v59, %v8778_v54  ;;  %v1953_v15 = vadd.f32 %v6930_v7, %v6926_v0  ;;  %v8780_v14 = vld [vmem:[#allocation16_spill] sm:$0xff]  ;;  %v8784_v59 = vld [vmem:[#allocation18_spill] sm:$0xff]  ;;  %v8786_v0 = vld [vmem:[#allocation19_spill] sm:$0xff] }
 0x3a2   :  { %v7003_v39 = vadd.f32 %v6793_v5, %v8779_v58  ;;  %v7008_v22 = vadd.f32 %v6793_v5, %v8780_v14  ;;  %v7014_v54 = vadd.f32 %v6793_v5, %v8782_v20  ;;  %v7018_v7 = vadd.f32 %v6793_v5, %v8784_v59  ;;  %v8790_v20 = vld [vmem:[#allocation22_spill] sm:$0xff] }
 0x3a3   :  { %v1894_v33 = vadd.f32 %v1893_v47, %v6892_v61  ;;  %v1918_v37 = vadd.f32 %v1917_v55, %v6851_v18  ;;  %v1954_v17 = vadd.f32 %v1953_v15, %v6939_v29  ;;  %v7023_v47 = vadd.f32 %v6793_v5, %v8786_v0  ;;  %v8791_v61 = vld [vmem:[#allocation24_spill] sm:$0xff]  ;;  %v8795_v25 = vld [vmem:[#allocation30_spill] sm:$0xff] }
 0x3a4   :  { %8781 = vst [vmem:[#allocation23_spill] sm:$0xff] %v7008_v22  ;;  %8783 = vst [vmem:[#allocation25_spill] sm:$0xff] %v7014_v54  ;;  %v7029_v15 = vadd.f32 %v6793_v5, %v8788_v10  ;;  %v7033_v29 = vadd.f32 %v6793_v5, %v8790_v20  ;;  %v8794_v10 = vld [vmem:[#allocation28_spill] sm:$0xff] }
 0x3a5   :  { %8785 = vst [vmem:[#allocation27_spill] sm:$0xff] %v7018_v7  ;;  %v1895_v58 = vadd.f32 %v1894_v33, %v6895_v36  ;;  %8787 = vst [vmem:[#allocation29_spill] sm:$0xff] %v7023_v47  ;;  %v1919_v14 = vadd.f32 %v1918_v37, %v6854_v11  ;;  %v1955_v55 = vadd.f32 %v1954_v17, %v6943_v21  ;;  %v8793_v36 = vld [vmem:[#allocation26_spill] sm:$0xff] }
 0x3a6   :  { %8789 = vst [vmem:[#allocation31_spill] sm:$0xff] %v7029_v15  ;;  %v7038_v33 = vadd.f32 %v6793_v5, %v8791_v61  ;;  %v7044_v17 = vadd.f32 %v6801_v48, %v8793_v36  ;;  %v7048_v21 = vadd.f32 %v6801_v48, %v8794_v10  ;;  %v8797_v36 = vld [vmem:[#allocation34_spill] sm:$0xff] }
 0x3a7   :  { %v1896_v59 = vadd.f32 %v1895_v58, %v6898_v41  ;;  %v1920_v0 = vadd.f32 %v1919_v14, %v6857_v31  ;;  %v1956_v37 = vadd.f32 %v1955_v55, %v6947_v38  ;;  %v7053_v58 = vadd.f32 %v6801_v48, %v8795_v25  ;;  %v8796_v14 = vld [vmem:[#allocation32_spill] sm:$0xff] }
 0x3a8   :  { %8792 = vst [vmem:[#allocation33_spill] sm:$0xff] %v7038_v33  ;;  %v7059_v55 = vadd.f32 %v6801_v48, %v8796_v14  ;;  %v7063_v38 = vadd.f32 %v6801_v48, %v8797_v36 }
 0x3a9   :  { %v1897_v20 = vadd.f32 %v1896_v59, %v6901_v63  ;;  %v1921_v5 = vadd.f32 %v1920_v0, %v6860_v35  ;;  %v1957_v61 = vadd.f32 %v1956_v37, %v6956_v3  ;;  %v1932_v59 = vadd.f32 %v7008_v22, %v7003_v39 }
 0x3ab   :  { %v1898_v10 = vadd.f32 %v1897_v20, %v6904_v4  ;;  %v1922_v25 = vadd.f32 %v1921_v5, %v6863_v26  ;;  %v1958_v63 = vadd.f32 %v1957_v61, %v6961_v56  ;;  %v1933_v37 = vadd.f32 %v1932_v59, %v7014_v54 }
 0x3ad   :  { %v1899_v0 = vadd.f32 %v1898_v10, %v6907_v24  ;;  %v1923_v14 = vadd.f32 %v1922_v25, %v6865_v49  ;;  %v1959_v3 = vadd.f32 %v1958_v63, %v6965_v50  ;;  %v1934_v36 = vadd.f32 %v1933_v37, %v7018_v7 }
 0x3af   :  { %v1900_v48 = vadd.f32 %v1899_v0, %v6911_v32  ;;  %v1924_v20 = vadd.f32 %v1923_v14, %v6867_v51  ;;  %v1960_v22 = vadd.f32 %v1959_v3, %v6969_v1  ;;  %v1935_v61 = vadd.f32 %v1934_v36, %v7023_v47 }
 0x3b1   :  { %v1901_v5 = vadd.f32 %v1900_v48, %v6914_v45  ;;  %v1925_v10 = vadd.f32 %v1924_v20, %v6826_v40  ;;  %v1961_v59 = vadd.f32 %v1960_v22, %v6974_v12  ;;  %v1936_v63 = vadd.f32 %v1935_v61, %v7029_v15 }
 0x3b3   :  { %v1902_v25 = vadd.f32 %v1901_v5, %v6917_v62  ;;  %v1926_v54 = vrot.slane %v1925_v10, 4  ;;  %v1962_v0 = vadd.f32 %v1961_v59, %v6979_v27  ;;  %v1937_v14 = vadd.f32 %v1936_v63, %v7033_v29 }
 0x3b5   :  { %v1903_v37 = vadd.f32 %v1902_v25, %v6920_v23  ;;  %v1927_v3 = vadd.f32 %v1926_v54, %v1925_v10  ;;  %v1963_v48 = vadd.f32 %v1962_v0, %v6983_v43  ;;  %v1938_v20 = vadd.f32 %v1937_v14, %v7038_v33 }
 0x3b7   :  { %v1904_v36 = vadd.f32 %v1903_v37, %v6824_v34  ;;  %v1928_v47 = vrot.slane %v1927_v3, 2  ;;  %v1964_v22 = vadd.f32 %v1963_v48, %v6987_v53  ;;  %v1939_v61 = vadd.f32 %v1938_v20, %v7044_v17 }
 0x3b9   :  { %v1905_v5 = vrot.slane %v1904_v36, 4  ;;  %v1929_v15 = vadd.f32 %v1928_v47, %v1927_v3  ;;  %v1965_v59 = vadd.f32 %v1964_v22, %v6992_v60  ;;  %v1940_v25 = vadd.f32 %v1939_v61, %v7048_v21 }
 0x3bb   :  { %v1906_v7 = vadd.f32 %v1905_v5, %v1904_v36  ;;  %v1930_v63 = vrot.slane %v1929_v15, 1  ;;  %v1966_v54 = vadd.f32 %v1965_v59, %v6997_v42  ;;  %v1941_v0 = vadd.f32 %v1940_v25, %v7053_v58 }
 0x3bd   :  { %v1907_v10 = vrot.slane %v1906_v7, 2  ;;  %v1931_v37 = vadd.f32 %v1930_v63, %v1929_v15  ;;  %v7097_v14 = vadd.f32 %v1966_v54, %v6832_v46  ;;  %v1942_v48 = vadd.f32 %v1941_v0, %v7059_v55 }
 0x3bf   :  { %v1975_v33 = vmul.f32 0.0078125, %v1931_v37  ;;  %v1908_v20 = vadd.f32 %v1907_v10, %v1906_v7  ;;  %v7101_v47 = vadd.f32 %v1942_v48, %v7063_v38 }
 0x3c1   :  { %v7104_v3 = vsub.f32 %v6807_v13, %v1975_v33  ;;  %v7107_v36 = vsub.f32 %v6810_v52, %v1975_v33  ;;  %v7110_v22 = vsub.f32 %v6813_v6, %v1975_v33  ;;  %v7113_v15 = vsub.f32 %v6816_v9, %v1975_v33 }
 0x3c2   :  { %v7116_v5 = vsub.f32 %v6835_v2, %v1975_v33  ;;  %v7119_v7 = vsub.f32 %v6838_v8, %v1975_v33  ;;  %v7122_v61 = vsub.f32 %v6845_v44, %v1975_v33  ;;  %v7125_v13 = vsub.f32 %v6848_v30, %v1975_v33 }
 0x3c3   :  { %v7128_v52 = vsub.f32 %v6851_v18, %v1975_v33  ;;  %v7131_v6 = vsub.f32 %v6854_v11, %v1975_v33  ;;  %v7134_v9 = vsub.f32 %v6857_v31, %v1975_v33  ;;  %v7137_v2 = vsub.f32 %v6860_v35, %v1975_v33 }
 0x3c4   :  { %8798 = vst [vmem:[#allocation35_spill] sm:$0xff] %v7119_v7  ;;  %8799 = vst [vmem:[#allocation36_spill] sm:$0xff] %v7122_v61  ;;  %v7140_v8 = vsub.f32 %v6863_v26, %v1975_v33  ;;  %v7143_v44 = vsub.f32 %v6865_v49, %v1975_v33  ;;  %v7146_v30 = vsub.f32 %v6867_v51, %v1975_v33  ;;  %v1909_v35 = vrot.slane %v1908_v20, 1 }
 0x3c5   :  { %8800 = vst [vmem:[#allocation37_spill] sm:$0xff] %v7128_v52  ;;  %8801 = vst [vmem:[#allocation15_spill] sm:$0xff] %v7131_v6  ;;  %v7149_v18 = vsub.f32 %v6826_v40, %v1975_v33  ;;  %v2043_v11 = vmul.f32 %v7104_v3, %v7104_v3  ;;  %v2047_v31 = vmul.f32 %v7107_v36, %v7107_v36 }
 0x3c6   :  { %8802 = vst [vmem:[#allocation16_spill] sm:$0xff] %v7134_v9  ;;  %8803 = vst [vmem:[#allocation17_spill] sm:$0xff] %v7137_v2  ;;  %v2051_v26 = vmul.f32 %v7110_v22, %v7110_v22  ;;  %v1910_v25 = vadd.f32 %v1909_v35, %v1908_v20  ;;  %v2055_v49 = vmul.f32 %v7113_v15, %v7113_v15  ;;  %v8808_v20 = vld [vmem:[#allocation45_spill] sm:$0xff] }
 0x3c7   :  { %8804 = vst [vmem:[#allocation18_spill] sm:$0xff] %v7140_v8  ;;  %8805 = vst [vmem:[#allocation19_spill] sm:$0xff] %v7143_v44  ;;  %v2127_v59 = vadd.f32 %v2047_v31, %v2043_v11  ;;  %v2059_v40 = vmul.f32 %v7116_v5, %v7116_v5  ;;  %v2063_v33 = vmul.f32 %v7119_v7, %v7119_v7  ;;  %v8809_v31 = vld [vmem:[#allocation46_spill] sm:$0xff] }
 0x3c8   :  { %8806 = vst [vmem:[#allocation20_spill] sm:$0xff] %v7146_v30  ;;  %8807 = vst [vmem:[#allocation22_spill] sm:$0xff] %v7149_v18  ;;  %v1974_v63 = vmul.f32 0.0078125, %v1910_v25 }
 0x3c9   :  { %v2128_v51 = vadd.f32 %v2127_v59, %v2051_v26  ;;  %v8811_v26 = vld [vmem:[#allocation47_spill] sm:$0xff] }
 0x3ca   :  { %v7164_v10 = vsub.f32 %v6876_v28, %v1974_v63  ;;  %v7167_v0 = vsub.f32 %v6879_v57, %v1974_v63  ;;  %v7170_v37 = vsub.f32 %v6882_v19, %v1974_v63  ;;  %v7173_v48 = vsub.f32 %v6885_v16, %v1974_v63  ;;  %v8812_v57 = vld [vmem:[#allocation48_spill] sm:$0xff] }
 0x3cb   :  { %v2129_v54 = vadd.f32 %v2128_v51, %v2055_v49  ;;  %v7176_v11 = vsub.f32 %v8808_v20, %v1974_v63  ;;  %v7179_v35 = vsub.f32 %v8809_v31, %v1974_v63  ;;  %v7182_v59 = vsub.f32 %v8811_v26, %v1974_v63 }
 0x3cc   :  { %v7185_v25 = vsub.f32 %v6898_v41, %v1974_v63  ;;  %v7188_v49 = vsub.f32 %v8812_v57, %v1974_v63  ;;  %v7191_v19 = vsub.f32 %v6904_v4, %v1974_v63  ;;  %v7194_v16 = vsub.f32 %v6907_v24, %v1974_v63 }
 0x3cd   :  { %8810 = vst [vmem:[#allocation24_spill] sm:$0xff] %v7179_v35  ;;  %v2130_v28 = vadd.f32 %v2129_v54, %v2059_v40  ;;  %v7197_v51 = vsub.f32 %v6911_v32, %v1974_v63  ;;  %v7200_v20 = vsub.f32 %v6914_v45, %v1974_v63  ;;  %v7203_v40 = vsub.f32 %v6917_v62, %v1974_v63 }
 0x3ce   :  { %8813 = vst [vmem:[#allocation26_spill] sm:$0xff] %v7188_v49  ;;  %8814 = vst [vmem:[#allocation28_spill] sm:$0xff] %v7191_v19  ;;  %v2067_v41 = vmul.f32 %v7122_v61, %v7122_v61  ;;  %v7208_v31 = vsub.f32 %v6920_v23, %v1974_v63  ;;  %v7211_v4 = vsub.f32 %v6824_v34, %v1974_v63  ;;  %v1968_v23 = vrot.slane %v7097_v14, 4 }
 0x3cf   :  { %8815 = vst [vmem:[#allocation30_spill] sm:$0xff] %v7194_v16  ;;  %8816 = vst [vmem:[#allocation32_spill] sm:$0xff] %v7197_v51  ;;  %v2131_v54 = vadd.f32 %v2130_v28, %v2063_v33  ;;  %v2042_v24 = vmul.f32 %v7164_v10, %v7164_v10  ;;  %v2046_v32 = vmul.f32 %v7167_v0, %v7167_v0 }
 0x3d0   :  { %8817 = vst [vmem:[#allocation34_spill] sm:$0xff] %v7200_v20  ;;  %8818 = vst [vmem:[#allocation45_spill] sm:$0xff] %v7203_v40  ;;  %v2071_v45 = vmul.f32 %v7125_v13, %v7125_v13  ;;  %v2075_v26 = vmul.f32 %v7128_v52, %v7128_v52  ;;  %v2050_v34 = vmul.f32 %v7170_v37, %v7170_v37 }
 0x3d1   :  { %8819 = vst [vmem:[#allocation46_spill] sm:$0xff] %v7208_v31  ;;  %8820 = vst [vmem:[#allocation47_spill] sm:$0xff] %v7211_v4  ;;  %v2132_v62 = vadd.f32 %v2131_v54, %v2067_v41  ;;  %v2106_v63 = vadd.f32 %v2046_v32, %v2042_v24  ;;  %v2079_v28 = vmul.f32 %v7131_v6, %v7131_v6 }
 0x3d2   :  { %v2054_v61 = vmul.f32 %v7173_v48, %v7173_v48  ;;  %v2083_v41 = vmul.f32 %v7134_v9, %v7134_v9  ;;  %v2087_v24 = vmul.f32 %v7137_v2, %v7137_v2 }
 0x3d3   :  { %v2133_v33 = vadd.f32 %v2132_v62, %v2071_v45  ;;  %v2107_v7 = vadd.f32 %v2106_v63, %v2050_v34  ;;  %v1969_v45 = vadd.f32 %v1968_v23, %v7097_v14  ;;  %v2058_v62 = vmul.f32 %v7176_v11, %v7176_v11  ;;  %v8821_v34 = vld [vmem:[#allocation40_spill] sm:$0xff] }
 0x3d4   :  { %v1944_v63 = vadd.f32 %v7101_v47, %v8821_v34 }
 0x3d5   :  { %v2134_v57 = vadd.f32 %v2133_v33, %v2075_v26  ;;  %v2108_v52 = vadd.f32 %v2107_v7, %v2054_v61  ;;  %v1970_v6 = vrot.slane %v1969_v45, 2  ;;  %v2062_v26 = vmul.f32 %v7179_v35, %v7179_v35 }
 0x3d6   :  { %v2066_v7 = vmul.f32 %v7182_v59, %v7182_v59 }
 0x3d7   :  { %v2135_v54 = vadd.f32 %v2134_v57, %v2079_v28  ;;  %v2109_v33 = vadd.f32 %v2108_v52, %v2058_v62  ;;  %v2091_v28 = vmul.f32 %v7140_v8, %v7140_v8  ;;  %v1971_v23 = vadd.f32 %v1970_v6, %v1969_v45  ;;  %v8822_v57 = vld [vmem:[#allocation41_spill] sm:$0xff]  ;;  %v8823_v62 = vld [vmem:[#allocation42_spill] sm:$0xff] }
 0x3d8   :  { %v1945_v2 = vadd.f32 %v1944_v63, %v8822_v57  ;;  %v2070_v52 = vmul.f32 %v7185_v25, %v7185_v25  ;;  %v2099_v6 = vmul.f32 %v7146_v30, %v7146_v30 }
 0x3d9   :  { %v2136_v32 = vadd.f32 %v2135_v54, %v2083_v41  ;;  %v2110_v61 = vadd.f32 %v2109_v33, %v2062_v26  ;;  %v2095_v41 = vmul.f32 %v7143_v44, %v7143_v44  ;;  %v1972_v9 = vrot.slane %v1971_v23, 1 }
 0x3da   :  { %v1946_v35 = vadd.f32 %v1945_v2, %v8823_v62  ;;  %v2103_v33 = vmul.f32 %v7149_v18, %v7149_v18  ;;  %v2082_v2 = vmul.f32 %v7194_v16, %v7194_v16  ;;  %v8832_v16 = vld [vmem:[#allocation55_spill] sm:$0xff] }
 0x3db   :  { %v2137_v14 = vadd.f32 %v2136_v32, %v2087_v24  ;;  %v2111_v47 = vadd.f32 %v2110_v61, %v2066_v7  ;;  %v1973_v24 = vadd.f32 %v1972_v9, %v1971_v23  ;;  %v2074_v32 = vmul.f32 %v7188_v49, %v7188_v49  ;;  %v7508_v49 = vld [vmem:[#allocation7 + $0x5a8] sm:$0xff] }
 0x3dc   :  { %v2086_v7 = vmul.f32 %v7197_v51, %v7197_v51  ;;  %v1947_v9 = vrot.slane %v1946_v35, 4  ;;  %v8834_v51 = vld [vmem:[#allocation21_spill] sm:$0xff]  ;;  %8871 = vst [vmem:[#allocation72_spill] sm:$0xff] %v7508_v49  ;;  %v7609_v49 = vld [vmem:[#allocation7 + $0x6a8] sm:$0xff] }
 0x3dd   :  { %v2138_v54 = vadd.f32 %v2137_v14, %v2091_v28  ;;  %v2112_v26 = vadd.f32 %v2111_v47, %v2070_v52  ;;  %v2078_v28 = vmul.f32 %v7191_v19, %v7191_v19  ;;  %v1977_v14 = vmul.f32 0.0078125, %v1973_v24  ;;  %v8826_v52 = vld [vmem:[#allocation50_spill] sm:$0xff]  ;;  %8882 = vst [vmem:[#allocation81_spill] sm:$0xff] %v7609_v49 }
 0x3de   :  { %v8830_v24 = vld [vmem:[#allocation54_spill] sm:$0xff] }
 0x3df   :  { %v2139_v45 = vadd.f32 %v2138_v54, %v2095_v41  ;;  %v2113_v61 = vadd.f32 %v2112_v26, %v2074_v32  ;;  %v8824_v41 = vld [vmem:[#allocation49_spill] sm:$0xff]  ;;  %v7265_v47 = vsub.f32 %v8826_v52, %v1977_v14  ;;  %v7271_v30 = vsub.f32 %v8830_v24, %v1977_v14  ;;  %v7494_v19 = vld [vmem:[#allocation7 + $0x580] sm:$0xff] }
 0x3e0   :  { %v7262_v54 = vsub.f32 %v8824_v41, %v1977_v14  ;;  %v7274_v44 = vsub.f32 %v8832_v16, %v1977_v14  ;;  %v7277_v32 = vsub.f32 %v8834_v51, %v1977_v14  ;;  %v7286_v41 = vsub.f32 %v6969_v1, %v1977_v14  ;;  %8869 = vst [vmem:[#allocation70_spill] sm:$0xff] %v7494_v19 }
 0x3e1   :  { %v2140_v63 = vadd.f32 %v2139_v45, %v2099_v6  ;;  %8827 = vst [vmem:[#allocation40_spill] sm:$0xff] %v7265_v47  ;;  %v8828_v6 = vld [vmem:[#allocation53_spill] sm:$0xff]  ;;  %v2114_v18 = vadd.f32 %v2113_v61, %v2078_v28  ;;  %8831 = vst [vmem:[#allocation42_spill] sm:$0xff] %v7271_v30  ;;  %v7289_v61 = vsub.f32 %v6974_v12, %v1977_v14 }
 0x3e2   :  { %8825 = vst [vmem:[#allocation48_spill] sm:$0xff] %v7262_v54  ;;  %v7268_v45 = vsub.f32 %v8828_v6, %v1977_v14  ;;  %8833 = vst [vmem:[#allocation49_spill] sm:$0xff] %v7274_v44  ;;  %v7292_v16 = vsub.f32 %v6979_v27, %v1977_v14  ;;  %v7295_v51 = vsub.f32 %v6983_v43, %v1977_v14 }
 0x3e3   :  { %v2141_v23 = vadd.f32 %v2140_v63, %v2103_v33  ;;  %8835 = vst [vmem:[#allocation50_spill] sm:$0xff] %v7277_v32  ;;  %v7280_v33 = vsub.f32 %v6961_v56, %v1977_v14  ;;  %v7283_v63 = vsub.f32 %v6965_v50, %v1977_v14  ;;  %8838 = vst [vmem:[#allocation55_spill] sm:$0xff] %v7286_v41 }
 0x3e4   :  { %8829 = vst [vmem:[#allocation41_spill] sm:$0xff] %v7268_v45  ;;  %v2115_v28 = vadd.f32 %v2114_v18, %v2082_v2  ;;  %8839 = vst [vmem:[#allocation21_spill] sm:$0xff] %v7289_v61  ;;  %v7298_v56 = vsub.f32 %v6987_v53, %v1977_v14  ;;  %v7301_v50 = vsub.f32 %v6992_v60, %v1977_v14 }
 0x3e5   :  { %v2142_v26 = vrot.slane %v2141_v23, 4  ;;  %8836 = vst [vmem:[#allocation53_spill] sm:$0xff] %v7280_v33  ;;  %8837 = vst [vmem:[#allocation54_spill] sm:$0xff] %v7283_v63  ;;  %v7304_v1 = vsub.f32 %v6997_v42, %v1977_v14  ;;  %v2090_v12 = vmul.f32 %v7200_v20, %v7200_v20  ;;  %v7309_v27 = vsub.f32 %v6832_v46, %v1977_v14 }
 0x3e6   :  { %8840 = vst [vmem:[#allocation56_spill] sm:$0xff] %v7292_v16  ;;  %8841 = vst [vmem:[#allocation57_spill] sm:$0xff] %v7295_v51  ;;  %v2116_v18 = vadd.f32 %v2115_v28, %v2086_v7  ;;  %v2045_v43 = vmul.f32 %v7262_v54, %v7262_v54  ;;  %v2049_v53 = vmul.f32 %v7265_v47, %v7265_v47 }
 0x3e7   :  { %v2143_v52 = vadd.f32 %v2142_v26, %v2141_v23  ;;  %8842 = vst [vmem:[#allocation58_spill] sm:$0xff] %v7298_v56  ;;  %v2094_v60 = vmul.f32 %v7203_v40, %v7203_v40  ;;  %v1948_v42 = vadd.f32 %v1947_v9, %v1946_v35  ;;  %v2098_v24 = vmul.f32 %v7208_v31, %v7208_v31  ;;  %v7462_v31 = vld [vmem:[#allocation7 + $0x520] sm:$0xff] }
 0x3e8   :  { %v2117_v23 = vadd.f32 %v2116_v18, %v2090_v12  ;;  %v2169_v46 = vadd.f32 %v2049_v53, %v2045_v43  ;;  %v2102_v14 = vmul.f32 %v7211_v4, %v7211_v4  ;;  %v2053_v47 = vmul.f32 %v7268_v45, %v7268_v45  ;;  %v7328_v43 = vld [vmem:[%s8590_s5 + $0x4] sm:$0xf]  ;;  %v7460_v45 = vld [vmem:[#allocation7 + $0x500] sm:$0xff] }
 0x3e9   :  { %v2144_v2 = vrot.slane %v2143_v52, 2  ;;  %v1949_v54 = vrot.slane %v1948_v42, 2  ;;  %8843 = vst [vmem:[#allocation59_spill] sm:$0xff] %v7328_v43  ;;  %v7470_v4 = vld [vmem:[#allocation7 + $0x540] sm:$0xff] }
 0x3ea   :  { %v2118_v7 = vadd.f32 %v2117_v23, %v2094_v60  ;;  %v2170_v35 = vadd.f32 %v2169_v46, %v2053_v47  ;;  %v2061_v47 = vmul.f32 %v7274_v44, %v7274_v44  ;;  %v7438_v44 = vld [vmem:[#allocation7 + $0x4a8] sm:$0xff] }
 0x3eb   :  { %v2145_v6 = vadd.f32 %v2144_v2, %v2143_v52  ;;  %v1950_v40 = vadd.f32 %v1949_v54, %v1948_v42  ;;  %v2057_v2 = vmul.f32 %v7271_v30, %v7271_v30  ;;  %v8844_v54 = vld [vmem:[#allocation14_spill] sm:$0xff] }
 0x3ec   :  { %v2119_v28 = vadd.f32 %v2118_v7, %v2098_v24  ;;  %v7440_v30 = vld [vmem:[#allocation7 + $0x4c0] sm:$0xff] }
 0x3ed   :  { %v2146_v26 = vrot.slane %v2145_v6, 1  ;;  %v1951_v52 = vrot.slane %v1950_v40, 1  ;;  %v2171_v23 = vadd.f32 %v2170_v35, %v2057_v2  ;;  %v8850_v35 = vld [vmem:[#allocation29_spill] sm:$0xff] }
 0x3ee   :  { %v2120_v8 = vadd.f32 %v2119_v28, %v2102_v14  ;;  %v8848_v14 = vld [vmem:[#allocation25_spill] sm:$0xff]  ;;  %v8849_v28 = vld [vmem:[#allocation27_spill] sm:$0xff] }
 0x3ef   :  { %v2147_v20 = vadd.f32 %v2146_v26, %v2145_v6  ;;  %v1952_v60 = vadd.f32 %v1951_v52, %v1950_v40  ;;  %v8846_v26 = vld [vmem:[#allocation23_spill] sm:$0xff]  ;;  %v2172_v40 = vadd.f32 %v2171_v23, %v2061_v47  ;;  %v2065_v23 = vmul.f32 %v7277_v32, %v7277_v32 }
 0x3f0   :  { %v2121_v9 = vrot.slane %v2120_v8, 4  ;;  %v8851_v52 = vld [vmem:[#allocation31_spill] sm:$0xff] }
 0x3f1   :  { %v2191_v12 = vmul.f32 0.0078125, %v2147_v20  ;;  %v1976_v24 = vmul.f32 0.0078125, %v1952_v60  ;;  %v2210_v20 = vrot.slane %v7328_v43, %v8844_v54  ;;  %v7406_v32 = vld [vmem:[#allocation7 + $0x448] sm:$0xff] }
 0x3f2   :  { %v2122_v53 = vadd.f32 %v2121_v9, %v2120_v8 }
 0x3f3   :  { %v2195_v18 = vadd.f32 1e-05, %v2191_v12  ;;  %v7335_v7 = vsub.f32 %v7003_v39, %v1976_v24  ;;  %v7338_v46 = vsub.f32 %v8846_v26, %v1976_v24  ;;  %v7341_v8 = vsub.f32 %v8848_v14, %v1976_v24 }
 0x3f4   :  { %v2123_v6 = vrot.slane %v2122_v53, 2  ;;  %v7344_v12 = vsub.f32 %v8849_v28, %v1976_v24  ;;  %v7347_v9 = vsub.f32 %v8850_v35, %v1976_v24  ;;  %v7353_v39 = vsub.f32 %v7033_v29, %v1976_v24 }
 0x3f5   :  { %6158 = vrsqrt.f32 %v2195_v18  ;;  %8845 = vst [vmem:[#allocation60_spill] sm:$0xff] %v7335_v7  ;;  %8847 = vst [vmem:[#allocation23_spill] sm:$0xff] %v7338_v46  ;;  %v7350_v18 = vsub.f32 %v8851_v52, %v1976_v24  ;;  %v7364_v47 = vsub.f32 %v7048_v21, %v1976_v24  ;;  %v7367_v26 = vsub.f32 %v7053_v58, %v1976_v24 }
 0x3f6   :  { %v2124_v42 = vadd.f32 %v2123_v6, %v2122_v53  ;;  %v8852_v53 = vld [vmem:[#allocation33_spill] sm:$0xff]  ;;  %v7359_v6 = vsub.f32 %v7044_v17, %v1976_v24  ;;  %v7370_v14 = vsub.f32 %v7059_v55, %v1976_v24  ;;  %v7373_v28 = vsub.f32 %v7063_v38, %v1976_v24  ;;  %v7387_v55 = vld [vmem:[%s8590_s5 + $0x8] sm:$0xf] }
 0x3f7   :  { %v7356_v60 = vsub.f32 %v8852_v53, %v1976_v24  ;;  %8854 = vst [vmem:[#allocation27_spill] sm:$0xff] %v7364_v47  ;;  %8855 = vst [vmem:[#allocation29_spill] sm:$0xff] %v7367_v26  ;;  %v7376_v35 = vsub.f32 %v8821_v34, %v1976_v24  ;;  %v7379_v17 = vsub.f32 %v8822_v57, %v1976_v24  ;;  %v7490_v26 = vld [vmem:[#allocation7 + $0x548] sm:$0xff] }
 0x3f8   :  { %v2125_v2 = vrot.slane %v2124_v42, 1  ;;  %8853 = vst [vmem:[#allocation25_spill] sm:$0xff] %v7359_v6  ;;  %8856 = vst [vmem:[#allocation31_spill] sm:$0xff] %v7370_v14  ;;  %v7382_v52 = vsub.f32 %v8823_v62, %v1976_v24  ;;  %v2173_v53 = vadd.f32 %v2172_v40, %v2065_v23  ;;  %v2044_v38 = vmul.f32 %v7335_v7, %v7335_v7  ;;  %v8862_v40 = vld [vmem:[#allocation13_spill] sm:$0xff]  ;;  %v7402_v23 = vld [vmem:[#allocation7 + $0x440] sm:$0xff] }
 0x3f9   :  { %8857 = vst [vmem:[#allocation33_spill] sm:$0xff] %v7373_v28  ;;  %8858 = vst [vmem:[#allocation61_spill] sm:$0xff] %v7376_v35  ;;  %v2048_v34 = vmul.f32 %v7338_v46, %v7338_v46  ;;  %v2069_v62 = vmul.f32 %v7280_v33, %v7280_v33  ;;  %v7397_v24 = vrot.slane %v7387_v55, %v8844_v54  ;;  %v7416_v54 = vld [vmem:[#allocation7 + $0x468] sm:$0xff]  ;;  %v7420_v46 = vld [vmem:[#allocation7 + $0x4a0] sm:$0xff] }
 0x3fa   :  { %v2126_v29 = vadd.f32 %v2125_v2, %v2124_v42  ;;  %8859 = vst [vmem:[#allocation62_spill] sm:$0xff] %v7379_v17  ;;  %8860 = vst [vmem:[#allocation63_spill] sm:$0xff] %v7382_v52  ;;  %v7436_v33 = vld [vmem:[#allocation7 + $0x488] sm:$0xff]  ;;  %v7472_v35 = vld [vmem:[#allocation7 + $0x560] sm:$0xff] }
 0x3fb   :  { %8861 = vst [vmem:[#allocation64_spill] sm:$0xff] %v7387_v55  ;;  %v2174_v7 = vadd.f32 %v2173_v53, %v2069_v62  ;;  %v2073_v53 = vmul.f32 %v7283_v63, %v7283_v63  ;;  %v7428_v62 = vrot.slane %v7387_v55, %v8862_v40  ;;  %v7464_v52 = vld [vmem:[#allocation7 + $0x508] sm:$0xff]  ;;  %v7540_v6 = vld [vmem:[#allocation7 + $0x620] sm:$0xff] }
 0x3fc   :  { %v2190_v21 = vmul.f32 0.0078125, %v2126_v29  ;;  %v7404_v29 = vld [vmem:[#allocation7 + $0x460] sm:$0xff]  ;;  %8865 = vst [vmem:[#allocation66_spill] sm:$0xff] %v7464_v52  ;;  %v7506_v14 = vld [vmem:[#allocation7 + $0x588] sm:$0xff]  ;;  %8877 = vst [vmem:[#allocation78_spill] sm:$0xff] %v7540_v6 }
 0x3fd   :  { %v7585_v6 = vld [vmem:[#allocation7 + $0x648] sm:$0xff] }
 0x3fe   :  { %v2194_v57 = vadd.f32 1e-05, %v2190_v21  ;;  %v2206_v21 = vrot.slane %v7328_v43, %v8862_v40  ;;  %v7446_v43 = vld [vmem:[#allocation7 + $0x4e0] sm:$0xff] }
 0x3ff   :  { %v6159_v58 = vpop.eup %6158 }
 0x400   :  { %v2224_v42 = vmul.f32 %v6159_v58, %v2210_v20  ;;  %6160 = vrsqrt.f32 %v2194_v57  ;;  %v7408_v20 = vadd.f32 %v2048_v34, %v2044_v38  ;;  %v7418_v57 = vld [vmem:[#allocation7 + $0x480] sm:$0xff]  ;;  %v8863_v38 = vld [vmem:[#allocation39_spill] sm:$0xff] }
 0x402   :  { %v7400_v2 = vrot.slane %v2224_v42, %v8862_v40 }
 0x404   :  { %v2244_v58 = vmul.f32 %v7400_v2, %v7104_v3  ;;  %v2248_v42 = vmul.f32 %v7400_v2, %v7107_v36  ;;  %v7432_v3 = vrot.slane %v7387_v55, %v8863_v38  ;;  %v7448_v55 = vld [vmem:[#allocation7 + $0x4c8] sm:$0xff]  ;;  %v2175_v36 = vadd.f32 %v2174_v7, %v2073_v53 }
 0x405   :  { %v7468_v38 = vld [vmem:[#allocation7 + $0x528] sm:$0xff] }
 0x406   :  { %8864 = vst [vmem:[#allocation65_spill] sm:$0xff] %v7432_v3  ;;  %v2329_v63 = vadd.f32 %v7397_v24, %v2244_v58  ;;  %v2333_v34 = vadd.f32 %v7397_v24, %v2248_v42  ;;  %v7450_v3 = vld [vmem:[#allocation7 + $0x4e8] sm:$0xff]  ;;  %8866 = vst [vmem:[#allocation67_spill] sm:$0xff] %v7468_v38  ;;  %v2077_v58 = vmul.f32 %v7286_v41, %v7286_v41  ;;  %v7504_v41 = vld [vmem:[#allocation7 + $0x5a0] sm:$0xff] }
 0x407   :  { %v7492_v42 = vld [vmem:[#allocation7 + $0x568] sm:$0xff]  ;;  %8870 = vst [vmem:[#allocation71_spill] sm:$0xff] %v7504_v41 }
 0x408   :  { %v2393_v17 = vmax.f32 %v2329_v63, 0.0  ;;  %v2397_v7 = vmax.f32 %v2333_v34, 0.0  ;;  %8868 = vst [vmem:[#allocation69_spill] sm:$0xff] %v7492_v42  ;;  %v2176_v28 = vadd.f32 %v2175_v36, %v2077_v58  ;;  %v2252_v36 = vmul.f32 %v7400_v2, %v7110_v22  ;;  %v7518_v34 = vld [vmem:[#allocation7 + $0x5e0] sm:$0xff]  ;;  %v7528_v38 = vld [vmem:[#allocation7 + $0x5c8] sm:$0xff] }
 0x409   :  { %v2256_v58 = vmul.f32 %v7400_v2, %v7113_v15  ;;  %8873 = vst [vmem:[#allocation74_spill] sm:$0xff] %v7518_v34  ;;  %8874 = vst [vmem:[#allocation75_spill] sm:$0xff] %v7528_v38  ;;  %v7530_v15 = vld [vmem:[#allocation7 + $0x5e8] sm:$0xff] }
 0x40a   :  { %v7484_v53 = vpack.c.bf16 %v2397_v7, %v2393_v17  ;;  %v6161_v47 = vpop.eup %6160  ;;  %v7516_v17 = vld [vmem:[#allocation7 + $0x5c0] sm:$0xff]  ;;  %v2081_v7 = vmul.f32 %v7289_v61, %v7289_v61  ;;  %8875 = vst [vmem:[#allocation76_spill] sm:$0xff] %v7530_v15  ;;  %v7551_v41 = vld [vmem:[#allocation7 + $0x608] sm:$0xff]  ;;  %v2337_v19 = vadd.f32 %v7397_v24, %v2252_v36 }
 0x40b   :  { %8872 = vst [vmem:[#allocation73_spill] sm:$0xff] %v7516_v17  ;;  %v2223_v63 = vmul.f32 %v6161_v47, %v2206_v21  ;;  %v7538_v21 = vld [vmem:[#allocation7 + $0x600] sm:$0xff]  ;;  %v7553_v47 = vld [vmem:[#allocation7 + $0x628] sm:$0xff] }
 0x40c   :  { %8867 = vst [vmem:[#allocation68_spill] sm:$0xff] %v7484_v53  ;;  %4056 = vmatprep.mubr.bf16.mxu0 %v7484_v53  ;;  %4282 = vmatprep.mubr.bf16.mxu1 %v7484_v53  ;;  %8876 = vst [vmem:[#allocation77_spill] sm:$0xff] %v7538_v21  ;;  %v2177_v53 = vadd.f32 %v2176_v28, %v2081_v7  ;;  %v2341_v28 = vadd.f32 %v7397_v24, %v2256_v58  ;;  %v2401_v21 = vmax.f32 %v2337_v19, 0.0 }
 0x40d   :  { %v7543_v22 = vrot.slane %v2223_v63, %v8862_v40  ;;  %v2085_v7 = vmul.f32 %v7292_v16, %v7292_v16  ;;  %v7573_v40 = vld [vmem:[#allocation7 + $0x640] sm:$0xff]  ;;  %v7587_v63 = vld [vmem:[#allocation7 + $0x668] sm:$0xff]  ;;  %v2272_v19 = vmul.f32 %v7400_v2, %v7125_v13  ;;  %v8893_v13 = vcombine.high %v7402_v23, %v7404_v29 }
 0x40e   :  { %v7575_v16 = vld [vmem:[#allocation7 + $0x660] sm:$0xff]  ;;  %8879 = vst [vmem:[#allocation80_spill] sm:$0xff] %v7587_v63  ;;  %v2405_v15 = vmax.f32 %v2341_v28, 0.0  ;;  %v2093_v63 = vmul.f32 %v7298_v56, %v7298_v56  ;;  %v8890_v56 = vld [vmem:[#allocation52_spill] sm:$0xff] }
 0x40f   :  { %v2243_v52 = vmul.f32 %v7543_v22, %v7164_v10  ;;  %v2247_v61 = vmul.f32 %v7543_v22, %v7167_v0  ;;  %8878 = vst [vmem:[#allocation79_spill] sm:$0xff] %v7575_v16  ;;  %v2089_v10 = vmul.f32 %v7295_v51, %v7295_v51  ;;  %v2178_v0 = vadd.f32 %v2177_v53, %v2085_v7  ;;  %v8880_v53 = vld [vmem:[#allocation35_spill] sm:$0xff]  ;;  %v7593_v7 = vld [vmem:[#allocation7 + $0x680] sm:$0xff] }
 0x410   :  { %v2251_v36 = vmul.f32 %v7543_v22, %v7170_v37  ;;  %v2255_v58 = vmul.f32 %v7543_v22, %v7173_v48  ;;  %v2260_v51 = vmul.f32 %v7400_v2, %v7116_v5  ;;  %v7617_v16 = vpack.c.bf16 %v2405_v15, %v2401_v21  ;;  %v7631_v21 = vld [vmem:[#allocation7 + $0x6c0] sm:$0xff] }
 0x411   :  { %v2328_v34 = vadd.f32 %v7428_v62, %v2243_v52  ;;  %v2332_v42 = vadd.f32 %v7428_v62, %v2247_v61  ;;  %v2264_v52 = vmul.f32 %v7400_v2, %v8880_v53  ;;  %v7595_v61 = vld [vmem:[#allocation7 + $0x6a0] sm:$0xff]  ;;  %v7607_v53 = vld [vmem:[#allocation7 + $0x688] sm:$0xff] }
 0x412   :  { %8881 = vst [vmem:[#allocation35_spill] sm:$0xff] %v7607_v53  ;;  %v2336_v48 = vadd.f32 %v7428_v62, %v2251_v36  ;;  %v2340_v17 = vadd.f32 %v7428_v62, %v2255_v58  ;;  %8884 = vst [vmem:[#allocation83_spill] sm:$0xff] %v7617_v16  ;;  %v2345_v5 = vadd.f32 %v7397_v24, %v2260_v51  ;;  %v7633_v51 = vld [vmem:[#allocation7 + $0x6e0] sm:$0xff]  ;;  %v8885_v58 = vld [vmem:[#allocation43_spill] sm:$0xff] }
 0x413   :  { %v2392_v37 = vmax.f32 %v2328_v34, 0.0  ;;  %v2396_v38 = vmax.f32 %v2332_v42, 0.0  ;;  %v2179_v42 = vadd.f32 %v2178_v0, %v2089_v10  ;;  %v2349_v28 = vadd.f32 %v7397_v24, %v2264_v52  ;;  %v8886_v10 = vld [vmem:[#allocation44_spill] sm:$0xff]  ;;  %v7643_v36 = vld [vmem:[#allocation7 + $0x6c8] sm:$0xff] }
 0x414   :  { %v8887_v0 = vcombine.low %v8885_v58, %v8886_v10  ;;  %v8888_v52 = vld [vmem:[#allocation36_spill] sm:$0xff]  ;;  %v2400_v58 = vmax.f32 %v2336_v48, 0.0  ;;  %v2404_v10 = vmax.f32 %v2340_v17, 0.0  ;;  %v2101_v48 = vmul.f32 %v7304_v1, %v7304_v1 }
 0x415   :  { %v7611_v34 = vpack.c.bf16 %v2396_v38, %v2392_v37  ;;  %v2268_v37 = vmul.f32 %v7400_v2, %v8888_v52  ;;  %v7645_v38 = vld [vmem:[#allocation7 + $0x6e8] sm:$0xff]  ;;  %v2180_v15 = vadd.f32 %v2179_v42, %v2093_v63  ;;  %v8892_v52 = vld [vmem:[#allocation24_spill] sm:$0xff]  ;;  %v8894_v63 = vcombine.high %v7406_v32, %v7416_v54 }
 0x416   :  { %v2263_v53 = vmul.f32 %v7543_v22, %v8892_v52  ;;  %v2409_v42 = vmax.f32 %v2345_v5, 0.0  ;;  %v8895_v5 = vcombine.low %v7402_v23, %v7404_v29  ;;  %v2357_v52 = vadd.f32 %v7397_v24, %v2272_v19 }
 0x417   :  { %8883 = vst [vmem:[#allocation82_spill] sm:$0xff] %v7611_v34  ;;  %4057 = vmatmul.mubr.bf16.vlgmr.msra.gmra.mrb[52].mxu0 %v7611_v34  ;;  %4283 = vmatmul.mubr.bf16.vlgmr.msra.gmra.mrb[68].mxu1 %v7611_v34  ;;  %v8889_v34 = vld [vmem:[#allocation51_spill] sm:$0xff]  ;;  %v8896_v17 = vcombine.low %v7406_v32, %v7416_v54  ;;  %v8899_v19 = vcombine.high %v7436_v33, %v7438_v44 }
 0x418   :  { %4138 = vmatpush1.bf16.msra.mxu0 %v8887_v0  ;;  %4066 = vmatprep.mubr.bf16.mxu0 %v7617_v16  ;;  %v8891_v49 = vcombine.low %v8889_v34, %v8890_v56  ;;  %v2259_v0 = vmul.f32 %v7543_v22, %v7176_v11  ;;  %v2097_v56 = vmul.f32 %v7301_v50, %v7301_v50 }
 0x419   :  { %4292 = vmatprep.mubr.bf16.mxu1 %v7617_v16  ;;  %4139 = vmatprep.subr.bf16.mxu0 %v8893_v13  ;;  %v2413_v16 = vmax.f32 %v2349_v28, 0.0  ;;  %v2105_v34 = vmul.f32 %v7309_v27, %v7309_v27  ;;  %v2353_v28 = vadd.f32 %v7397_v24, %v2268_v37  ;;  %v7686_v11 = vpack.c.bf16 %v2404_v10, %v2400_v58 }
 0x41a   :  { %4364 = vmatpush1.bf16.msra.mxu1 %v8891_v49  ;;  %v2181_v13 = vadd.f32 %v2180_v15, %v2097_v56  ;;  %v8897_v49 = vcombine.high %v7418_v57, %v7420_v46  ;;  %v2344_v23 = vadd.f32 %v7428_v62, %v2259_v0  ;;  %v2348_v29 = vadd.f32 %v7428_v62, %v2263_v53  ;;  %v7702_v53 = vld [vmem:[#allocation7 + $0x700] sm:$0xff]  ;;  %v7714_v56 = vld [vmem:[#allocation7 + $0x708] sm:$0xff] }
 0x41b   :  { %4365 = vmatprep.subr.bf16.mxu1 %v8894_v63  ;;  %v2052_v63 = vmul.f32 %v7341_v8, %v7341_v8  ;;  %8898 = vst [vmem:[#allocation43_spill] sm:$0xff] %v7686_v11  ;;  %v7693_v15 = vpack.c.bf16 %v2413_v16, %v2409_v42  ;;  %v2056_v32 = vmul.f32 %v7344_v12, %v7344_v12  ;;  %v2421_v42 = vmax.f32 %v2357_v52, 0.0 }
 0x41c   :  { %4140 = vmatpush1.bf16.msra.mxu0 %v8895_v5  ;;  %v2182_v37 = vadd.f32 %v2181_v13, %v2101_v48  ;;  %v2060_v10 = vmul.f32 %v7347_v9, %v7347_v9  ;;  %v2064_v16 = vmul.f32 %v7350_v18, %v7350_v18  ;;  %v8901_v0 = vcombine.low %v7418_v57, %v7420_v46 }
 0x41d   :  { %4141 = vmatprep.subr.bf16.mxu0 %v8897_v49  ;;  %8900 = vst [vmem:[#allocation44_spill] sm:$0xff] %v7693_v15  ;;  %v2149_v54 = vadd.f32 %v7408_v20, %v2052_v63  ;;  %v2417_v20 = vmax.f32 %v2353_v28, 0.0  ;;  %v7712_v49 = vld [vmem:[#allocation7 + $0x720] sm:$0xff]  ;;  %v8902_v13 = vcombine.low %v7436_v33, %v7438_v44  ;;  %v2408_v46 = vmax.f32 %v2344_v23, 0.0  ;;  %v8906_v33 = vld [vmem:[#allocation15_spill] sm:$0xff] }
 0x41e   :  { %4366 = vmatpush1.bf16.msra.mxu1 %v8896_v17  ;;  %v7716_v17 = vld [vmem:[#allocation7 + $0x728] sm:$0xff]  ;;  %v2183_v48 = vadd.f32 %v2182_v37, %v2105_v34  ;;  %v2412_v57 = vmax.f32 %v2348_v29, 0.0  ;;  %v2267_v28 = vmul.f32 %v7543_v22, %v7182_v59  ;;  %v2271_v52 = vmul.f32 %v7543_v22, %v7185_v25  ;;  %v8922_v59 = vld [vmem:[#allocation28_spill] sm:$0xff] }
 0x41f   :  { %4367 = vmatprep.subr.bf16.mxu1 %v8899_v19  ;;  %4067 = vmatmul.mubr.bf16.gmra.mrb[56].mxu0 %v7686_v11  ;;  %v2150_v5 = vadd.f32 %v2149_v54, %v2056_v32  ;;  %v8903_v63 = vcombine.high %v7440_v30, %v7446_v43  ;;  %v8904_v34 = vcombine.high %v7448_v55, %v7450_v3  ;;  %v8905_v19 = vld [vmem:[#allocation37_spill] sm:$0xff] }
 0x420   :  { %4293 = vmatmul.mubr.bf16.gmra.mrb[72].mxu1 %v7686_v11  ;;  %4142 = vmatpush1.bf16.msra.mxu0 %v8901_v0  ;;  %v2276_v44 = vmul.f32 %v7400_v2, %v8905_v19  ;;  %v2280_v23 = vmul.f32 %v7400_v2, %v8906_v33  ;;  %v2184_v29 = vrot.slane %v2183_v48, 4  ;;  %v2068_v54 = vmul.f32 %v7353_v39, %v7353_v39  ;;  %v8948_v11 = vld [vmem:[#allocation74_spill] sm:$0xff] }
 0x421   :  { %4076 = vmatprep.mubr.bf16.mxu0 %v7693_v15  ;;  %4302 = vmatprep.mubr.bf16.mxu1 %v7693_v15  ;;  %v2151_v37 = vadd.f32 %v2150_v5, %v2060_v10  ;;  %v8907_v0 = vcombine.low %v7440_v30, %v7446_v43  ;;  %v2072_v10 = vmul.f32 %v7356_v60, %v7356_v60 }
 0x422   :  { %4368 = vmatpush1.bf16.msra.mxu1 %v8902_v13  ;;  %4143 = vmatprep.subr.bf16.mxu0 %v8903_v63  ;;  %v7747_v13 = vpack.c.bf16 %v2421_v42, %v2417_v20  ;;  %v2185_v63 = vadd.f32 %v2184_v29, %v2183_v48  ;;  %v8910_v19 = vcombine.high %v7460_v45, %v7462_v31  ;;  %v8912_v20 = vld [vmem:[#allocation66_spill] sm:$0xff]  ;;  %v8913_v42 = vld [vmem:[#allocation67_spill] sm:$0xff] }
 0x423   :  { %4369 = vmatprep.subr.bf16.mxu1 %v8904_v34  ;;  %v2152_v5 = vadd.f32 %v2151_v37, %v2064_v16  ;;  %v8909_v34 = vcombine.low %v7448_v55, %v7450_v3  ;;  %v7757_v33 = vpack.c.bf16 %v2412_v57, %v2408_v46  ;;  %v2352_v30 = vadd.f32 %v7428_v62, %v2267_v28  ;;  %v8915_v46 = vld [vmem:[#allocation16_spill] sm:$0xff]  ;;  %v8916_v28 = vld [vmem:[#allocation25_spill] sm:$0xff]  ;;  %v8917_v37 = vld [vmem:[#allocation27_spill] sm:$0xff] }
 0x424   :  { %4144 = vmatpush1.bf16.msra.mxu0 %v8907_v0  ;;  %8908 = vst [vmem:[#allocation36_spill] sm:$0xff] %v7747_v13  ;;  %v2356_v43 = vadd.f32 %v7428_v62, %v2271_v52  ;;  %v8914_v48 = vcombine.high %v8912_v20, %v8913_v42  ;;  %v2361_v16 = vadd.f32 %v7397_v24, %v2276_v44  ;;  %v2186_v55 = vrot.slane %v2185_v63, 2 }
 0x425   :  { %4145 = vmatprep.subr.bf16.mxu0 %v8910_v19  ;;  %8911 = vst [vmem:[#allocation51_spill] sm:$0xff] %v7757_v33  ;;  %v2365_v29 = vadd.f32 %v7397_v24, %v2280_v23  ;;  %v2153_v3 = vadd.f32 %v2152_v5, %v2068_v54  ;;  %v2284_v57 = vmul.f32 %v7400_v2, %v8915_v46  ;;  %v8919_v23 = vld [vmem:[#allocation17_spill] sm:$0xff]  ;;  %v7780_v5 = vld [vmem:[#allocation7 + $0x740] sm:$0xff]  ;;  %v2416_v32 = vmax.f32 %v2352_v30, 0.0 }
 0x426   :  { %4370 = vmatpush1.bf16.msra.mxu1 %v8909_v34  ;;  %v2076_v52 = vmul.f32 %v8916_v28, %v8916_v28  ;;  %v2080_v0 = vmul.f32 %v8917_v37, %v8917_v37  ;;  %v8918_v44 = vcombine.low %v7460_v45, %v7462_v31  ;;  %v2288_v54 = vmul.f32 %v7400_v2, %v8919_v23  ;;  %v7782_v34 = vld [vmem:[#allocation7 + $0x760] sm:$0xff] }
 0x427   :  { %4371 = vmatprep.subr.bf16.mxu1 %v8914_v48  ;;  %4077 = vmatmul.mubr.bf16.gmra.mrb[60].mxu0 %v7757_v33  ;;  %v2187_v19 = vadd.f32 %v2186_v55, %v2185_v63  ;;  %v2154_v48 = vadd.f32 %v2153_v3, %v2072_v10  ;;  %v8920_v46 = vcombine.low %v8912_v20, %v8913_v42  ;;  %v2420_v31 = vmax.f32 %v2356_v43, 0.0  ;;  %v8921_v45 = vld [vmem:[#allocation26_spill] sm:$0xff]  ;;  %v8924_v63 = vld [vmem:[#allocation69_spill] sm:$0xff] }
 0x428   :  { %4303 = vmatmul.mubr.bf16.gmra.mrb[76].mxu1 %v7757_v33  ;;  %4146 = vmatpush1.bf16.msra.mxu0 %v8918_v44  ;;  %v2275_v44 = vmul.f32 %v7543_v22, %v8921_v45  ;;  %v2279_v23 = vmul.f32 %v7543_v22, %v8922_v59  ;;  %v8923_v25 = vcombine.high %v7470_v4, %v7472_v35  ;;  %v2425_v55 = vmax.f32 %v2361_v16, 0.0  ;;  %v8927_v45 = vld [vmem:[#allocation31_spill] sm:$0xff]  ;;  %v8931_v30 = vld [vmem:[#allocation70_spill] sm:$0xff] }
 0x429   :  { %4086 = vmatprep.mubr.bf16.mxu0 %v7747_v13  ;;  %4312 = vmatprep.mubr.bf16.mxu1 %v7747_v13  ;;  %v8925_v10 = vcombine.high %v7490_v26, %v8924_v63  ;;  %v2429_v3 = vmax.f32 %v2365_v29, 0.0  ;;  %v2188_v20 = vrot.slane %v2187_v19, 1  ;;  %v2155_v42 = vadd.f32 %v2154_v48, %v2076_v52  ;;  %v8929_v52 = vld [vmem:[#allocation33_spill] sm:$0xff]  ;;  %v8932_v13 = vld [vmem:[#allocation71_spill] sm:$0xff] }
 0x42a   :  { %4372 = vmatpush1.bf16.msra.mxu1 %v8920_v46  ;;  %4147 = vmatprep.subr.bf16.mxu0 %v8923_v25  ;;  %v8926_v46 = vld [vmem:[#allocation29_spill] sm:$0xff]  ;;  %v2088_v25 = vmul.f32 %v8927_v45, %v8927_v45  ;;  %v8928_v58 = vcombine.low %v7470_v4, %v7472_v35  ;;  %v2369_v16 = vadd.f32 %v7397_v24, %v2284_v57 }
 0x42b   :  { %4373 = vmatprep.subr.bf16.mxu1 %v8925_v10  ;;  %v2084_v59 = vmul.f32 %v8926_v46, %v8926_v46  ;;  %v2189_v29 = vadd.f32 %v2188_v20, %v2187_v19  ;;  %v2092_v48 = vmul.f32 %v8929_v52, %v8929_v52  ;;  %v2156_v10 = vadd.f32 %v2155_v42, %v2080_v0  ;;  %v8943_v42 = vld [vmem:[#allocation20_spill] sm:$0xff] }
 0x42c   :  { %4148 = vmatpush1.bf16.msra.mxu0 %v8928_v58  ;;  %v8930_v43 = vcombine.low %v7490_v26, %v8924_v63  ;;  %v8933_v33 = vcombine.high %v8931_v30, %v8932_v13  ;;  %v7818_v15 = vpack.c.bf16 %v2420_v31, %v2416_v32  ;;  %v2360_v4 = vadd.f32 %v7428_v62, %v2275_v44  ;;  %v8935_v58 = vld [vmem:[#allocation72_spill] sm:$0xff]  ;;  %v8938_v32 = vld [vmem:[#allocation18_spill] sm:$0xff]  ;;  %v8939_v31 = vld [vmem:[#allocation61_spill] sm:$0xff] }
 0x42d   :  { %v2364_v35 = vadd.f32 %v7428_v62, %v2279_v23  ;;  %v8936_v57 = vcombine.high %v7506_v14, %v8935_v58  ;;  %v7825_v19 = vpack.c.bf16 %v2429_v3, %v2425_v55  ;;  %v2373_v0 = vadd.f32 %v7397_v24, %v2288_v54  ;;  %v8940_v23 = vld [vmem:[#allocation62_spill] sm:$0xff]  ;;  %v8942_v54 = vld [vmem:[#allocation19_spill] sm:$0xff] }
 0x42e   :  { %4374 = vmatpush1.bf16.msra.mxu1 %v8930_v43  ;;  %4149 = vmatprep.subr.bf16.mxu0 %v8933_v33  ;;  %8934 = vst [vmem:[#allocation52_spill] sm:$0xff] %v7818_v15  ;;  %v2193_v26 = vmul.f32 0.0078125, %v2189_v29  ;;  %v2157_v63 = vadd.f32 %v2156_v10, %v2084_v59  ;;  %v2292_v33 = vmul.f32 %v7400_v2, %v8938_v32 }
 0x42f   :  { %4375 = vmatprep.subr.bf16.mxu1 %v8936_v57  ;;  %8937 = vst [vmem:[#allocation24_spill] sm:$0xff] %v7825_v19  ;;  %4087 = vmatmul.mubr.bf16.gmra.mrb[64].mxu0 %v7818_v15  ;;  %v2096_v44 = vmul.f32 %v8939_v31, %v8939_v31  ;;  %v2100_v20 = vmul.f32 %v8940_v23, %v8940_v23  ;;  %v2424_v57 = vmax.f32 %v2360_v4, 0.0  ;;  %v2428_v32 = vmax.f32 %v2364_v35, 0.0  ;;  %v8953_v4 = vld [vmem:[#allocation34_spill] sm:$0xff]  ;;  %v8956_v31 = vld [vmem:[#allocation63_spill] sm:$0xff] }
 0x430   :  { %4313 = vmatmul.mubr.bf16.gmra.mrb[80].mxu1 %v7818_v15  ;;  %v8941_v55 = vcombine.low %v8931_v30, %v8932_v13  ;;  %4096 = vmatprep.mubr.bf16.mxu0 %v7825_v19  ;;  %v2296_v3 = vmul.f32 %v7400_v2, %v8942_v54  ;;  %v2300_v43 = vmul.f32 %v7400_v2, %v8943_v42  ;;  %v2197_v59 = vadd.f32 1e-05, %v2193_v26  ;;  %v8945_v13 = vld [vmem:[#allocation30_spill] sm:$0xff]  ;;  %v8947_v54 = vld [vmem:[#allocation73_spill] sm:$0xff]  ;;  %v8950_v26 = vld [vmem:[#allocation75_spill] sm:$0xff] }
 0x431   :  { %v2158_v29 = vadd.f32 %v2157_v63, %v2088_v25  ;;  %4322 = vmatprep.mubr.bf16.mxu1 %v7825_v19  ;;  %v8944_v10 = vcombine.low %v7506_v14, %v8935_v58  ;;  %v2283_v30 = vmul.f32 %v7543_v22, %v8945_v13  ;;  %v8949_v23 = vcombine.high %v8947_v54, %v8948_v11  ;;  %v8951_v25 = vld [vmem:[#allocation76_spill] sm:$0xff]  ;;  %v8954_v58 = vld [vmem:[#allocation45_spill] sm:$0xff]  ;;  %v8955_v13 = vld [vmem:[#allocation22_spill] sm:$0xff] }
 0x432   :  { %4150 = vmatpush1.bf16.msra.mxu0 %v8941_v55  ;;  %v8946_v55 = vld [vmem:[#allocation32_spill] sm:$0xff]  ;;  %v8952_v63 = vcombine.high %v8950_v26, %v8951_v25  ;;  %v2433_v42 = vmax.f32 %v2369_v16, 0.0  ;;  %v2437_v19 = vmax.f32 %v2373_v0, 0.0  ;;  %6162 = vrsqrt.f32 %v2197_v59  ;;  %v8958_v0 = vld [vmem:[#allocation46_spill] sm:$0xff]  ;;  %v8959_v59 = vld [vmem:[#allocation47_spill] sm:$0xff] }
 0x433   :  { %4376 = vmatpush1.bf16.msra.mxu1 %v8944_v10  ;;  %v2287_v15 = vmul.f32 %v7543_v22, %v8946_v55  ;;  %4151 = vmatprep.subr.bf16.mxu0 %v8949_v23  ;;  %v2159_v14 = vadd.f32 %v2158_v29, %v2092_v48  ;;  %v2291_v35 = vmul.f32 %v7543_v22, %v8953_v4 }
 0x434   :  { %4377 = vmatprep.subr.bf16.mxu1 %v8952_v63  ;;  %v2295_v10 = vmul.f32 %v7543_v22, %v8954_v58  ;;  %v2304_v55 = vmul.f32 %v7400_v2, %v8955_v13  ;;  %v2104_v23 = vmul.f32 %v8956_v31, %v8956_v31  ;;  %v8957_v52 = vcombine.low %v8947_v54, %v8948_v11  ;;  %v8961_v2 = vld [vmem:[#allocation77_spill] sm:$0xff]  ;;  %v8962_v58 = vld [vmem:[#allocation78_spill] sm:$0xff] }
 0x435   :  { %v2377_v16 = vadd.f32 %v7397_v24, %v2292_v33  ;;  %v2299_v48 = vmul.f32 %v7543_v22, %v8958_v0  ;;  %v2303_v29 = vmul.f32 %v7543_v22, %v8959_v59  ;;  %v2160_v63 = vadd.f32 %v2159_v14, %v2096_v44  ;;  %v8967_v59 = vld [vmem:[#allocation79_spill] sm:$0xff] }
 0x436   :  { %4152 = vmatpush1.bf16.msra.mxu0 %v8957_v52  ;;  %v8960_v4 = vcombine.low %v8950_v26, %v8951_v25  ;;  %v8963_v13 = vcombine.high %v8961_v2, %v8962_v58  ;;  %v7880_v31 = vpack.c.bf16 %v2428_v32, %v2424_v57  ;;  %v2368_v11 = vadd.f32 %v7428_v62, %v2283_v30  ;;  %v7891_v26 = vld [vmem:[#allocation7 + $0x748] sm:$0xff]  ;;  %v7906_v30 = vld [vmem:[#allocation7 + $0x7a0] sm:$0xff] }
 0x437   :  { %v2372_v52 = vadd.f32 %v7428_v62, %v2287_v15  ;;  %v8964_v33 = vcombine.high %v7551_v41, %v7553_v47  ;;  %v7887_v22 = vpack.c.bf16 %v2437_v19, %v2433_v42  ;;  %v2381_v44 = vadd.f32 %v7397_v24, %v2296_v3  ;;  %v7893_v25 = vld [vmem:[#allocation7 + $0x768] sm:$0xff] }
 0x438   :  { %4378 = vmatpush1.bf16.msra.mxu1 %v8960_v4  ;;  %4153 = vmatprep.subr.bf16.mxu0 %v8963_v13  ;;  %v2385_v54 = vadd.f32 %v7397_v24, %v2300_v43  ;;  %v2161_v57 = vadd.f32 %v2160_v63, %v2100_v20  ;;  %v2376_v15 = vadd.f32 %v7428_v62, %v2291_v35  ;;  %v7904_v43 = vld [vmem:[#allocation7 + $0x780] sm:$0xff]  ;;  %v2432_v35 = vmax.f32 %v2368_v11, 0.0  ;;  %v7928_v11 = vld [vmem:[#allocation7 + $0x788] sm:$0xff]  ;;  %v8978_v13 = vld [vmem:[#allocation81_spill] sm:$0xff] }
 0x439   :  { %4379 = vmatprep.subr.bf16.mxu1 %v8964_v33  ;;  %4097 = vmatmul.mubr.bf16.gmra.mrb[68].mxu0 %v7880_v31  ;;  %v2380_v32 = vadd.f32 %v7428_v62, %v2295_v10  ;;  %v2389_v19 = vadd.f32 %v7397_v24, %v2304_v55  ;;  %v8965_v3 = vcombine.low %v8961_v2, %v8962_v58  ;;  %v2436_v10 = vmax.f32 %v2372_v52, 0.0  ;;  %v7930_v52 = vld [vmem:[#allocation7 + $0x7a8] sm:$0xff] }
 0x43a   :  { %4323 = vmatmul.mubr.bf16.gmra.mrb[84].mxu1 %v7880_v31  ;;  %4106 = vmatprep.mubr.bf16.mxu0 %v7887_v22  ;;  %v2384_v20 = vadd.f32 %v7428_v62, %v2299_v48  ;;  %v2388_v42 = vadd.f32 %v7428_v62, %v2303_v29  ;;  %v2162_v14 = vadd.f32 %v2161_v57, %v2104_v23  ;;  %v8969_v62 = vld [vmem:[#allocation80_spill] sm:$0xff]  ;;  %v2441_v29 = vmax.f32 %v2377_v16, 0.0 }
 0x43b   :  { %4154 = vmatpush1.bf16.msra.mxu0 %v8965_v3  ;;  %4332 = vmatprep.mubr.bf16.mxu1 %v7887_v22  ;;  %v8966_v24 = vcombine.low %v7551_v41, %v7553_v47  ;;  %v5718_v55 = vcombine.high %v7780_v5, %v7782_v34  ;;  %v8968_v48 = vcombine.high %v7573_v40, %v8967_v59  ;;  %v2445_v63 = vmax.f32 %v2381_v44, 0.0 }
 0x43c   :  { %v8970_v23 = vcombine.high %v7585_v6, %v8969_v62  ;;  %v5720_v41 = vcombine.high %v7891_v26, %v7893_v25  ;;  %v2163_v47 = vrot.slane %v2162_v14, 4  ;;  %v2440_v4 = vmax.f32 %v2376_v15, 0.0  ;;  %v6163_v33 = vpop.eup %6162  ;;  %v7937_v15 = vld [vmem:[#allocation7 + $0x7e0] sm:$0xff] }
 0x43d   :  { %4380 = vmatpush1.bf16.msra.mxu1 %v8966_v24  ;;  %4155 = vmatprep.subr.bf16.mxu0 %v8968_v48  ;;  %v2444_v2 = vmax.f32 %v2380_v32, 0.0  ;;  %v2449_v58 = vmax.f32 %v2385_v54, 0.0  ;;  %v8971_v57 = vcombine.low %v7573_v40, %v8967_v59  ;;  %v2453_v16 = vmax.f32 %v2389_v19, 0.0  ;;  %v7935_v24 = vld [vmem:[#allocation7 + $0x7c0] sm:$0xff]  ;;  %v8974_v19 = vld [vmem:[#allocation59_spill] sm:$0xff] }
 0x43e   :  { %4381 = vmatprep.subr.bf16.mxu1 %v8970_v23  ;;  %v2448_v44 = vmax.f32 %v2384_v20, 0.0  ;;  %v2452_v3 = vmax.f32 %v2388_v42, 0.0  ;;  %v2164_v54 = vadd.f32 %v2163_v47, %v2162_v14  ;;  %v8972_v32 = vcombine.low %v7585_v6, %v8969_v62  ;;  %v8975_v20 = vld [vmem:[#allocation39_spill] sm:$0xff]  ;;  %v8992_v6 = vld [vmem:[#allocation53_spill] sm:$0xff] }
 0x43f   :  { %4156 = vmatpush1.bf16.msra.mxu0 %v8971_v57  ;;  %v8973_v48 = vcombine.high %v7593_v7, %v7595_v61  ;;  %v7945_v23 = vpack.c.bf16 %v2436_v10, %v2432_v35  ;;  %v8976_v42 = vrot.slane %v8974_v19, %v8975_v20  ;;  %v8977_v57 = vld [vmem:[#allocation35_spill] sm:$0xff]  ;;  %v7955_v47 = vpack.c.bf16 %v2445_v63, %v2441_v29  ;;  %v8984_v29 = vld [vmem:[#allocation40_spill] sm:$0xff] }
 0x440   :  { %v8979_v14 = vcombine.high %v8977_v57, %v8978_v13  ;;  %v2165_v10 = vrot.slane %v2164_v54, 2  ;;  %v7963_v62 = vpack.c.bf16 %v2444_v2, %v2440_v4  ;;  %v8981_v63 = vcombine.low %v7593_v7, %v7595_v61  ;;  %v8983_v2 = vld [vmem:[#allocation48_spill] sm:$0xff]  ;;  %v8985_v61 = vld [vmem:[#allocation41_spill] sm:$0xff] }
 0x441   :  { %4382 = vmatpush1.bf16.msra.mxu1 %v8972_v32  ;;  %4157 = vmatprep.subr.bf16.mxu0 %v8973_v48  ;;  %v2226_v59 = vmul.f32 %v6163_v33, %v8976_v42  ;;  %v8980_v33 = vld [vmem:[#allocation13_spill] sm:$0xff]  ;;  %v7974_v48 = vpack.c.bf16 %v2453_v16, %v2449_v58  ;;  %v7976_v42 = vpack.c.bf16 %v2452_v3, %v2448_v44 }
 0x442   :  { %4383 = vmatprep.subr.bf16.mxu1 %v8979_v14  ;;  %4107 = vmatmul.mubr.bf16.gmra.mrb[72].mxu0 %v7945_v23  ;;  %v2166_v14 = vadd.f32 %v2165_v10, %v2164_v54  ;;  %v8982_v4 = vcombine.low %v8977_v57, %v8978_v13  ;;  %v8986_v58 = vcombine.high %v7631_v21, %v7633_v51  ;;  %v8988_v13 = vld [vmem:[#allocation42_spill] sm:$0xff]  ;;  %v8989_v54 = vld [vmem:[#allocation49_spill] sm:$0xff] }
 0x443   :  { %4333 = vmatmul.mubr.bf16.gmra.mrb[88].mxu1 %v7945_v23  ;;  %v7966_v32 = vrot.slane %v2226_v59, %v8980_v33  ;;  %4158 = vmatpush1.bf16.msra.mxu0 %v8981_v63  ;;  %v8987_v16 = vcombine.high %v7643_v36, %v7645_v38  ;;  %v8990_v10 = vld [vmem:[#allocation50_spill] sm:$0xff] }
 0x444   :  { %4116 = vmatprep.mubr.bf16.mxu0 %v7955_v47  ;;  %4342 = vmatprep.mubr.bf16.mxu1 %v7955_v47  ;;  %v2167_v44 = vrot.slane %v2166_v14, 1 }
 0x445   :  { %4384 = vmatpush1.bf16.msra.mxu1 %v8982_v4  ;;  %v2246_v59 = vmul.f32 %v7966_v32, %v8983_v2  ;;  %v2250_v7 = vmul.f32 %v7966_v32, %v8984_v29  ;;  %v2254_v63 = vmul.f32 %v7966_v32, %v8985_v61  ;;  %4159 = vmatprep.subr.bf16.mxu0 %v8986_v58  ;;  %v8991_v4 = vld [vmem:[#allocation65_spill] sm:$0xff] }
 0x446   :  { %4385 = vmatprep.subr.bf16.mxu1 %v8987_v16  ;;  %v2258_v3 = vmul.f32 %v7966_v32, %v8988_v13  ;;  %v2262_v57 = vmul.f32 %v7966_v32, %v8989_v54  ;;  %v2266_v29 = vmul.f32 %v7966_v32, %v8990_v10  ;;  %v2270_v35 = vmul.f32 %v7966_v32, %v8992_v6 }
 0x447   :  { %v2331_v2 = vadd.f32 %v8991_v4, %v2246_v59  ;;  %v2335_v61 = vadd.f32 %v8991_v4, %v2250_v7  ;;  %v2339_v58 = vadd.f32 %v8991_v4, %v2254_v63  ;;  %v8993_v16 = vcombine.low %v7631_v21, %v7633_v51  ;;  %v8996_v21 = vld [vmem:[#allocation54_spill] sm:$0xff] }
 0x448   :  { %v2168_v13 = vadd.f32 %v2167_v44, %v2166_v14  ;;  %v2343_v40 = vadd.f32 %v8991_v4, %v2258_v3  ;;  %v2347_v54 = vadd.f32 %v8991_v4, %v2262_v57  ;;  %v2351_v10 = vadd.f32 %v8991_v4, %v2266_v29 }
 0x449   :  { %4160 = vmatpush1.bf16.msra.mxu0 %v8993_v16  ;;  %v8994_v59 = vcombine.low %v7643_v36, %v7645_v38  ;;  %v8995_v7 = vcombine.high %v7702_v53, %v7712_v49  ;;  %v2395_v6 = vmax.f32 %v2331_v2, 0.0  ;;  %v2399_v63 = vmax.f32 %v2335_v61, 0.0 }
 0x44a   :  { %v2403_v0 = vmax.f32 %v2339_v58, 0.0  ;;  %v2274_v51 = vmul.f32 %v7966_v32, %v8996_v21  ;;  %v8997_v14 = vcombine.high %v7714_v56, %v7716_v17  ;;  %v2192_v44 = vmul.f32 0.0078125, %v2168_v13  ;;  %4117 = vmatmul.mubr.bf16.gmra.mrb[76].mxu0 %v7963_v62  ;;  %v8999_v13 = vld [vmem:[#allocation55_spill] sm:$0xff] }
 0x44b   :  { %4386 = vmatpush1.bf16.msra.mxu1 %v8994_v59  ;;  %4161 = vmatprep.subr.bf16.mxu0 %v8995_v7  ;;  %v2407_v3 = vmax.f32 %v2343_v40, 0.0  ;;  %v2411_v57 = vmax.f32 %v2347_v54, 0.0  ;;  %v2415_v29 = vmax.f32 %v2351_v10, 0.0  ;;  %v8024_v38 = vpack.c.bf16 %v2399_v63, %v2395_v6  ;;  %v9002_v7 = vld [vmem:[#allocation56_spill] sm:$0xff]  ;;  %v9004_v63 = vld [vmem:[#allocation58_spill] sm:$0xff] }
 0x44c   :  { %4387 = vmatprep.subr.bf16.mxu1 %v8997_v14  ;;  %4343 = vmatmul.mubr.bf16.gmra.mrb[92].mxu1 %v7963_v62  ;;  %v2355_v36 = vadd.f32 %v8991_v4, %v2270_v35  ;;  %v2359_v2 = vadd.f32 %v8991_v4, %v2274_v51  ;;  %v8998_v61 = vcombine.low %v7702_v53, %v7712_v49  ;;  %v2196_v58 = vadd.f32 1e-05, %v2192_v44  ;;  %v9001_v53 = vld [vmem:[#allocation21_spill] sm:$0xff]  ;;  %v2737_v51 = vld [vmem:[#allocation7 + $0x7c8] sm:$0xff] }
 0x44d   :  { %4126 = vmatprep.mubr.bf16.mxu0 %v7974_v48  ;;  %v8032_v40 = vpack.c.bf16 %v2407_v3, %v2403_v0  ;;  %v8034_v16 = vpack.c.bf16 %v2415_v29, %v2411_v57  ;;  %v2278_v54 = vmul.f32 %v7966_v32, %v8999_v13  ;;  %4352 = vmatprep.mubr.bf16.mxu1 %v7974_v48  ;;  %v2741_v14 = vld [vmem:[#allocation7 + $0x7e8] sm:$0xff] }
 0x44e   :  { %4162 = vmatpush1.bf16.msra.mxu0 %v8998_v61  ;;  %v9000_v35 = vcombine.low %v7714_v56, %v7716_v17  ;;  %v2419_v10 = vmax.f32 %v2355_v36, 0.0  ;;  %v2423_v59 = vmax.f32 %v2359_v2, 0.0  ;;  %v2282_v49 = vmul.f32 %v7966_v32, %v9001_v53  ;;  %v9003_v17 = vld [vmem:[#allocation57_spill] sm:$0xff] }
 0x44f   :  { %v2286_v0 = vmul.f32 %v7966_v32, %v9002_v7  ;;  %4163 = vmatprep.subr.bf16.mxu0 %v5718_v55  ;;  %6164 = vrsqrt.f32 %v2196_v58  ;;  %v2363_v56 = vadd.f32 %v8991_v4, %v2278_v54  ;;  %v2290_v6 = vmul.f32 %v7966_v32, %v9003_v17 }
 0x450   :  { %4388 = vmatpush1.bf16.msra.mxu1 %v9000_v35  ;;  %v2294_v21 = vmul.f32 %v7966_v32, %v9004_v63  ;;  %v8057_v44 = vpack.c.bf16 %v2423_v59, %v2419_v10  ;;  %v2367_v3 = vadd.f32 %v8991_v4, %v2282_v49  ;;  %v9005_v57 = vcombine.low %v7780_v5, %v7782_v34  ;;  %v8082_v10 = vld [vmem:[#allocation7 + $0x10] sm:$0xff]  ;;  %v8089_v49 = vld [vmem:[#allocation7 + $0x18] sm:$0xff] }
 0x451   :  { %4389 = vmatprep.subr.bf16.mxu1 %v5720_v41  ;;  %v2371_v55 = vadd.f32 %v8991_v4, %v2286_v0  ;;  %v2298_v41 = vmul.f32 %v7966_v32, %v7301_v50  ;;  %v2427_v29 = vmax.f32 %v2363_v56, 0.0  ;;  %v2375_v36 = vadd.f32 %v8991_v4, %v2290_v6  ;;  %v9009_v56 = vld [vmem:[#allocation38_spill] sm:$0xff] }
 0x452   :  { %4164 = vmatpush1.bf16.msra.mxu0 %v9005_v57  ;;  %v2379_v2 = vadd.f32 %v8991_v4, %v2294_v21  ;;  %v2302_v61 = vmul.f32 %v7966_v32, %v7304_v1  ;;  %v9006_v58 = vcombine.low %v7891_v26, %v7893_v25  ;;  %v9007_v13 = vcombine.high %v7904_v43, %v7906_v30  ;;  %v8084_v26 = vld [vmem:[#allocation7 + $0x30] sm:$0xff] }
 0x453   :  { %v2431_v50 = vmax.f32 %v2367_v3, 0.0  ;;  %v2435_v54 = vmax.f32 %v2371_v55, 0.0  ;;  %v2383_v5 = vadd.f32 %v8991_v4, %v2298_v41  ;;  %v2306_v34 = vmul.f32 %v7966_v32, %v7309_v27  ;;  %4127 = vmatmul.mubr.bf16.gmra.mrb[80].mxu0 %v7976_v42  ;;  %v8091_v27 = vld [vmem:[#allocation7 + $0x38] sm:$0xff] }
 0x454   :  { %4390 = vmatpush1.bf16.msra.mxu1 %v9006_v58  ;;  %4165 = vmatprep.subr.bf16.mxu0 %v9007_v13  ;;  %v9008_v35 = vcombine.high %v7928_v11, %v7930_v52  ;;  %v5736_v1 = vcombine.high %v2737_v51, %v2741_v14  ;;  %v2439_v25 = vmax.f32 %v2375_v36, 0.0  ;;  %v2443_v59 = vmax.f32 %v2379_v2, 0.0  ;;  %v8127_v36 = vld [vmem:[#allocation7 + $0x78] sm:$0xff]  ;;  %v8129_v2 = vld [vmem:[#allocation7 + $0x90] sm:$0xff] }
 0x455   :  { %v2387_v53 = vadd.f32 %v8991_v4, %v2302_v61  ;;  %4353 = vmatmul.mubr.bf16.gmra.mrb[96].mxu1 %v7976_v42  ;;  %v8093_v32 = vpack.c.bf16 %v2431_v50, %v2427_v29  ;;  %v2447_v7 = vmax.f32 %v2383_v5, 0.0  ;;  %v2391_v0 = vadd.f32 %v8991_v4, %v2306_v34  ;;  %4169 = vmatprep.mubr.bf16.mxu0 %v8024_v38  ;;  %v8119_v29 = vld [vmem:[#allocation7 + $0x50] sm:$0xff]  ;;  %v8133_v61 = vld [vmem:[#allocation7 + $0x98] sm:$0xff] }
 0x456   :  { %4391 = vmatprep.subr.bf16.mxu1 %v9008_v35  ;;  %v2214_v17 = vrot.slane %v8974_v19, %v9009_v56  ;;  %v9010_v6 = vcombine.low %v7904_v43, %v7906_v30  ;;  %v5733_v63 = vcombine.low %v7935_v24, %v7937_v15  ;;  %v8104_v21 = vpack.c.bf16 %v2439_v25, %v2435_v54  ;;  %v8135_v58 = vld [vmem:[#allocation7 + $0xb8] sm:$0xff]  ;;  %v9013_v13 = vld [vmem:[#allocation64_spill] sm:$0xff] }
 0x457   :  { %v2451_v3 = vmax.f32 %v2387_v53, 0.0  ;;  %v9011_v55 = vcombine.low %v7928_v11, %v7930_v52  ;;  %4395 = vmatprep.mubr.bf16.mxu1 %v8024_v38  ;;  %v5735_v4 = vcombine.low %v2737_v51, %v2741_v14  ;;  %v5490_v19 = vcombine.high %v8082_v10, %v8084_v26  ;;  %v8121_v11 = vld [vmem:[#allocation7 + $0x70] sm:$0xff]  ;;  %v8125_v14 = vld [vmem:[#allocation7 + $0x58] sm:$0xff] }
 0x458   :  { %4166 = vmatpush1.bf16.msra.mxu0 %v9010_v6  ;;  %v8112_v43 = vpack.c.bf16 %v2447_v7, %v2443_v59  ;;  %v2455_v30 = vmax.f32 %v2391_v0, 0.0  ;;  %v9012_v41 = vcombine.high %v7935_v24, %v7937_v15  ;;  %v5492_v57 = vcombine.high %v8089_v49, %v8091_v27  ;;  %v8131_v15 = vld [vmem:[#allocation7 + $0xb0] sm:$0xff] }
 0x459   :  { %4392 = vmatpush1.bf16.msra.mxu1 %v9011_v55  ;;  %v6165_v51 = vpop.eup %6164  ;;  %v8139_v50 = vrot.slane %v9013_v13, %v9009_v56  ;;  %v5489_v54 = vcombine.low %v8082_v10, %v8084_v26  ;;  %v5491_v34 = vcombine.low %v8089_v49, %v8091_v27  ;;  %v5497_v35 = vcombine.low %v8119_v29, %v8121_v11  ;;  %v9014_v53 = vld [vmem:[#allocation60_spill] sm:$0xff]  ;;  %v9015_v27 = vld [vmem:[#allocation23_spill] sm:$0xff] }
 0x45a   :  { %4167 = vmatprep.subr.bf16.mxu0 %v9012_v41  ;;  %4393 = vmatprep.subr.bf16.mxu1 %v5736_v1  ;;  %v8123_v52 = vpack.c.bf16 %v2455_v30, %v2451_v3  ;;  %v2225_v24 = vmul.f32 %v6165_v51, %v2214_v17  ;;  %v5498_v1 = vcombine.high %v8119_v29, %v8121_v11 }
 0x45b   :  { %v5499_v25 = vcombine.low %v8125_v14, %v8127_v36  ;;  %v5500_v59 = vcombine.high %v8125_v14, %v8127_v36  ;;  %v5506_v10 = vcombine.high %v8129_v2, %v8131_v15  ;;  %v5508_v26 = vcombine.high %v8133_v61, %v8135_v58  ;;  %v2523_v36 = vld [vmem:[#allocation7 + $0x118] sm:$0xff] }
 0x45c   :  { %4168 = vmatpush1.bf16.msra.mxu0 %v5733_v63  ;;  %v2238_v5 = vrot.slane %v2225_v24, %v8980_v33  ;;  %v5507_v29 = vcombine.low %v8133_v61, %v8135_v58 }
 0x45d   :  { %4394 = vmatpush1.bf16.msra.mxu1 %v5735_v4  ;;  %4476 = vmatprep.subr.bf16.mxu0 %v5490_v19 }
 0x45e   :  { %4702 = vmatprep.subr.bf16.mxu1 %v5492_v57  ;;  %v2245_v49 = vmul.f32 %v2238_v5, %v9014_v53  ;;  %v2249_v7 = vmul.f32 %v2238_v5, %v9015_v27  ;;  %v2253_v0 = vmul.f32 %v2238_v5, %v7341_v8  ;;  %v2257_v17 = vmul.f32 %v2238_v5, %v7344_v12 }
 0x45f   :  { %v2261_v6 = vmul.f32 %v2238_v5, %v7347_v9  ;;  %v2265_v63 = vmul.f32 %v2238_v5, %v7350_v18  ;;  %v2269_v3 = vmul.f32 %v2238_v5, %v7353_v39  ;;  %v2273_v55 = vmul.f32 %v2238_v5, %v7356_v60 }
 0x460   :  { %v2330_v4 = vadd.f32 %v8139_v50, %v2245_v49  ;;  %v2334_v19 = vadd.f32 %v8139_v50, %v2249_v7  ;;  %v2338_v30 = vadd.f32 %v8139_v50, %v2253_v0  ;;  %v2342_v41 = vadd.f32 %v8139_v50, %v2257_v17 }
 0x461   :  { %v2346_v8 = vadd.f32 %v8139_v50, %v2261_v6  ;;  %v2350_v12 = vadd.f32 %v8139_v50, %v2265_v63  ;;  %v2354_v9 = vadd.f32 %v8139_v50, %v2269_v3  ;;  %v2358_v18 = vadd.f32 %v8139_v50, %v2273_v55 }
 0x462   :  { %v2394_v57 = vmax.f32 %v2330_v4, 0.0  ;;  %v2398_v39 = vmax.f32 %v2334_v19, 0.0  ;;  %v2402_v51 = vmax.f32 %v2338_v30, 0.0  ;;  %v2406_v60 = vmax.f32 %v2342_v41, 0.0  ;;  %v9016_v30 = vld [vmem:[#allocation33_spill] sm:$0xff] }
 0x463   :  { %v2410_v24 = vmax.f32 %v2346_v8, 0.0  ;;  %v2414_v13 = vmax.f32 %v2350_v12, 0.0  ;;  %v2418_v53 = vmax.f32 %v2354_v9, 0.0  ;;  %v2422_v49 = vmax.f32 %v2358_v18, 0.0  ;;  %v9018_v18 = vld [vmem:[#allocation62_spill] sm:$0xff] }
 0x464   :  { %v8174_v27 = vpack.c.bf16 %v2398_v39, %v2394_v57  ;;  %v8176_v7 = vpack.c.bf16 %v2406_v60, %v2402_v51  ;;  %v2277_v0 = vmul.f32 %v2238_v5, %v8916_v28  ;;  %v2281_v17 = vmul.f32 %v2238_v5, %v8917_v37 }
 0x465   :  { %v8180_v6 = vpack.c.bf16 %v2414_v13, %v2410_v24  ;;  %v8182_v63 = vpack.c.bf16 %v2422_v49, %v2418_v53  ;;  %v2285_v3 = vmul.f32 %v2238_v5, %v8926_v46  ;;  %v2289_v55 = vmul.f32 %v2238_v5, %v8927_v45  ;;  %v9017_v46 = vld [vmem:[#allocation61_spill] sm:$0xff]  ;;  %v9019_v24 = vld [vmem:[#allocation63_spill] sm:$0xff]  ;;  %v2518_v53 = vld [vmem:[#allocation7 + $0xf0] sm:$0xff] }
 0x466   :  { %4170 = vmatmul.mubr.bf16.vlgmr.msra.gmra.mrb[52].mxu0 %v8174_v27  ;;  %4396 = vmatmul.mubr.bf16.vlgmr.msra.gmra.mrb[68].mxu1 %v8174_v27  ;;  %v2362_v4 = vadd.f32 %v8139_v50, %v2277_v0  ;;  %v2366_v19 = vadd.f32 %v8139_v50, %v2281_v17  ;;  %v2293_v28 = vmul.f32 %v2238_v5, %v9016_v30  ;;  %v2515_v49 = vld [vmem:[#allocation7 + $0xd8] sm:$0xff] }
 0x467   :  { %4477 = vmatpush1.bf16.msra.mxu0 %v5489_v54  ;;  %4179 = vmatprep.mubr.bf16.mxu0 %v8032_v40  ;;  %v2370_v37 = vadd.f32 %v8139_v50, %v2285_v3  ;;  %v2374_v41 = vadd.f32 %v8139_v50, %v2289_v55  ;;  %v2297_v8 = vmul.f32 %v2238_v5, %v9017_v46  ;;  %v2514_v54 = vld [vmem:[#allocation7 + $0xd0] sm:$0xff]  ;;  %v2519_v0 = vld [vmem:[#allocation7 + $0xf8] sm:$0xff] }
 0x468   :  { %4405 = vmatprep.mubr.bf16.mxu1 %v8032_v40  ;;  %4703 = vmatpush1.bf16.msra.mxu1 %v5491_v34  ;;  %v2426_v45 = vmax.f32 %v2362_v4, 0.0  ;;  %v2430_v12 = vmax.f32 %v2366_v19, 0.0  ;;  %v2378_v9 = vadd.f32 %v8139_v50, %v2293_v28  ;;  %v2301_v57 = vmul.f32 %v2238_v5, %v9018_v18  ;;  %v2522_v19 = vld [vmem:[#allocation7 + $0x110] sm:$0xff] }
 0x469   :  { %4478 = vmatprep.subr.bf16.mxu0 %v5498_v1  ;;  %4704 = vmatprep.subr.bf16.mxu1 %v5500_v59  ;;  %v2434_v39 = vmax.f32 %v2370_v37, 0.0  ;;  %v2438_v51 = vmax.f32 %v2374_v41, 0.0  ;;  %v2382_v60 = vadd.f32 %v8139_v50, %v2297_v8  ;;  %v2305_v13 = vmul.f32 %v2238_v5, %v9019_v24  ;;  %v2534_v28 = vld [vmem:[#allocation7 + $0x170] sm:$0xff]  ;;  %v2531_v37 = vld [vmem:[#allocation7 + $0x158] sm:$0xff] }
 0x46a   :  { %v8200_v17 = vpack.c.bf16 %v2430_v12, %v2426_v45  ;;  %v2442_v34 = vmax.f32 %v2378_v9, 0.0  ;;  %v2386_v3 = vadd.f32 %v8139_v50, %v2301_v57  ;;  %v5505_v1 = vcombine.low %v8129_v2, %v8131_v15  ;;  %v2527_v2 = vld [vmem:[#allocation7 + $0x138] sm:$0xff]  ;;  %v2538_v9 = vld [vmem:[#allocation7 + $0x190] sm:$0xff] }
 0x46b   :  { %4479 = vmatpush1.bf16.msra.mxu0 %v5497_v35  ;;  %v8208_v59 = vpack.c.bf16 %v2438_v51, %v2434_v39  ;;  %v2446_v55 = vmax.f32 %v2382_v60, 0.0  ;;  %v2390_v5 = vadd.f32 %v8139_v50, %v2305_v13  ;;  %v5514_v35 = vcombine.high %v2514_v54, %v2518_v53  ;;  %v2526_v50 = vld [vmem:[#allocation7 + $0x130] sm:$0xff]  ;;  %v2535_v41 = vld [vmem:[#allocation7 + $0x178] sm:$0xff] }
 0x46c   :  { %4705 = vmatpush1.bf16.msra.mxu1 %v5499_v25  ;;  %4480 = vmatprep.subr.bf16.mxu0 %v5506_v10  ;;  %v2450_v11 = vmax.f32 %v2386_v3, 0.0  ;;  %v5516_v4 = vcombine.high %v2515_v49, %v2519_v0  ;;  %v5513_v15 = vcombine.low %v2514_v54, %v2518_v53  ;;  %v5515_v61 = vcombine.low %v2515_v49, %v2519_v0  ;;  %v2542_v18 = vld [vmem:[#allocation7 + $0x1b0] sm:$0xff]  ;;  %v2539_v57 = vld [vmem:[#allocation7 + $0x198] sm:$0xff] }
 0x46d   :  { %4706 = vmatprep.subr.bf16.mxu1 %v5508_v26  ;;  %v8222_v30 = vpack.c.bf16 %v2446_v55, %v2442_v34  ;;  %v2454_v14 = vmax.f32 %v2390_v5, 0.0  ;;  %v5522_v58 = vcombine.high %v2522_v19, %v2526_v50  ;;  %v5524_v10 = vcombine.high %v2523_v36, %v2527_v2  ;;  %v2530_v26 = vld [vmem:[#allocation7 + $0x150] sm:$0xff]  ;;  %v2543_v54 = vld [vmem:[#allocation7 + $0x1b8] sm:$0xff] }
 0x46e   :  { %4180 = vmatmul.mubr.bf16.gmra.mrb[56].mxu0 %v8176_v7  ;;  %4406 = vmatmul.mubr.bf16.gmra.mrb[72].mxu1 %v8176_v7  ;;  %v5521_v46 = vcombine.low %v2522_v19, %v2526_v50  ;;  %v5523_v8 = vcombine.low %v2523_v36, %v2527_v2  ;;  %v5530_v45 = vcombine.high %v2530_v26, %v2534_v28  ;;  %v2546_v13 = vld [vmem:[#allocation7 + $0x1d0] sm:$0xff]  ;;  %v2547_v49 = vld [vmem:[#allocation7 + $0x1d8] sm:$0xff] }
 0x46f   :  { %4481 = vmatpush1.bf16.msra.mxu0 %v5505_v1  ;;  %4189 = vmatprep.mubr.bf16.mxu0 %v8034_v16  ;;  %v8227_v25 = vpack.c.bf16 %v2454_v14, %v2450_v11  ;;  %v5532_v12 = vcombine.high %v2531_v37, %v2535_v41  ;;  %v5529_v39 = vcombine.low %v2530_v26, %v2534_v28  ;;  %v2550_v53 = vld [vmem:[#allocation7 + $0x1f0] sm:$0xff]  ;;  %v2551_v0 = vld [vmem:[#allocation7 + $0x1f8] sm:$0xff] }
 0x470   :  { %4415 = vmatprep.mubr.bf16.mxu1 %v8034_v16  ;;  %4707 = vmatpush1.bf16.msra.mxu1 %v5507_v29  ;;  %v5531_v51 = vcombine.low %v2531_v37, %v2535_v41  ;;  %v5538_v60 = vcombine.high %v2538_v9, %v2542_v18  ;;  %v5540_v24 = vcombine.high %v2539_v57, %v2543_v54  ;;  %v2554_v5 = vld [vmem:[#allocation7 + $0x210] sm:$0xff]  ;;  %v2555_v11 = vld [vmem:[#allocation7 + $0x218] sm:$0xff] }
 0x471   :  { %4482 = vmatprep.subr.bf16.mxu0 %v5514_v35  ;;  %4708 = vmatprep.subr.bf16.mxu1 %v5516_v4  ;;  %v5537_v34 = vcombine.low %v2538_v9, %v2542_v18  ;;  %v5539_v3 = vcombine.low %v2539_v57, %v2543_v54  ;;  %v5546_v1 = vcombine.high %v2546_v13, %v2550_v53  ;;  %v2558_v29 = vld [vmem:[#allocation7 + $0x230] sm:$0xff]  ;;  %v2559_v35 = vld [vmem:[#allocation7 + $0x238] sm:$0xff] }
 0x472   :  { %v5548_v55 = vcombine.high %v2547_v49, %v2551_v0  ;;  %v5545_v4 = vcombine.low %v2546_v13, %v2550_v53  ;;  %v5547_v19 = vcombine.low %v2547_v49, %v2551_v0  ;;  %v5554_v50 = vcombine.high %v2554_v5, %v2558_v29  ;;  %v2562_v36 = vld [vmem:[#allocation7 + $0x250] sm:$0xff] }
 0x473   :  { %4483 = vmatpush1.bf16.msra.mxu0 %v5513_v15  ;;  %v5556_v14 = vcombine.high %v2555_v11, %v2559_v35  ;;  %v2566_v2 = vld [vmem:[#allocation7 + $0x270] sm:$0xff]  ;;  %v2563_v15 = vld [vmem:[#allocation7 + $0x258] sm:$0xff] }
 0x474   :  { %4709 = vmatpush1.bf16.msra.mxu1 %v5515_v61  ;;  %4484 = vmatprep.subr.bf16.mxu0 %v5522_v58  ;;  %v2567_v61 = vld [vmem:[#allocation7 + $0x278] sm:$0xff]  ;;  %v5553_v58 = vcombine.low %v2554_v5, %v2558_v29  ;;  %v5562_v26 = vcombine.high %v2562_v36, %v2566_v2  ;;  %v2570_v37 = vld [vmem:[#allocation7 + $0x290] sm:$0xff] }
 0x475   :  { %4710 = vmatprep.subr.bf16.mxu1 %v5524_v10  ;;  %v5555_v10 = vcombine.low %v2555_v11, %v2559_v35  ;;  %v5564_v28 = vcombine.high %v2563_v15, %v2567_v61  ;;  %v2574_v41 = vld [vmem:[#allocation7 + $0x2b0] sm:$0xff] }
 0x476   :  { %4190 = vmatmul.mubr.bf16.gmra.mrb[60].mxu0 %v8180_v6  ;;  %4416 = vmatmul.mubr.bf16.gmra.mrb[76].mxu1 %v8180_v6  ;;  %v5570_v9 = vcombine.high %v2570_v37, %v2574_v41  ;;  %v2578_v57 = vld [vmem:[#allocation7 + $0x2d0] sm:$0xff] }
 0x477   :  { %4485 = vmatpush1.bf16.msra.mxu0 %v5521_v46  ;;  %4199 = vmatprep.mubr.bf16.mxu0 %v8057_v44  ;;  %v2571_v46 = vld [vmem:[#allocation7 + $0x298] sm:$0xff]  ;;  %v2582_v54 = vld [vmem:[#allocation7 + $0x2f0] sm:$0xff] }
 0x478   :  { %4425 = vmatprep.mubr.bf16.mxu1 %v8057_v44  ;;  %4711 = vmatpush1.bf16.msra.mxu1 %v5523_v8  ;;  %v2575_v8 = vld [vmem:[#allocation7 + $0x2b8] sm:$0xff]  ;;  %v5578_v13 = vcombine.high %v2578_v57, %v2582_v54  ;;  %v2586_v49 = vld [vmem:[#allocation7 + $0x310] sm:$0xff] }
 0x479   :  { %4486 = vmatprep.subr.bf16.mxu0 %v5530_v45  ;;  %4712 = vmatprep.subr.bf16.mxu1 %v5532_v12  ;;  %v5561_v45 = vcombine.low %v2562_v36, %v2566_v2  ;;  %v5563_v12 = vcombine.low %v2563_v15, %v2567_v61  ;;  %v5572_v18 = vcombine.high %v2571_v46, %v2575_v8  ;;  %v2590_v0 = vld [vmem:[#allocation7 + $0x330] sm:$0xff] }
 0x47a   :  { %v5586_v5 = vcombine.high %v2586_v49, %v2590_v0  ;;  %v2594_v11 = vld [vmem:[#allocation7 + $0x350] sm:$0xff] }
 0x47b   :  { %4487 = vmatpush1.bf16.msra.mxu0 %v5529_v39  ;;  %v2579_v39 = vld [vmem:[#allocation7 + $0x2d8] sm:$0xff]  ;;  %v2598_v35 = vld [vmem:[#allocation7 + $0x370] sm:$0xff] }
 0x47c   :  { %4713 = vmatpush1.bf16.msra.mxu1 %v5531_v51  ;;  %4488 = vmatprep.subr.bf16.mxu0 %v5538_v60  ;;  %v2583_v51 = vld [vmem:[#allocation7 + $0x2f8] sm:$0xff]  ;;  %v5569_v60 = vcombine.low %v2570_v37, %v2574_v41  ;;  %v5594_v36 = vcombine.high %v2594_v11, %v2598_v35  ;;  %v2602_v15 = vld [vmem:[#allocation7 + $0x390] sm:$0xff] }
 0x47d   :  { %4714 = vmatprep.subr.bf16.mxu1 %v5540_v24  ;;  %v5571_v24 = vcombine.low %v2571_v46, %v2575_v8  ;;  %v5580_v53 = vcombine.high %v2579_v39, %v2583_v51  ;;  %v2606_v61 = vld [vmem:[#allocation7 + $0x3b0] sm:$0xff] }
 0x47e   :  { %4200 = vmatmul.mubr.bf16.gmra.mrb[64].mxu0 %v8182_v63  ;;  %4426 = vmatmul.mubr.bf16.gmra.mrb[80].mxu1 %v8182_v63  ;;  %v5602_v37 = vcombine.high %v2602_v15, %v2606_v61  ;;  %v2610_v46 = vld [vmem:[#allocation7 + $0x3d0] sm:$0xff] }
 0x47f   :  { %4489 = vmatpush1.bf16.msra.mxu0 %v5537_v34  ;;  %4209 = vmatprep.mubr.bf16.mxu0 %v8093_v32  ;;  %v2587_v34 = vld [vmem:[#allocation7 + $0x318] sm:$0xff]  ;;  %v2614_v8 = vld [vmem:[#allocation7 + $0x3f0] sm:$0xff] }
 0x480   :  { %4435 = vmatprep.mubr.bf16.mxu1 %v8093_v32  ;;  %4715 = vmatpush1.bf16.msra.mxu1 %v5539_v3  ;;  %v2591_v3 = vld [vmem:[#allocation7 + $0x338] sm:$0xff] }
 0x481   :  { %4490 = vmatprep.subr.bf16.mxu0 %v5546_v1  ;;  %4716 = vmatprep.subr.bf16.mxu1 %v5548_v55  ;;  %v5577_v1 = vcombine.low %v2578_v57, %v2582_v54  ;;  %v5579_v55 = vcombine.low %v2579_v39, %v2583_v51  ;;  %v5588_v29 = vcombine.high %v2587_v34, %v2591_v3  ;;  %v2618_v39 = vld [vmem:[#allocation7 + $0x410] sm:$0xff] }
 0x482   :  { %v5610_v57 = vcombine.high %v2610_v46, %v2614_v8  ;;  %v2622_v51 = vld [vmem:[#allocation7 + $0x430] sm:$0xff] }
 0x483   :  { %4491 = vmatpush1.bf16.msra.mxu0 %v5545_v4  ;;  %v2595_v4 = vld [vmem:[#allocation7 + $0x358] sm:$0xff] }
 0x484   :  { %4717 = vmatpush1.bf16.msra.mxu1 %v5547_v19  ;;  %4492 = vmatprep.subr.bf16.mxu0 %v5554_v50  ;;  %v2599_v19 = vld [vmem:[#allocation7 + $0x378] sm:$0xff]  ;;  %v5585_v50 = vcombine.low %v2586_v49, %v2590_v0  ;;  %v5618_v0 = vcombine.high %v2618_v39, %v2622_v51 }
 0x485   :  { %4718 = vmatprep.subr.bf16.mxu1 %v5556_v14  ;;  %v5587_v14 = vcombine.low %v2587_v34, %v2591_v3  ;;  %v5596_v2 = vcombine.high %v2595_v4, %v2599_v19  ;;  %v2626_v3 = vld [vmem:[#allocation7 + $0x450] sm:$0xff] }
 0x486   :  { %4210 = vmatmul.mubr.bf16.gmra.mrb[68].mxu0 %v8200_v17  ;;  %4436 = vmatmul.mubr.bf16.gmra.mrb[84].mxu1 %v8200_v17 }
 0x487   :  { %4493 = vmatpush1.bf16.msra.mxu0 %v5553_v58  ;;  %4219 = vmatprep.mubr.bf16.mxu0 %v8104_v21  ;;  %v2603_v58 = vld [vmem:[#allocation7 + $0x398] sm:$0xff] }
 0x488   :  { %4445 = vmatprep.mubr.bf16.mxu1 %v8104_v21  ;;  %4719 = vmatpush1.bf16.msra.mxu1 %v5555_v10  ;;  %v2607_v10 = vld [vmem:[#allocation7 + $0x3b8] sm:$0xff] }
 0x489   :  { %4494 = vmatprep.subr.bf16.mxu0 %v5562_v26  ;;  %4720 = vmatprep.subr.bf16.mxu1 %v5564_v28  ;;  %v5593_v26 = vcombine.low %v2594_v11, %v2598_v35  ;;  %v5595_v28 = vcombine.low %v2595_v4, %v2599_v19  ;;  %v5604_v41 = vcombine.high %v2603_v58, %v2607_v10  ;;  %v2634_v4 = vld [vmem:[#allocation7 + $0x490] sm:$0xff] }
 0x48a   :  { %v2638_v19 = vld [vmem:[#allocation7 + $0x4b0] sm:$0xff] }
 0x48b   :  { %4495 = vmatpush1.bf16.msra.mxu0 %v5561_v45  ;;  %v2611_v45 = vld [vmem:[#allocation7 + $0x3d8] sm:$0xff] }
 0x48c   :  { %4721 = vmatpush1.bf16.msra.mxu1 %v5563_v12  ;;  %4496 = vmatprep.subr.bf16.mxu0 %v5570_v9  ;;  %v2615_v12 = vld [vmem:[#allocation7 + $0x3f8] sm:$0xff]  ;;  %v5601_v9 = vcombine.low %v2602_v15, %v2606_v61  ;;  %v9022_v61 = vld [vmem:[#allocation83_spill] sm:$0xff] }
 0x48d   :  { %4722 = vmatprep.subr.bf16.mxu1 %v5572_v18  ;;  %v5603_v18 = vcombine.low %v2603_v58, %v2607_v10  ;;  %v5612_v54 = vcombine.high %v2611_v45, %v2615_v12  ;;  %v5611_v49 = vcombine.low %v2611_v45, %v2615_v12  ;;  %v2639_v15 = vld [vmem:[#allocation7 + $0x4b8] sm:$0xff]  ;;  %v5634_v58 = vcombine.high %v2634_v4, %v2638_v19 }
 0x48e   :  { %4220 = vmatmul.mubr.bf16.gmra.mrb[72].mxu0 %v8208_v59  ;;  %4446 = vmatmul.mubr.bf16.gmra.mrb[88].mxu1 %v8208_v59 }
 0x48f   :  { %4497 = vmatpush1.bf16.msra.mxu0 %v5569_v60  ;;  %4229 = vmatprep.mubr.bf16.mxu0 %v8112_v43  ;;  %v2619_v60 = vld [vmem:[#allocation7 + $0x418] sm:$0xff] }
 0x490   :  { %4455 = vmatprep.mubr.bf16.mxu1 %v8112_v43  ;;  %4723 = vmatpush1.bf16.msra.mxu1 %v5571_v24  ;;  %v2623_v24 = vld [vmem:[#allocation7 + $0x438] sm:$0xff] }
 0x491   :  { %4498 = vmatprep.subr.bf16.mxu0 %v5578_v13  ;;  %4724 = vmatprep.subr.bf16.mxu1 %v5580_v53  ;;  %v9020_v13 = vld [vmem:[#allocation68_spill] sm:$0xff]  ;;  %v5609_v53 = vcombine.low %v2610_v46, %v2614_v8  ;;  %v8254_v34 = vcombine.high %v2619_v60, %v2623_v24  ;;  %v8256_v11 = vcombine.low %v2619_v60, %v2623_v24  ;;  %v2643_v46 = vld [vmem:[#allocation7 + $0x4d8] sm:$0xff] }
 0x492   :  { %v2647_v8 = vld [vmem:[#allocation7 + $0x4f8] sm:$0xff]  ;;  %v9024_v24 = vld [vmem:[#allocation44_spill] sm:$0xff] }
 0x493   :  { %4499 = vmatpush1.bf16.msra.mxu0 %v5577_v1  ;;  %v2630_v1 = vld [vmem:[#allocation7 + $0x470] sm:$0xff]  ;;  %v2655_v60 = vld [vmem:[#allocation7 + $0x538] sm:$0xff] }
 0x494   :  { %4725 = vmatpush1.bf16.msra.mxu1 %v5579_v55  ;;  %4500 = vmatprep.subr.bf16.mxu0 %v5586_v5  ;;  %v5617_v55 = vcombine.low %v2618_v39, %v2622_v51  ;;  %v2627_v5 = vld [vmem:[#allocation7 + $0x458] sm:$0xff]  ;;  %v5626_v35 = vcombine.high %v2626_v3, %v2630_v1 }
 0x495   :  { %4726 = vmatprep.subr.bf16.mxu1 %v5588_v29  ;;  %v2631_v29 = vld [vmem:[#allocation7 + $0x478] sm:$0xff] }
 0x496   :  { %4230 = vmatmul.mubr.bf16.gmra.mrb[76].mxu0 %v8222_v30  ;;  %4456 = vmatmul.mubr.bf16.gmra.mrb[92].mxu1 %v8222_v30  ;;  %v8266_v10 = vcombine.low %v2627_v5, %v2631_v29  ;;  %v2651_v51 = vld [vmem:[#allocation7 + $0x518] sm:$0xff] }
 0x497   :  { %4501 = vmatpush1.bf16.msra.mxu0 %v5585_v50  ;;  %4239 = vmatprep.mubr.bf16.mxu0 %v8123_v52  ;;  %v9021_v50 = vld [vmem:[#allocation82_spill] sm:$0xff] }
 0x498   :  { %4465 = vmatprep.mubr.bf16.mxu1 %v8123_v52  ;;  %4727 = vmatpush1.bf16.msra.mxu1 %v5587_v14  ;;  %v8260_v14 = vcombine.high %v2627_v5, %v2631_v29  ;;  %v2663_v5 = vld [vmem:[#allocation7 + $0x578] sm:$0xff]  ;;  %v8288_v29 = vcombine.low %v2651_v51, %v2655_v60 }
 0x499   :  { %4502 = vmatprep.subr.bf16.mxu0 %v5594_v36  ;;  %4728 = vmatprep.subr.bf16.mxu1 %v5596_v2  ;;  %v5625_v36 = vcombine.low %v2626_v3, %v2630_v1  ;;  %v2635_v2 = vld [vmem:[#allocation7 + $0x498] sm:$0xff]  ;;  %v2662_v3 = vld [vmem:[#allocation7 + $0x570] sm:$0xff] }
 0x49a   :  { %v8272_v45 = vcombine.low %v2635_v2, %v2639_v15 }
 0x49b   :  { %4503 = vmatpush1.bf16.msra.mxu0 %v5593_v26  ;;  %v8269_v26 = vcombine.high %v2635_v2, %v2639_v15  ;;  %v2667_v15 = vld [vmem:[#allocation7 + $0x598] sm:$0xff] }
 0x49c   :  { %4729 = vmatpush1.bf16.msra.mxu1 %v5595_v28  ;;  %4504 = vmatprep.subr.bf16.mxu0 %v5602_v37  ;;  %v2642_v28 = vld [vmem:[#allocation7 + $0x4d0] sm:$0xff] }
 0x49d   :  { %4730 = vmatprep.subr.bf16.mxu1 %v5604_v41  ;;  %v2646_v37 = vld [vmem:[#allocation7 + $0x4f0] sm:$0xff]  ;;  %v5633_v41 = vcombine.low %v2634_v4, %v2638_v19 }
 0x49e   :  { %4240 = vmatmul.mubr.bf16.gmra.mrb[80].mxu0 %v8227_v25  ;;  %4466 = vmatmul.mubr.bf16.gmra.mrb[96].mxu1 %v8227_v25  ;;  %v5642_v12 = vcombine.high %v2642_v28, %v2646_v37  ;;  %v5641_v39 = vcombine.low %v2642_v28, %v2646_v37  ;;  %v2666_v4 = vld [vmem:[#allocation7 + $0x590] sm:$0xff] }
 0x49f   :  { %4505 = vmatpush1.bf16.msra.mxu0 %v5601_v9  ;;  %4508 = vmatprep.mubr.bf16.mxu0 %v9020_v13  ;;  %v2650_v9 = vld [vmem:[#allocation7 + $0x510] sm:$0xff] }
 0x4a0   :  { %4731 = vmatpush1.bf16.msra.mxu1 %v5603_v18  ;;  %4734 = vmatprep.mubr.bf16.mxu1 %v9020_v13  ;;  %v2654_v18 = vld [vmem:[#allocation7 + $0x530] sm:$0xff] }
 0x4a1   :  { %4506 = vmatprep.subr.bf16.mxu0 %v5610_v57  ;;  %4732 = vmatprep.subr.bf16.mxu1 %v5612_v54  ;;  %v9023_v57 = vld [vmem:[#allocation43_spill] sm:$0xff]  ;;  %v8276_v54 = vcombine.high %v2643_v46, %v2647_v8  ;;  %v5650_v13 = vcombine.high %v2650_v9, %v2654_v18  ;;  %v5649_v1 = vcombine.low %v2650_v9, %v2654_v18  ;;  %v2670_v19 = vld [vmem:[#allocation7 + $0x5b0] sm:$0xff]  ;;  %v2675_v9 = vld [vmem:[#allocation7 + $0x5d8] sm:$0xff] }
 0x4a2   :  { %v5666_v28 = vcombine.high %v2666_v4, %v2670_v19  ;;  %v2679_v18 = vld [vmem:[#allocation7 + $0x5f8] sm:$0xff] }
 0x4a3   :  { %4507 = vmatpush1.bf16.msra.mxu0 %v5609_v53  ;;  %v8282_v53 = vcombine.low %v2643_v46, %v2647_v8  ;;  %v2674_v46 = vld [vmem:[#allocation7 + $0x5d0] sm:$0xff] }
 0x4a4   :  { %4733 = vmatpush1.bf16.msra.mxu1 %v5611_v49  ;;  %4589 = vmatprep.subr.bf16.mxu0 %v5618_v0  ;;  %v8285_v49 = vcombine.high %v2651_v51, %v2655_v60  ;;  %v2658_v0 = vld [vmem:[#allocation7 + $0x550] sm:$0xff] }
 0x4a5   :  { %5768 = vmatprep.subr.bf16.mxu1 %v8254_v34  ;;  %v5657_v2 = vcombine.low %v2658_v0, %v2662_v3  ;;  %v2678_v8 = vld [vmem:[#allocation7 + $0x5f0] sm:$0xff] }
 0x4a6   :  { %4509 = vmatmul.mubr.bf16.vlgmr.msra.gmra.mrb[84].mxu0 %v9021_v50  ;;  %v2682_v51 = vld [vmem:[#allocation7 + $0x610] sm:$0xff] }
 0x4a7   :  { %4590 = vmatpush1.bf16.msra.mxu0 %v5617_v55  ;;  %4735 = vmatmul.mubr.bf16.vlgmr.msra.gmra.mrb[100].mxu1 %v9021_v50  ;;  %v2659_v55 = vld [vmem:[#allocation7 + $0x558] sm:$0xff]  ;;  %v9025_v50 = vld [vmem:[#allocation51_spill] sm:$0xff]  ;;  %v2686_v60 = vld [vmem:[#allocation7 + $0x630] sm:$0xff] }
 0x4a8   :  { %4518 = vmatprep.mubr.bf16.mxu0 %v9022_v61  ;;  %4744 = vmatprep.mubr.bf16.mxu1 %v9022_v61  ;;  %v2671_v61 = vld [vmem:[#allocation7 + $0x5b8] sm:$0xff]  ;;  %v8298_v37 = vcombine.low %v2659_v55, %v2663_v5 }
 0x4a9   :  { %5784 = vmatpush1.bf16.msra.mxu1 %v8256_v11  ;;  %4591 = vmatprep.subr.bf16.mxu0 %v5626_v35  ;;  %v5658_v35 = vcombine.high %v2658_v0, %v2662_v3  ;;  %v5673_v0 = vcombine.low %v2674_v46, %v2678_v8  ;;  %v2683_v3 = vld [vmem:[#allocation7 + $0x618] sm:$0xff] }
 0x4aa   :  { %5769 = vmatprep.subr.bf16.mxu1 %v8260_v14 }
 0x4ab   :  { %4592 = vmatpush1.bf16.msra.mxu0 %v5625_v36  ;;  %v8292_v36 = vcombine.high %v2659_v55, %v2663_v5  ;;  %v9028_v55 = vld [vmem:[#allocation24_spill] sm:$0xff]  ;;  %v5682_v5 = vcombine.high %v2682_v51, %v2686_v60 }
 0x4ac   :  { %4593 = vmatprep.subr.bf16.mxu0 %v5634_v58  ;;  %v9026_v58 = vld [vmem:[#allocation36_spill] sm:$0xff] }
 0x4ad   :  { %5785 = vmatpush1.bf16.msra.mxu1 %v8266_v10 }
 0x4ae   :  { %4519 = vmatmul.mubr.bf16.gmra.mrb[88].mxu0 %v9023_v57  ;;  %5770 = vmatprep.subr.bf16.mxu1 %v8269_v26 }
 0x4af   :  { %4594 = vmatpush1.bf16.msra.mxu0 %v5633_v41  ;;  %4745 = vmatmul.mubr.bf16.gmra.mrb[104].mxu1 %v9023_v57  ;;  %v8301_v41 = vcombine.high %v2667_v15, %v2671_v61  ;;  %v8304_v57 = vcombine.low %v2667_v15, %v2671_v61  ;;  %v2691_v15 = vld [vmem:[#allocation7 + $0x658] sm:$0xff] }
 0x4b0   :  { %4528 = vmatprep.mubr.bf16.mxu0 %v9024_v24  ;;  %4754 = vmatprep.mubr.bf16.mxu1 %v9024_v24  ;;  %v9027_v24 = vld [vmem:[#allocation52_spill] sm:$0xff]  ;;  %v2695_v61 = vld [vmem:[#allocation7 + $0x678] sm:$0xff] }
 0x4b1   :  { %5786 = vmatpush1.bf16.msra.mxu1 %v8272_v45  ;;  %4595 = vmatprep.subr.bf16.mxu0 %v5642_v12  ;;  %v5665_v12 = vcombine.low %v2666_v4, %v2670_v19  ;;  %v2690_v19 = vld [vmem:[#allocation7 + $0x650] sm:$0xff] }
 0x4b2   :  { %5771 = vmatprep.subr.bf16.mxu1 %v8276_v54 }
 0x4b3   :  { %4596 = vmatpush1.bf16.msra.mxu0 %v5641_v39  ;;  %v5674_v39 = vcombine.high %v2674_v46, %v2678_v8  ;;  %v2698_v46 = vld [vmem:[#allocation7 + $0x690] sm:$0xff] }
 0x4b4   :  { %4597 = vmatprep.subr.bf16.mxu0 %v5650_v13  ;;  %v8308_v13 = vcombine.high %v2675_v9, %v2679_v18  ;;  %v2702_v8 = vld [vmem:[#allocation7 + $0x6b0] sm:$0xff] }
 0x4b5   :  { %5787 = vmatpush1.bf16.msra.mxu1 %v8282_v53 }
 0x4b6   :  { %4529 = vmatmul.mubr.bf16.gmra.mrb[92].mxu0 %v9025_v50  ;;  %5772 = vmatprep.subr.bf16.mxu1 %v8285_v49 }
 0x4b7   :  { %4598 = vmatpush1.bf16.msra.mxu0 %v5649_v1  ;;  %4755 = vmatmul.mubr.bf16.gmra.mrb[108].mxu1 %v9025_v50  ;;  %v2687_v1 = vld [vmem:[#allocation7 + $0x638] sm:$0xff]  ;;  %v2694_v50 = vld [vmem:[#allocation7 + $0x670] sm:$0xff] }
 0x4b8   :  { %4538 = vmatprep.mubr.bf16.mxu0 %v9026_v58  ;;  %4764 = vmatprep.mubr.bf16.mxu1 %v9026_v58  ;;  %v8317_v4 = vcombine.high %v2683_v3, %v2687_v1  ;;  %v8320_v58 = vcombine.low %v2683_v3, %v2687_v1  ;;  %v2710_v3 = vld [vmem:[#allocation7 + $0x6f0] sm:$0xff]  ;;  %v2707_v1 = vld [vmem:[#allocation7 + $0x6d8] sm:$0xff] }
 0x4b9   :  { %5788 = vmatpush1.bf16.msra.mxu1 %v8288_v29  ;;  %4599 = vmatprep.subr.bf16.mxu0 %v5658_v35  ;;  %v8314_v35 = vcombine.low %v2675_v9, %v2679_v18  ;;  %v5689_v9 = vcombine.low %v2690_v19, %v2694_v50  ;;  %v2699_v18 = vld [vmem:[#allocation7 + $0x698] sm:$0xff] }
 0x4ba   :  { %5773 = vmatprep.subr.bf16.mxu1 %v8292_v36 }
 0x4bb   :  { %4600 = vmatpush1.bf16.msra.mxu0 %v5657_v2  ;;  %v5681_v2 = vcombine.low %v2682_v51, %v2686_v60  ;;  %v5698_v51 = vcombine.high %v2698_v46, %v2702_v8  ;;  %v8330_v60 = vcombine.low %v2691_v15, %v2695_v61 }
 0x4bc   :  { %4601 = vmatprep.subr.bf16.mxu0 %v5666_v28  ;;  %v5690_v28 = vcombine.high %v2690_v19, %v2694_v50  ;;  %v2714_v19 = vld [vmem:[#allocation7 + $0x710] sm:$0xff] }
 0x4bd   :  { %5789 = vmatpush1.bf16.msra.mxu1 %v8298_v37  ;;  %v2718_v50 = vld [vmem:[#allocation7 + $0x730] sm:$0xff] }
 0x4be   :  { %4539 = vmatmul.mubr.bf16.gmra.mrb[96].mxu0 %v9027_v24  ;;  %5774 = vmatprep.subr.bf16.mxu1 %v8301_v41 }
 0x4bf   :  { %4602 = vmatpush1.bf16.msra.mxu0 %v5665_v12  ;;  %4765 = vmatmul.mubr.bf16.gmra.mrb[112].mxu1 %v9027_v24  ;;  %v8324_v12 = vcombine.high %v2691_v15, %v2695_v61  ;;  %v2715_v61 = vld [vmem:[#allocation7 + $0x718] sm:$0xff] }
 0x4c0   :  { %4548 = vmatprep.mubr.bf16.mxu0 %v9028_v55  ;;  %4774 = vmatprep.mubr.bf16.mxu1 %v9028_v55  ;;  %v2711_v55 = vld [vmem:[#allocation7 + $0x6f8] sm:$0xff] }
 0x4c1   :  { %5790 = vmatpush1.bf16.msra.mxu1 %v8304_v57  ;;  %4603 = vmatprep.subr.bf16.mxu0 %v5674_v39  ;;  %v2703_v39 = vld [vmem:[#allocation7 + $0x6b8] sm:$0xff] }
 0x4c2   :  { %5775 = vmatprep.subr.bf16.mxu1 %v8308_v13  ;;  %v8333_v24 = vcombine.high %v2699_v18, %v2703_v39 }
 0x4c3   :  { %4604 = vmatpush1.bf16.msra.mxu0 %v5673_v0  ;;  %v2706_v0 = vld [vmem:[#allocation7 + $0x6d0] sm:$0xff] }
 0x4c4   :  { %4605 = vmatprep.subr.bf16.mxu0 %v5682_v5  ;;  %v5706_v5 = vcombine.high %v2706_v0, %v2710_v3  ;;  %v5705_v15 = vcombine.low %v2706_v0, %v2710_v3  ;;  %v2727_v0 = vld [vmem:[#allocation7 + $0x778] sm:$0xff] }
 0x4c5   :  { %5791 = vmatpush1.bf16.msra.mxu1 %v8314_v35 }
 0x4c6   :  { %4549 = vmatmul.mubr.bf16.gmra.mrb[100].mxu0 %v7880_v31  ;;  %5776 = vmatprep.subr.bf16.mxu1 %v8317_v4 }
 0x4c7   :  { %4606 = vmatpush1.bf16.msra.mxu0 %v5681_v2  ;;  %4775 = vmatmul.mubr.bf16.gmra.mrb[116].mxu1 %v7880_v31  ;;  %v5697_v31 = vcombine.low %v2698_v46, %v2702_v8  ;;  %v8340_v2 = vcombine.high %v2707_v1, %v2711_v55  ;;  %v5714_v46 = vcombine.high %v2714_v19, %v2718_v50 }
 0x4c8   :  { %4558 = vmatprep.mubr.bf16.mxu0 %v7887_v22  ;;  %4784 = vmatprep.mubr.bf16.mxu1 %v7887_v22  ;;  %v8336_v22 = vcombine.low %v2699_v18, %v2703_v39  ;;  %v8346_v8 = vcombine.low %v2707_v1, %v2711_v55  ;;  %v2722_v18 = vld [vmem:[#allocation7 + $0x750] sm:$0xff] }
 0x4c9   :  { %5792 = vmatpush1.bf16.msra.mxu1 %v8320_v58  ;;  %4607 = vmatprep.subr.bf16.mxu0 %v5690_v28  ;;  %v2719_v28 = vld [vmem:[#allocation7 + $0x738] sm:$0xff]  ;;  %v2726_v39 = vld [vmem:[#allocation7 + $0x770] sm:$0xff] }
 0x4ca   :  { %5777 = vmatprep.subr.bf16.mxu1 %v8324_v12  ;;  %v5722_v3 = vcombine.high %v2722_v18, %v2726_v39  ;;  %v5721_v55 = vcombine.low %v2722_v18, %v2726_v39  ;;  %v2739_v18 = vld [vmem:[#allocation7 + $0x7d8] sm:$0xff] }
 0x4cb   :  { %4608 = vmatpush1.bf16.msra.mxu0 %v5689_v9  ;;  %v8349_v9 = vcombine.high %v2715_v61, %v2719_v28  ;;  %v2743_v39 = vld [vmem:[#allocation7 + $0x7f8] sm:$0xff] }
 0x4cc   :  { %4609 = vmatprep.subr.bf16.mxu0 %v5698_v51  ;;  %v2723_v51 = vld [vmem:[#allocation7 + $0x758] sm:$0xff] }
 0x4cd   :  { %5793 = vmatpush1.bf16.msra.mxu1 %v8330_v60  ;;  %v8356_v1 = vcombine.high %v2723_v51, %v2727_v0 }
 0x4ce   :  { %4559 = vmatmul.mubr.bf16.gmra.mrb[104].mxu0 %v7945_v23  ;;  %5778 = vmatprep.subr.bf16.mxu1 %v8333_v24 }
 0x4cf   :  { %4610 = vmatpush1.bf16.msra.mxu0 %v5697_v31  ;;  %4785 = vmatmul.mubr.bf16.gmra.mrb[120].mxu1 %v7945_v23  ;;  %v5713_v23 = vcombine.low %v2714_v19, %v2718_v50  ;;  %v2730_v31 = vld [vmem:[#allocation7 + $0x790] sm:$0xff]  ;;  %v2731_v19 = vld [vmem:[#allocation7 + $0x798] sm:$0xff] }
 0x4d0   :  { %4568 = vmatprep.mubr.bf16.mxu0 %v7955_v47  ;;  %4794 = vmatprep.mubr.bf16.mxu1 %v7955_v47  ;;  %v8352_v47 = vcombine.low %v2715_v61, %v2719_v28  ;;  %v2735_v50 = vld [vmem:[#allocation7 + $0x7b8] sm:$0xff]  ;;  %v8362_v61 = vcombine.low %v2723_v51, %v2727_v0  ;;  %v8372_v51 = vcombine.high %v2739_v18, %v2743_v39 }
 0x4d1   :  { %5794 = vmatpush1.bf16.msra.mxu1 %v8336_v22  ;;  %4611 = vmatprep.subr.bf16.mxu0 %v5706_v5  ;;  %v2734_v5 = vld [vmem:[#allocation7 + $0x7b0] sm:$0xff]  ;;  %v8365_v28 = vcombine.high %v2731_v19, %v2735_v50 }
 0x4d2   :  { %5779 = vmatprep.subr.bf16.mxu1 %v8340_v2 }
 0x4d3   :  { %4612 = vmatpush1.bf16.msra.mxu0 %v5705_v15  ;;  %v5730_v15 = vcombine.high %v2730_v31, %v2734_v5 }
 0x4d4   :  { %4613 = vmatprep.subr.bf16.mxu0 %v5714_v46  ;;  %v2738_v46 = vld [vmem:[#allocation7 + $0x7d0] sm:$0xff] }
 0x4d5   :  { %5795 = vmatpush1.bf16.msra.mxu1 %v8346_v8 }
 0x4d6   :  { %4569 = vmatmul.mubr.bf16.gmra.mrb[108].mxu0 %v7963_v62  ;;  %5780 = vmatprep.subr.bf16.mxu1 %v8349_v9 }
 0x4d7   :  { %4614 = vmatpush1.bf16.msra.mxu0 %v5713_v23  ;;  %4795 = vmatmul.mubr.bf16.gmra.mrb[124].mxu1 %v7963_v62  ;;  %v2742_v23 = vld [vmem:[#allocation7 + $0x7f0] sm:$0xff]  ;;  %v5729_v62 = vcombine.low %v2730_v31, %v2734_v5 }
 0x4d8   :  { %4578 = vmatprep.mubr.bf16.mxu0 %v7974_v48  ;;  %4804 = vmatprep.mubr.bf16.mxu1 %v7974_v48  ;;  %v8368_v48 = vcombine.low %v2731_v19, %v2735_v50  ;;  %v5738_v20 = vcombine.high %v2738_v46, %v2742_v23  ;;  %v5737_v0 = vcombine.low %v2738_v46, %v2742_v23 }
 0x4d9   :  { %5796 = vmatpush1.bf16.msra.mxu1 %v8352_v47  ;;  %4615 = vmatprep.subr.bf16.mxu0 %v5722_v3  ;;  %v8378_v3 = vcombine.low %v2739_v18, %v2743_v39 }
 0x4da   :  { %5781 = vmatprep.subr.bf16.mxu1 %v8356_v1 }
 0x4db   :  { %4616 = vmatpush1.bf16.msra.mxu0 %v5721_v55 }
 0x4dc   :  { %4617 = vmatprep.subr.bf16.mxu0 %v5730_v15 }
 0x4dd   :  { %5797 = vmatpush1.bf16.msra.mxu1 %v8362_v61 }
 0x4de   :  { %4579 = vmatmul.mubr.bf16.gmra.mrb[112].mxu0 %v7976_v42  ;;  %5782 = vmatprep.subr.bf16.mxu1 %v8365_v28 }
 0x4df   :  { %4618 = vmatpush1.bf16.msra.mxu0 %v5729_v62  ;;  %4805 = vmatmul.mubr.bf16.gmra.mrb[128].mxu1 %v7976_v42 }
 0x4e0   :  { %4621 = vmatprep.mubr.bf16.mxu0 %v8024_v38  ;;  %4857 = vmatprep.mubr.bf16.mxu1 %v8032_v40 }
 0x4e1   :  { %5798 = vmatpush1.bf16.msra.mxu1 %v8368_v48  ;;  %4619 = vmatprep.subr.bf16.mxu0 %v5738_v20 }
 0x4e2   :  { %5783 = vmatprep.subr.bf16.mxu1 %v8372_v51 }
 0x4e3   :  { %4620 = vmatpush1.bf16.msra.mxu0 %v5737_v0 }
 0x4e4   :  { %4815 = vmatprep.subr.bf16.mxu0 %v8254_v34 }
 0x4e5   :  { %5799 = vmatpush1.bf16.msra.mxu1 %v8378_v3 }
 0x4e6   :  { %4622 = vmatmul.mubr.bf16.vlgmr.msra.gmra.mrb[84].mxu0 %v8174_v27 }
 0x4e7   :  { %4816 = vmatpush1.bf16.msra.mxu0 %v8256_v11  ;;  %4631 = vmatprep.mubr.bf16.mxu0 %v8032_v40 }
 0x4e8   :  { %4858 = vmatmul.mubr.bf16.vlgmr.msra.gmra.mrb[104].mxu1 %v8176_v7  ;;  %4817 = vmatprep.subr.bf16.mxu0 %v8260_v14 }
 0x4e9   :  { %4867 = vmatprep.mubr.bf16.mxu1 %v8034_v16 }
 0x4eb   :  { %4818 = vmatpush1.bf16.msra.mxu0 %v8266_v10 }
 0x4ec   :  { %4819 = vmatprep.subr.bf16.mxu0 %v8269_v26 }
 0x4ee   :  { %4632 = vmatmul.mubr.bf16.gmra.mrb[88].mxu0 %v8176_v7 }
 0x4ef   :  { %4820 = vmatpush1.bf16.msra.mxu0 %v8272_v45  ;;  %4641 = vmatprep.mubr.bf16.mxu0 %v8034_v16 }
 0x4f0   :  { %4868 = vmatmul.mubr.bf16.gmra.mrb[108].mxu1 %v8180_v6  ;;  %4821 = vmatprep.subr.bf16.mxu0 %v8276_v54 }
 0x4f1   :  { %4877 = vmatprep.mubr.bf16.mxu1 %v8057_v44 }
 0x4f3   :  { %4822 = vmatpush1.bf16.msra.mxu0 %v8282_v53 }
 0x4f4   :  { %4823 = vmatprep.subr.bf16.mxu0 %v8285_v49 }
 0x4f6   :  { %4642 = vmatmul.mubr.bf16.gmra.mrb[92].mxu0 %v8180_v6 }
 0x4f7   :  { %4824 = vmatpush1.bf16.msra.mxu0 %v8288_v29  ;;  %4651 = vmatprep.mubr.bf16.mxu0 %v8057_v44 }
 0x4f8   :  { %4878 = vmatmul.mubr.bf16.gmra.mrb[112].mxu1 %v8182_v63  ;;  %4825 = vmatprep.subr.bf16.mxu0 %v8292_v36 }
 0x4f9   :  { %4887 = vmatprep.mubr.bf16.mxu1 %v8093_v32 }
 0x4fb   :  { %4826 = vmatpush1.bf16.msra.mxu0 %v8298_v37 }
 0x4fc   :  { %4827 = vmatprep.subr.bf16.mxu0 %v8301_v41 }
 0x4fe   :  { %4652 = vmatmul.mubr.bf16.gmra.mrb[96].mxu0 %v8182_v63 }
 0x4ff   :  { %4828 = vmatpush1.bf16.msra.mxu0 %v8304_v57  ;;  %4661 = vmatprep.mubr.bf16.mxu0 %v8093_v32 }
 0x500   :  { %4888 = vmatmul.mubr.bf16.gmra.mrb[116].mxu1 %v8200_v17  ;;  %4829 = vmatprep.subr.bf16.mxu0 %v8308_v13 }
 0x501   :  { %4897 = vmatprep.mubr.bf16.mxu1 %v8104_v21 }
 0x503   :  { %4830 = vmatpush1.bf16.msra.mxu0 %v8314_v35 }
 0x504   :  { %4831 = vmatprep.subr.bf16.mxu0 %v8317_v4 }
 0x506   :  { %4662 = vmatmul.mubr.bf16.gmra.mrb[100].mxu0 %v8200_v17 }
 0x507   :  { %4832 = vmatpush1.bf16.msra.mxu0 %v8320_v58  ;;  %4671 = vmatprep.mubr.bf16.mxu0 %v8104_v21 }
 0x508   :  { %4898 = vmatmul.mubr.bf16.gmra.mrb[120].mxu1 %v8208_v59  ;;  %4833 = vmatprep.subr.bf16.mxu0 %v8324_v12 }
 0x509   :  { %4907 = vmatprep.mubr.bf16.mxu1 %v8112_v43 }
 0x50b   :  { %4834 = vmatpush1.bf16.msra.mxu0 %v8330_v60 }
 0x50c   :  { %4835 = vmatprep.subr.bf16.mxu0 %v8333_v24 }
 0x50e   :  { %4672 = vmatmul.mubr.bf16.gmra.mrb[104].mxu0 %v8208_v59 }
 0x50f   :  { %4836 = vmatpush1.bf16.msra.mxu0 %v8336_v22  ;;  %4681 = vmatprep.mubr.bf16.mxu0 %v8112_v43 }
 0x510   :  { %4908 = vmatmul.mubr.bf16.gmra.mrb[124].mxu1 %v8222_v30  ;;  %4837 = vmatprep.subr.bf16.mxu0 %v8340_v2 }
 0x511   :  { %4917 = vmatprep.mubr.bf16.mxu1 %v8123_v52 }
 0x513   :  { %4838 = vmatpush1.bf16.msra.mxu0 %v8346_v8 }
 0x514   :  { %4839 = vmatprep.subr.bf16.mxu0 %v8349_v9 }
 0x516   :  { %4682 = vmatmul.mubr.bf16.gmra.mrb[108].mxu0 %v8222_v30 }
 0x517   :  { %4840 = vmatpush1.bf16.msra.mxu0 %v8352_v47  ;;  %4691 = vmatprep.mubr.bf16.mxu0 %v8123_v52 }
 0x518   :  { %4918 = vmatmul.mubr.bf16.gmra.mrb[128].mxu1 %v8227_v25  ;;  %4841 = vmatprep.subr.bf16.mxu0 %v8356_v1 }
 0x51b   :  { %4842 = vmatpush1.bf16.msra.mxu0 %v8362_v61 }
 0x51c   :  { %4843 = vmatprep.subr.bf16.mxu0 %v8365_v28 }
 0x51e   :  { %4692 = vmatmul.mubr.bf16.gmra.mrb[112].mxu0 %v8227_v25 }
 0x51f   :  { %4844 = vmatpush1.bf16.msra.mxu0 %v8368_v48  ;;  %4847 = vmatprep.mubr.bf16.mxu0 %v8024_v38 }
 0x520   :  { %4845 = vmatprep.subr.bf16.mxu0 %v8372_v51 }
 0x523   :  { %4846 = vmatpush1.bf16.msra.mxu0 %v8378_v3 }
 0x526   :  { %4848 = vmatmul.mubr.bf16.vlgmr.msra.gmra.mrb[116].mxu0 %v8174_v27 }
 0x539   :  { %v4171_v20 = vpop.f32.mrb[52].mxu0  ;;  %v4397_v42 = vpop.f32.mrb[68].mxu1 }
 0x53a   :  { %v4173_v40 = vpop.f32.mrb[53].mxu0  ;;  %v4399_v16 = vpop.f32.mrb[69].mxu1 }
 0x53b   :  { %v4175_v44 = vpop.f32.mrb[54].mxu0  ;;  %v4401_v32 = vpop.f32.mrb[70].mxu1 }
 0x53c   :  { %v4928_v21 = vmax.f32 %v4171_v20, %v4175_v44  ;;  %v4954_v43 = vmax.f32 %v4397_v42, %v4401_v32  ;;  %v4177_v52 = vpop.f32.mrb[55].mxu0  ;;  %v4403_v7 = vpop.f32.mrb[71].mxu1 }
 0x53d   :  { %v4941_v6 = vmax.f32 %v4173_v40, %v4177_v52  ;;  %v4967_v63 = vmax.f32 %v4399_v16, %v4403_v7 }
 0x541   :  { %v4181_v17 = vpop.f32.mrb[56].mxu0  ;;  %v4407_v38 = vpop.f32.mrb[72].mxu1 }
 0x542   :  { %v4929_v59 = vmax.f32 %v4928_v21, %v4181_v17  ;;  %v4955_v30 = vmax.f32 %v4954_v43, %v4407_v38  ;;  %v4183_v25 = vpop.f32.mrb[57].mxu0  ;;  %v4409_v34 = vpop.f32.mrb[73].mxu1  ;;  %v8447_v17 = vld [vmem:[%s8590_s5 + $0xc] sm:$0xff]  ;;  %s6302_s5 = smov [#allocation8]  }
 0x543   :  { %v4942_v11 = vmax.f32 %v4941_v6, %v4183_v25  ;;  %v4968_v27 = vmax.f32 %v4967_v63, %v4409_v34  ;;  %v4185_v14 = vpop.f32.mrb[58].mxu0  ;;  %v4411_v10 = vpop.f32.mrb[74].mxu1  ;;  %s5322_s28 = sshll.u32 %s6302_s5, 4  ;;  %s5323_s28 = int_to_ptr.vmem [resolvable:$true] %s5322_s28 }
 0x544   :  { %v4930_v26 = vmax.f32 %v4929_v59, %v4185_v14  ;;  %v4956_v45 = vmax.f32 %v4955_v30, %v4411_v10  ;;  %v4187_v54 = vpop.f32.mrb[59].mxu0  ;;  %v4413_v53 = vpop.f32.mrb[75].mxu1  ;;  %s6264_s29 = scalar_lea.vmem %s5323_s28, 256  ;;  %p6269_p11 = scmp.lt.s32.totalorder %s5323_s28, %s5323_s28 }
 0x545   :  { %v4943_v49 = vmax.f32 %v4942_v11, %v4187_v54  ;;  %v4969_v29 = vmax.f32 %v4968_v27, %v4413_v53  ;;  %p6265_p10 = scmp.ne.s32.totalorder %s5323_s28, %s6264_s29  ;;  %p6270_p12 = scmp.lt.s32.totalorder %s6264_s29, %s6264_s29 }
 0x547   :  { %p6271_p13 = por %p6270_p12, %p6269_p11 }
 0x549   :  { %v4191_v36 = vpop.f32.mrb[60].mxu0  ;;  %v4417_v37 = vpop.f32.mrb[76].mxu1  ;;  %p6272_p0 = pnand %p6271_p13, %p6265_p10 }
 0x54a   :  { %v4931_v41 = vmax.f32 %v4930_v26, %v4191_v36  ;;  %v4957_v57 = vmax.f32 %v4956_v45, %v4417_v37  ;;  %v4193_v13 = vpop.f32.mrb[61].mxu0  ;;  %v4419_v35 = vpop.f32.mrb[77].mxu1  ;;  %v8451_v36 = vrot.slane %v8447_v17, %v8980_v33 }
 0x54b   :  { %v4944_v4 = vmax.f32 %v4943_v49, %v4193_v13  ;;  %v4970_v58 = vmax.f32 %v4969_v29, %v4419_v35  ;;  %v4195_v12 = vpop.f32.mrb[62].mxu0  ;;  %v4421_v60 = vpop.f32.mrb[78].mxu1  ;;  %v9029_v13 = vld [vmem:[#allocation14_spill] sm:$0xff] }
 0x54c   :  { %v4932_v24 = vmax.f32 %v4931_v41, %v4195_v12  ;;  %v4958_v22 = vmax.f32 %v4957_v57, %v4421_v60  ;;  %v4197_v2 = vpop.f32.mrb[63].mxu0  ;;  %v4423_v8 = vpop.f32.mrb[79].mxu1  ;;  %v8455_v41 = vrot.slane %v8447_v17, %v9009_v56  ;;  %v8459_v35 = vrot.slane %v8447_v17, %v9029_v13 }
 0x54d   :  { %v4945_v9 = vmax.f32 %v4944_v4, %v4197_v2  ;;  %v4971_v47 = vmax.f32 %v4970_v58, %v4423_v8  ;;  %v9030_v58 = vld [vmem:[#allocation39_spill] sm:$0xff] }
 0x54e   :  { %v8463_v12 = vrot.slane %v8447_v17, %v9030_v58 }
 0x551   :  { %v4201_v31 = vpop.f32.mrb[64].mxu0  ;;  %v4427_v5 = vpop.f32.mrb[80].mxu1 }
 0x552   :  { %v4933_v1 = vmax.f32 %v4932_v24, %v4201_v31  ;;  %v4959_v55 = vmax.f32 %v4958_v22, %v4427_v5  ;;  %v4203_v19 = vpop.f32.mrb[65].mxu0  ;;  %v4429_v50 = vpop.f32.mrb[81].mxu1 }
 0x553   :  { %v4946_v15 = vmax.f32 %v4945_v9, %v4203_v19  ;;  %v4972_v61 = vmax.f32 %v4971_v47, %v4429_v50  ;;  %v4205_v28 = vpop.f32.mrb[66].mxu0  ;;  %v4431_v46 = vpop.f32.mrb[82].mxu1 }
 0x554   :  { %v4934_v23 = vmax.f32 %v4933_v1, %v4205_v28  ;;  %v4960_v62 = vmax.f32 %v4959_v55, %v4431_v46  ;;  %v4207_v18 = vpop.f32.mrb[67].mxu0  ;;  %v4433_v39 = vpop.f32.mrb[83].mxu1 }
 0x555   :  { %v4947_v48 = vmax.f32 %v4946_v15, %v4207_v18  ;;  %v4973_v51 = vmax.f32 %v4972_v61, %v4433_v39 }
 0x556   :  { %v4935_v0 = vrot.slane %v4934_v23, 4  ;;  %v4961_v3 = vrot.slane %v4960_v62, 4 }
 0x557   :  { %v4948_v20 = vrot.slane %v4947_v48, 4  ;;  %v4974_v42 = vrot.slane %v4973_v51, 4 }
 0x558   :  { %v4936_v40 = vmax.f32 %v4934_v23, %v4935_v0  ;;  %v4962_v16 = vmax.f32 %v4960_v62, %v4961_v3 }
 0x559   :  { %v4949_v44 = vmax.f32 %v4947_v48, %v4948_v20  ;;  %v4975_v32 = vmax.f32 %v4973_v51, %v4974_v42  ;;  %v4211_v21 = vpop.f32.mrb[68].mxu0  ;;  %v4437_v43 = vpop.f32.mrb[84].mxu1  ;;  %v6301_v51 = vmov 1983009808  }
 0x55a   :  { %v4937_v52 = vrot.slane %v4936_v40, 2  ;;  %v4963_v7 = vrot.slane %v4962_v16, 2  ;;  %v4213_v6 = vpop.f32.mrb[69].mxu0  ;;  %v4439_v63 = vpop.f32.mrb[85].mxu1  ;;  %v5228_v0 = vunpack.c.l.s4 %v6301_v51 }
 0x55b   :  { %v4950_v38 = vrot.slane %v4949_v44, 2  ;;  %v4976_v59 = vrot.slane %v4975_v32, 2  ;;  %v4215_v30 = vpop.f32.mrb[70].mxu0  ;;  %v4441_v25 = vpop.f32.mrb[86].mxu1 }
 0x55c   :  { %v4938_v34 = vmax.f32 %v4936_v40, %v4937_v52  ;;  %v4964_v11 = vmax.f32 %v4962_v16, %v4963_v7  ;;  %v5032_v27 = vmax.f32 %v4211_v21, %v4215_v30  ;;  %v5058_v14 = vmax.f32 %v4437_v43, %v4441_v25  ;;  %v4217_v10 = vpop.f32.mrb[71].mxu0  ;;  %v4443_v26 = vpop.f32.mrb[87].mxu1 }
 0x55d   :  { %v4951_v45 = vmax.f32 %v4949_v44, %v4950_v38  ;;  %v4977_v54 = vmax.f32 %v4975_v32, %v4976_v59  ;;  %v5045_v53 = vmax.f32 %v4213_v6, %v4217_v10  ;;  %v5071_v49 = vmax.f32 %v4439_v63, %v4443_v26 }
 0x55e   :  { %v4939_v29 = vrot.slane %v4938_v34, 1  ;;  %v4965_v37 = vrot.slane %v4964_v11, 1  ;;  %v5229_v7 = vunpack.c.0.s8 %v5228_v0 }
 0x55f   :  { %v4952_v57 = vrot.slane %v4951_v45, 1  ;;  %v4978_v4 = vrot.slane %v4977_v54, 1 }
 0x560   :  { %v4940_v60 = vmax.f32 %v4938_v34, %v4939_v29  ;;  %v4966_v24 = vmax.f32 %v4964_v11, %v4965_v37 }
 0x561   :  { %v4953_v22 = vmax.f32 %v4951_v45, %v4952_v57  ;;  %v4979_v33 = vmax.f32 %v4977_v54, %v4978_v4  ;;  %v4221_v2 = vpop.f32.mrb[72].mxu0  ;;  %v4447_v8 = vpop.f32.mrb[88].mxu1 }
 0x562   :  { %v5177_v9 = vadd.f32 %v8451_v36, %v4940_v60  ;;  %v5179_v56 = vadd.f32 %v8455_v41, %v4966_v24  ;;  %v5033_v47 = vmax.f32 %v5032_v27, %v4221_v2  ;;  %v5059_v31 = vmax.f32 %v5058_v14, %v4447_v8  ;;  %v4223_v5 = vpop.f32.mrb[73].mxu0  ;;  %v4449_v1 = vpop.f32.mrb[89].mxu1  ;;  %v9031_v27 = vld [vmem:[#allocation12_spill] sm:$0xff] }
 0x563   :  { %v5178_v55 = vadd.f32 %v8459_v35, %v4953_v22  ;;  %v5180_v19 = vadd.f32 %v8463_v12, %v4979_v33  ;;  %v5046_v50 = vmax.f32 %v5045_v53, %v4223_v5  ;;  %v5072_v15 = vmax.f32 %v5071_v49, %v4449_v1  ;;  %v4225_v61 = vpop.f32.mrb[74].mxu0  ;;  %v4451_v28 = vpop.f32.mrb[90].mxu1 }
 0x564   :  { %6166 = vtanh.f32 %v5177_v9  ;;  %v5034_v46 = vmax.f32 %v5033_v47, %v4225_v61  ;;  %v5060_v23 = vmax.f32 %v5059_v31, %v4451_v28  ;;  %v4227_v62 = vpop.f32.mrb[75].mxu0  ;;  %v4453_v18 = vpop.f32.mrb[91].mxu1  ;;  %v8470_v14 = vsub.s32 %v5229_v7, %v9031_v27 }
 0x565   :  { %6168 = vtanh.f32 %v5179_v56  ;;  %v5047_v39 = vmax.f32 %v5046_v50, %v4227_v62  ;;  %v5073_v48 = vmax.f32 %v5072_v15, %v4453_v18 }
 0x566   :  { %6170 = vtanh.f32 %v5178_v55 }
 0x567   :  { %6172 = vtanh.f32 %v5180_v19 }
 0x569   :  { %v4231_v3 = vpop.f32.mrb[76].mxu0  ;;  %v4457_v20 = vpop.f32.mrb[92].mxu1 }
 0x56a   :  { %v5035_v42 = vmax.f32 %v5034_v46, %v4231_v3  ;;  %v5061_v40 = vmax.f32 %v5060_v23, %v4457_v20  ;;  %v4233_v16 = vpop.f32.mrb[77].mxu0  ;;  %v4459_v44 = vpop.f32.mrb[93].mxu1 }
 0x56b   :  { %v5048_v32 = vmax.f32 %v5047_v39, %v4233_v16  ;;  %v5074_v21 = vmax.f32 %v5073_v48, %v4459_v44  ;;  %v4235_v43 = vpop.f32.mrb[78].mxu0  ;;  %v4461_v52 = vpop.f32.mrb[94].mxu1 }
 0x56c   :  { %v5036_v6 = vmax.f32 %v5035_v42, %v4235_v43  ;;  %v5062_v63 = vmax.f32 %v5061_v40, %v4461_v52  ;;  %v4237_v38 = vpop.f32.mrb[79].mxu0  ;;  %v4463_v59 = vpop.f32.mrb[95].mxu1 }
 0x56d   :  { %v5049_v30 = vmax.f32 %v5048_v32, %v4237_v38  ;;  %v5075_v25 = vmax.f32 %v5074_v21, %v4463_v59 }
 0x56e   :  { %v6167_v34 = vpop.eup %6166 }
 0x56f   :  { %v6169_v11 = vpop.eup %6168 }
 0x570   :  { %v6171_v10 = vpop.eup %6170 }
 0x571   :  { %v6173_v26 = vpop.eup %6172  ;;  %v4241_v45 = vpop.f32.mrb[80].mxu0  ;;  %v5225_v53 = vcombine.low %v6167_v34, %v6171_v10 }
 0x572   :  { %v4467_v54 = vpop.f32.mrb[96].mxu1  ;;  %v5037_v49 = vmax.f32 %v5036_v6, %v4241_v45  ;;  %v4243_v37 = vpop.f32.mrb[81].mxu0  ;;  %v5226_v13 = vcombine.low %v6169_v11, %v6173_v26 }
 0x573   :  { %v5063_v29 = vmax.f32 %v5062_v63, %v4467_v54  ;;  %v4469_v57 = vpop.f32.mrb[97].mxu1  ;;  %v5050_v4 = vmax.f32 %v5049_v30, %v4243_v37  ;;  %v4245_v60 = vpop.f32.mrb[82].mxu0  ;;  %v5233_v22 = vrot.slane %v5225_v53, %v8470_v14 }
 0x574   :  { %v5076_v58 = vmax.f32 %v5075_v25, %v4469_v57  ;;  %v4471_v24 = vpop.f32.mrb[98].mxu1  ;;  %v5038_v33 = vmax.f32 %v5037_v49, %v4245_v60  ;;  %v4247_v8 = vpop.f32.mrb[83].mxu0  ;;  %v5240_v56 = vrot.slane %v5226_v13, %v8470_v14 }
 0x575   :  { %v5064_v2 = vmax.f32 %v5063_v29, %v4471_v24  ;;  %v4473_v9 = vpop.f32.mrb[99].mxu1  ;;  %v5051_v47 = vmax.f32 %v5050_v4, %v4247_v8 }
 0x576   :  { %v5077_v31 = vmax.f32 %v5076_v58, %v4473_v9  ;;  %v5039_v5 = vrot.slane %v5038_v33, 4  ;;  %v5241_v55 = vcombine.low %v5233_v22, %v5240_v56 }
 0x577   :  { %v5065_v1 = vrot.slane %v5064_v2, 4  ;;  %v5052_v19 = vrot.slane %v5051_v47, 4 }
 0x578   :  { %v5078_v50 = vrot.slane %v5077_v31, 4  ;;  %v5040_v15 = vmax.f32 %v5038_v33, %v5039_v5 }
 0x579   :  { %v5066_v61 = vmax.f32 %v5064_v2, %v5065_v1  ;;  %v5053_v28 = vmax.f32 %v5051_v47, %v5052_v19 }
 0x57a   :  { %v5079_v46 = vmax.f32 %v5077_v31, %v5078_v50  ;;  %v5041_v23 = vrot.slane %v5040_v15, 2  ;;  %v8474_v18 = vpop.f32.mrb[100].mxu1 }
 0x57b   :  { %v5067_v62 = vrot.slane %v5066_v61, 2  ;;  %v5054_v39 = vrot.slane %v5053_v28, 2  ;;  %v8476_v51 = vpop.f32.mrb[101].mxu1 }
 0x57c   :  { %v5080_v48 = vrot.slane %v5079_v46, 2  ;;  %v5042_v0 = vmax.f32 %v5040_v15, %v5041_v23  ;;  %v8478_v20 = vpop.f32.mrb[102].mxu1 }
 0x57d   :  { %v5068_v3 = vmax.f32 %v5066_v61, %v5067_v62  ;;  %v5055_v42 = vmax.f32 %v5053_v28, %v5054_v39  ;;  %v8480_v16 = vpop.f32.mrb[103].mxu1 }
 0x57e   :  { %v5081_v40 = vmax.f32 %v5079_v46, %v5080_v48  ;;  %v5043_v44 = vrot.slane %v5042_v0, 1 }
 0x57f   :  { %v5069_v32 = vrot.slane %v5068_v3, 1  ;;  %v5056_v21 = vrot.slane %v5055_v42, 1 }
 0x580   :  { %v5082_v43 = vrot.slane %v5081_v40, 1  ;;  %v5044_v52 = vmax.f32 %v5042_v0, %v5043_v44 }
 0x581   :  { %v5070_v7 = vmax.f32 %v5068_v3, %v5069_v32  ;;  %v5057_v6 = vmax.f32 %v5055_v42, %v5056_v21 }
 0x582   :  { %v5083_v63 = vmax.f32 %v5081_v40, %v5082_v43  ;;  %v5185_v38 = vadd.f32 %v8451_v36, %v5044_v52 }
 0x583   :  { %v5187_v59 = vadd.f32 %v8455_v41, %v5070_v7  ;;  %v5186_v30 = vadd.f32 %v8459_v35, %v5057_v6 }
 0x584   :  { %v5188_v25 = vadd.f32 %v8463_v12, %v5083_v63  ;;  %6174 = vtanh.f32 %v5185_v38 }
 0x585   :  { %6176 = vtanh.f32 %v5187_v59 }
 0x586   :  { %6178 = vtanh.f32 %v5186_v30 }
 0x587   :  { %6180 = vtanh.f32 %v5188_v25 }
 0x58e   :  { %v6175_v34 = vpop.eup %6174 }
 0x58f   :  { %v6177_v11 = vpop.eup %6176 }
 0x590   :  { %v6179_v10 = vpop.eup %6178 }
 0x591   :  { %v6181_v26 = vpop.eup %6180  ;;  %v5259_v45 = vcombine.low %v6175_v34, %v6179_v10 }
 0x592   :  { %v5260_v54 = vcombine.low %v6177_v11, %v6181_v26 }
 0x593   :  { %v5267_v53 = vrot.slane %v5259_v45, %v8470_v14 }
 0x594   :  { %v5274_v36 = vrot.slane %v5260_v54, %v8470_v14 }
 0x596   :  { %v5275_v49 = vcombine.low %v5267_v53, %v5274_v36 }
 0x598   :  { %v5297_v41 = vrot.slane %v5275_v49, 7 }
 0x59a   :  { %v5298_v35 = vsel %vm1341_vm2, %v5297_v41, %v5241_v55 }
 0x59b   :  { %v5300_v12 = vsel %vm5299_vm3, %v5297_v41, %v5298_v35 }
 0x59c   :  { %v5302_v29 = vsel %vm5301_vm4, %v5297_v41, %v5300_v12  ;;  %v5155_v12 = vsub.s32 4, %v9031_v27 }
 0x59d   :  { %v5304_v37 = vsel %vm5303_vm5, %v5297_v41, %v5302_v29 }
 0x59e   :  { %5314 = vst [vmem:[#allocation8] sm:$0xff] %v5304_v37 }
 0x5b9   :  { %v4623_v57 = vpop.f32.mrb[84].mxu0 }
 0x5ba   :  { %v4625_v13 = vpop.f32.mrb[85].mxu0 }
 0x5bb   :  { %v8492_v4 = vpop.f32.mrb[104].mxu1  ;;  %v4627_v58 = vpop.f32.mrb[86].mxu0 }
 0x5bc   :  { %v8494_v60 = vpop.f32.mrb[105].mxu1  ;;  %v4980_v24 = vmax.f32 %v4623_v57, %v4627_v58  ;;  %v4629_v22 = vpop.f32.mrb[87].mxu0  ;;  %v5159_v57 = vsub.s32 5, %v9031_v27 }
 0x5bd   :  { %v8496_v33 = vpop.f32.mrb[106].mxu1  ;;  %v4993_v2 = vmax.f32 %v4625_v13, %v4629_v22 }
 0x5be   :  { %v8498_v8 = vpop.f32.mrb[107].mxu1 }
 0x5c1   :  { %v4633_v9 = vpop.f32.mrb[88].mxu0 }
 0x5c2   :  { %v4981_v56 = vmax.f32 %v4980_v24, %v4633_v9  ;;  %v4635_v47 = vpop.f32.mrb[89].mxu0 }
 0x5c3   :  { %v8500_v31 = vpop.f32.mrb[108].mxu1  ;;  %v4994_v5 = vmax.f32 %v4993_v2, %v4635_v47  ;;  %v4637_v1 = vpop.f32.mrb[90].mxu0 }
 0x5c4   :  { %v8502_v55 = vpop.f32.mrb[109].mxu1  ;;  %v4982_v19 = vmax.f32 %v4981_v56, %v4637_v1  ;;  %v4639_v50 = vpop.f32.mrb[91].mxu0 }
 0x5c5   :  { %v8504_v15 = vpop.f32.mrb[110].mxu1  ;;  %v4995_v61 = vmax.f32 %v4994_v5, %v4639_v50 }
 0x5c6   :  { %v8506_v28 = vpop.f32.mrb[111].mxu1 }
 0x5c9   :  { %v4643_v46 = vpop.f32.mrb[92].mxu0 }
 0x5ca   :  { %v4983_v23 = vmax.f32 %v4982_v19, %v4643_v46  ;;  %v4645_v62 = vpop.f32.mrb[93].mxu0 }
 0x5cb   :  { %v8508_v39 = vpop.f32.mrb[112].mxu1  ;;  %v4996_v48 = vmax.f32 %v4995_v61, %v4645_v62  ;;  %v4647_v0 = vpop.f32.mrb[94].mxu0  ;;  %v8519_v61 = vrot.slane %v8447_v17, %v5155_v12 }
 0x5cc   :  { %v8510_v3 = vpop.f32.mrb[113].mxu1  ;;  %v4984_v42 = vmax.f32 %v4983_v23, %v4647_v0  ;;  %v4649_v40 = vpop.f32.mrb[95].mxu0 }
 0x5cd   :  { %v8512_v44 = vpop.f32.mrb[114].mxu1  ;;  %v4997_v32 = vmax.f32 %v4996_v48, %v4649_v40  ;;  %v8522_v48 = vrot.slane %v8447_v17, %v5159_v57 }
 0x5ce   :  { %v8514_v21 = vpop.f32.mrb[115].mxu1 }
 0x5d1   :  { %v4653_v43 = vpop.f32.mrb[96].mxu0 }
 0x5d2   :  { %v4985_v52 = vmax.f32 %v4984_v42, %v4653_v43  ;;  %v4655_v7 = vpop.f32.mrb[97].mxu0 }
 0x5d3   :  { %v4889_v6 = vpop.f32.mrb[116].mxu1  ;;  %v4998_v63 = vmax.f32 %v4997_v32, %v4655_v7  ;;  %v4657_v38 = vpop.f32.mrb[98].mxu0 }
 0x5d4   :  { %v4891_v59 = vpop.f32.mrb[117].mxu1  ;;  %v4986_v30 = vmax.f32 %v4985_v52, %v4657_v38  ;;  %v4659_v25 = vpop.f32.mrb[99].mxu0 }
 0x5d5   :  { %v4893_v34 = vpop.f32.mrb[118].mxu1  ;;  %v4999_v11 = vmax.f32 %v4998_v63, %v4659_v25 }
 0x5d6   :  { %v4987_v10 = vrot.slane %v4986_v30, 4  ;;  %v5110_v26 = vmax.f32 %v4889_v6, %v4893_v34  ;;  %v4895_v45 = vpop.f32.mrb[119].mxu1 }
 0x5d7   :  { %v5000_v54 = vrot.slane %v4999_v11, 4  ;;  %v5123_v53 = vmax.f32 %v4891_v59, %v4895_v45 }
 0x5d8   :  { %v4988_v36 = vmax.f32 %v4986_v30, %v4987_v10 }
 0x5d9   :  { %v5001_v49 = vmax.f32 %v4999_v11, %v5000_v54  ;;  %v4663_v41 = vpop.f32.mrb[100].mxu0 }
 0x5da   :  { %v4989_v35 = vrot.slane %v4988_v36, 2  ;;  %v4665_v29 = vpop.f32.mrb[101].mxu0 }
 0x5db   :  { %v5002_v37 = vrot.slane %v5001_v49, 2  ;;  %v4899_v13 = vpop.f32.mrb[120].mxu1  ;;  %v4667_v58 = vpop.f32.mrb[102].mxu0 }
 0x5dc   :  { %v4990_v24 = vmax.f32 %v4988_v36, %v4989_v35  ;;  %v5111_v22 = vmax.f32 %v5110_v26, %v4899_v13  ;;  %v4901_v2 = vpop.f32.mrb[121].mxu1  ;;  %v5084_v9 = vmax.f32 %v4663_v41, %v4667_v58  ;;  %v4669_v56 = vpop.f32.mrb[103].mxu0 }
 0x5dd   :  { %v5003_v47 = vmax.f32 %v5001_v49, %v5002_v37  ;;  %v5124_v5 = vmax.f32 %v5123_v53, %v4901_v2  ;;  %v4903_v1 = vpop.f32.mrb[122].mxu1  ;;  %v5097_v19 = vmax.f32 %v4665_v29, %v4669_v56 }
 0x5de   :  { %v4991_v50 = vrot.slane %v4990_v24, 1  ;;  %v5112_v46 = vmax.f32 %v5111_v22, %v4903_v1  ;;  %v4905_v23 = vpop.f32.mrb[123].mxu1 }
 0x5df   :  { %v5004_v62 = vrot.slane %v5003_v47, 1  ;;  %v5125_v0 = vmax.f32 %v5124_v5, %v4905_v23 }
 0x5e0   :  { %v4992_v42 = vmax.f32 %v4990_v24, %v4991_v50 }
 0x5e1   :  { %v5005_v40 = vmax.f32 %v5003_v47, %v5004_v62  ;;  %v4673_v32 = vpop.f32.mrb[104].mxu0 }
 0x5e2   :  { %v5181_v43 = vadd.f32 %v8519_v61, %v4992_v42  ;;  %v5085_v52 = vmax.f32 %v5084_v9, %v4673_v32  ;;  %v4675_v7 = vpop.f32.mrb[105].mxu0 }
 0x5e3   :  { %v5182_v6 = vadd.f32 %v8522_v48, %v5005_v40  ;;  %v4909_v63 = vpop.f32.mrb[124].mxu1  ;;  %v5098_v38 = vmax.f32 %v5097_v19, %v4675_v7  ;;  %v4677_v59 = vpop.f32.mrb[106].mxu0 }
 0x5e4   :  { %6182 = vtanh.f32 %v5181_v43  ;;  %v5113_v30 = vmax.f32 %v5112_v46, %v4909_v63  ;;  %v4911_v25 = vpop.f32.mrb[125].mxu1  ;;  %v5086_v34 = vmax.f32 %v5085_v52, %v4677_v59  ;;  %v4679_v11 = vpop.f32.mrb[107].mxu0 }
 0x5e5   :  { %6184 = vtanh.f32 %v5182_v6  ;;  %v5126_v10 = vmax.f32 %v5125_v0, %v4911_v25  ;;  %v4913_v26 = vpop.f32.mrb[126].mxu1  ;;  %v5099_v45 = vmax.f32 %v5098_v38, %v4679_v11  ;;  %v5163_v6 = vsub.s32 6, %v9031_v27 }
 0x5e6   :  { %v5114_v54 = vmax.f32 %v5113_v30, %v4913_v26  ;;  %v4915_v53 = vpop.f32.mrb[127].mxu1  ;;  %v5167_v30 = vsub.s32 7, %v9031_v27 }
 0x5e7   :  { %v5127_v36 = vmax.f32 %v5126_v10, %v4915_v53 }
 0x5e9   :  { %v4683_v49 = vpop.f32.mrb[108].mxu0 }
 0x5ea   :  { %v5087_v41 = vmax.f32 %v5086_v34, %v4683_v49  ;;  %v4685_v35 = vpop.f32.mrb[109].mxu0  ;;  %v8538_v49 = vrot.slane %v8447_v17, %v5167_v30 }
 0x5eb   :  { %v4919_v12 = vpop.f32.mrb[128].mxu1  ;;  %v5100_v29 = vmax.f32 %v5099_v45, %v4685_v35  ;;  %v4687_v37 = vpop.f32.mrb[110].mxu0 }
 0x5ec   :  { %v5115_v57 = vmax.f32 %v5114_v54, %v4919_v12  ;;  %v4921_v13 = vpop.f32.mrb[129].mxu1  ;;  %v5088_v58 = vmax.f32 %v5087_v41, %v4687_v37  ;;  %v4689_v24 = vpop.f32.mrb[111].mxu0  ;;  %v8535_v54 = vrot.slane %v8447_v17, %v5163_v6 }
 0x5ed   :  { %v5128_v22 = vmax.f32 %v5127_v36, %v4921_v13  ;;  %v4923_v2 = vpop.f32.mrb[130].mxu1  ;;  %v5101_v9 = vmax.f32 %v5100_v29, %v4689_v24 }
 0x5ee   :  { %v8526_v56 = vpop.eup %6182  ;;  %v5116_v47 = vmax.f32 %v5115_v57, %v4923_v2  ;;  %v4925_v5 = vpop.f32.mrb[131].mxu1 }
 0x5ef   :  { %v8528_v1 = vpop.eup %6184  ;;  %v5129_v19 = vmax.f32 %v5128_v22, %v4925_v5 }
 0x5f0   :  { %v5117_v50 = vrot.slane %v5116_v47, 4  ;;  %v5242_v46 = vcombine.low %v8526_v56, %v8528_v1 }
 0x5f1   :  { %v5130_v23 = vrot.slane %v5129_v19, 4  ;;  %v4693_v62 = vpop.f32.mrb[112].mxu0 }
 0x5f2   :  { %v5118_v0 = vmax.f32 %v5116_v47, %v5117_v50  ;;  %v5089_v42 = vmax.f32 %v5088_v58, %v4693_v62  ;;  %v4695_v40 = vpop.f32.mrb[113].mxu0 }
 0x5f3   :  { %v5131_v32 = vmax.f32 %v5129_v19, %v5130_v23  ;;  %v5102_v43 = vmax.f32 %v5101_v9, %v4695_v40  ;;  %v4697_v52 = vpop.f32.mrb[114].mxu0 }
 0x5f4   :  { %v5119_v7 = vrot.slane %v5118_v0, 2  ;;  %v5090_v63 = vmax.f32 %v5089_v42, %v4697_v52  ;;  %v4699_v38 = vpop.f32.mrb[115].mxu0 }
 0x5f5   :  { %v5132_v59 = vrot.slane %v5131_v32, 2  ;;  %v5103_v25 = vmax.f32 %v5102_v43, %v4699_v38 }
 0x5f6   :  { %v5120_v34 = vmax.f32 %v5118_v0, %v5119_v7  ;;  %v5091_v11 = vrot.slane %v5090_v63, 4 }
 0x5f7   :  { %v5133_v10 = vmax.f32 %v5131_v32, %v5132_v59  ;;  %v5104_v26 = vrot.slane %v5103_v25, 4 }
 0x5f8   :  { %v5121_v45 = vrot.slane %v5120_v34, 1  ;;  %v5092_v53 = vmax.f32 %v5090_v63, %v5091_v11 }
 0x5f9   :  { %v5134_v36 = vrot.slane %v5133_v10, 1  ;;  %v5105_v41 = vmax.f32 %v5103_v25, %v5104_v26  ;;  %v4849_v35 = vpop.f32.mrb[116].mxu0 }
 0x5fa   :  { %v5122_v12 = vmax.f32 %v5120_v34, %v5121_v45  ;;  %v5093_v29 = vrot.slane %v5092_v53, 2  ;;  %v4850_v27 = vadd.f32 %v4849_v35, %v8474_v18  ;;  %v4851_v37 = vpop.f32.mrb[117].mxu0 }
 0x5fb   :  { %v5135_v57 = vmax.f32 %v5133_v10, %v5134_v36  ;;  %v5106_v13 = vrot.slane %v5105_v41, 2  ;;  %v4852_v58 = vadd.f32 %v4851_v37, %v8476_v51  ;;  %v4853_v24 = vpop.f32.mrb[118].mxu0  ;;  %v5250_v37 = vrot.slane %v5242_v46, %v8470_v14 }
 0x5fc   :  { %v5191_v22 = vadd.f32 %v8535_v54, %v5122_v12  ;;  %v5094_v2 = vmax.f32 %v5092_v53, %v5093_v29  ;;  %v4854_v9 = vadd.f32 %v4853_v24, %v8478_v20  ;;  %v4855_v47 = vpop.f32.mrb[119].mxu0 }
 0x5fd   :  { %v5192_v17 = vadd.f32 %v8538_v49, %v5135_v57  ;;  %v5107_v5 = vmax.f32 %v5105_v41, %v5106_v13  ;;  %v4856_v19 = vadd.f32 %v4855_v47, %v8480_v16 }
 0x5fe   :  { %6186 = vtanh.f32 %v5191_v22  ;;  %v5095_v50 = vrot.slane %v5094_v2, 1  ;;  %v5006_v18 = vmax.f32 %v4850_v27, %v4854_v9 }
 0x5ff   :  { %6188 = vtanh.f32 %v5192_v17  ;;  %v5108_v23 = vrot.slane %v5107_v5, 1  ;;  %v5019_v62 = vmax.f32 %v4852_v58, %v4856_v19 }
 0x600   :  { %v5096_v0 = vmax.f32 %v5094_v2, %v5095_v50  ;;  %v5007_v51 = vmax.f32 %v5006_v18, %v8492_v4 }
 0x601   :  { %v5109_v42 = vmax.f32 %v5107_v5, %v5108_v23  ;;  %v5020_v40 = vmax.f32 %v5019_v62, %v8494_v60 }
 0x602   :  { %v5189_v20 = vadd.f32 %v8519_v61, %v5096_v0  ;;  %v5008_v32 = vmax.f32 %v5007_v51, %v8496_v33 }
 0x603   :  { %v5190_v43 = vadd.f32 %v8522_v48, %v5109_v42  ;;  %v5021_v16 = vmax.f32 %v5020_v40, %v8498_v8 }
 0x604   :  { %6190 = vtanh.f32 %v5189_v20  ;;  %v5009_v52 = vmax.f32 %v5008_v32, %v8500_v31 }
 0x605   :  { %6192 = vtanh.f32 %v5190_v43  ;;  %v5022_v7 = vmax.f32 %v5021_v16, %v8502_v55 }
 0x606   :  { %v5010_v6 = vmax.f32 %v5009_v52, %v8504_v15 }
 0x607   :  { %v5023_v4 = vmax.f32 %v5022_v7, %v8506_v28 }
 0x608   :  { %v6187_v63 = vpop.eup %6186  ;;  %v5011_v60 = vmax.f32 %v5010_v6, %v8508_v39 }
 0x609   :  { %v6189_v61 = vpop.eup %6188  ;;  %v5024_v33 = vmax.f32 %v5023_v4, %v8510_v3 }
 0x60a   :  { %v5012_v48 = vmax.f32 %v5011_v60, %v8512_v44  ;;  %v5277_v38 = vcombine.low %v6187_v63, %v6189_v61 }
 0x60b   :  { %v5025_v8 = vmax.f32 %v5024_v33, %v8514_v21 }
 0x60c   :  { %v5013_v59 = vrot.slane %v5012_v48, 4  ;;  %v5291_v26 = vrot.slane %v5277_v38, %v8470_v14 }
 0x60d   :  { %v5026_v31 = vrot.slane %v5025_v8, 4 }
 0x60e   :  { %v6191_v30 = vpop.eup %6190  ;;  %v5014_v25 = vmax.f32 %v5012_v48, %v5013_v59 }
 0x60f   :  { %v6193_v55 = vpop.eup %6192  ;;  %v5027_v34 = vmax.f32 %v5025_v8, %v5026_v31 }
 0x610   :  { %v5015_v15 = vrot.slane %v5014_v25, 2  ;;  %v5276_v11 = vcombine.low %v6191_v30, %v6193_v55 }
 0x611   :  { %v5028_v28 = vrot.slane %v5027_v34, 2 }
 0x612   :  { %v5016_v10 = vmax.f32 %v5014_v25, %v5015_v15  ;;  %v5284_v39 = vrot.slane %v5276_v11, %v8470_v14 }
 0x613   :  { %v5029_v3 = vmax.f32 %v5027_v34, %v5028_v28 }
 0x614   :  { %v5017_v45 = vrot.slane %v5016_v10, 1  ;;  %v5292_v44 = vcombine.low %v5284_v39, %v5291_v26 }
 0x615   :  { %v5030_v53 = vrot.slane %v5029_v3, 1 }
 0x616   :  { %v5018_v36 = vmax.f32 %v5016_v10, %v5017_v45  ;;  %v5307_v58 = vrot.slane %v5292_v44, 7 }
 0x617   :  { %v5031_v21 = vmax.f32 %v5029_v3, %v5030_v53 }
 0x618   :  { %v5183_v41 = vadd.f32 %v8535_v54, %v5018_v36 }
 0x619   :  { %v5184_v35 = vadd.f32 %v8538_v49, %v5031_v21 }
 0x61a   :  { %6194 = vtanh.f32 %v5183_v41 }
 0x61b   :  { %6196 = vtanh.f32 %v5184_v35 }
 0x624   :  { %v6195_v12 = vpop.eup %6194 }
 0x625   :  { %v6197_v29 = vpop.eup %6196 }
 0x626   :  { %v5243_v27 = vcombine.low %v6195_v12, %v6197_v29 }
 0x628   :  { %v5257_v57 = vrot.slane %v5243_v27, %v8470_v14 }
 0x62a   :  { %v5258_v13 = vcombine.low %v5250_v37, %v5257_v57 }
 0x62c   :  { %v5308_v54 = vsel %vm1341_vm2, %v5307_v58, %v5258_v13 }
 0x62d   :  { %v5309_v49 = vsel %vm5299_vm3, %v5307_v58, %v5308_v54 }
 0x62e   :  { %v5310_v24 = vsel %vm5301_vm4, %v5307_v58, %v5309_v49 }
 0x62f   :  { %v5311_v22 = vsel %vm5303_vm5, %v5307_v58, %v5310_v24 }
 0x630   :  { %5315 = vst [vmem:[#allocation8 + $0x8] sm:$0xff] %v5311_v22 }
 0x631   :  { %6275 = shalt.err (!%p6272_p0)
}
 0x632   :  { %s6276_s1 = scalar_lea.hbm %s8591_s6, 256 }
 0x633   :  { %p6277_p1 = scmp.ne.s32.totalorder %s8591_s6, %s6276_s1  ;;  %p6280_p2 = scmp.lt.u32.totalorder %s6276_s1, %s8591_s6 }
 0x635   :  { %p6282_p3 = pnand %p6280_p2, %p6277_p1 }
 0x637   :  { %6285 = shalt.err (!%p6282_p3)
}
 0x638   :  { %5325 = dma.vmem_to_hbm [thread:$0]  %s5323_s28, 256, %s8591_s6, [#allocation4]  }
 0x639   :  { %6290 = dma.done.wait [#allocation4], 256  }
 0x63a   :  { %6291 = vsyncadd [#allocation4], 4294967040 }
 0x63b   :  { %5329 = vsyncpa [#allocation3], 1 }
 0x63c   :  { %5330 = vsyncpa [#allocation6], 1 }
 0x63d   :  { %5331 = vsyncpa [#allocation4], 1 }

</bundles_post_ra>
